<compile_context>
chip_gen: v6e
topology: v6e:2x2x1
jax: 0.10.0
libtpu: 0.0.40
codegen_flags: <defaults>
</compile_context>

<pallas_src>
import functools

import numpy as np
import jax
import jax.numpy as jnp
from jax import lax
from jax.experimental import pallas as pl
from jax.experimental.pallas import tpu as pltpu

IMG = 28
CONV_K = 5
CONV_OUT = IMG - CONV_K + 1      # 24
POOL_OUT = CONV_OUT // 2         # 12
NPOS = POOL_OUT * POOL_OUT       # 144 pooled spatial positions per image
NPHASE = 4                       # 2x2 pool-window phases
NTAP = CONV_K * CONV_K           # 25 conv taps
COUT = 16
FC_IN = COUT * NPOS              # 2304
FC_OUT = 10


def _model_kernel(pt_ref, wc_ref, bc_ref, wfc_ref, bfc_ref, o_ref, p3_ref, *,
                  block_b):
    bcols = block_b * NPOS                      # lanes per pool-phase chunk (mult of 128)

    # ---- conv: ONE MXU matmul over the whole image tile (bf16 in, f32 acc) ----
    # wc: (16, 25) bf16 ; pt: (25, 4*block_b*144) bf16 -> y: (16, 4*block_b*144) f32
    y = jnp.dot(wc_ref[...], pt_ref[0], preferred_element_type=jnp.float32)
    y = jnp.maximum(y + bc_ref[...], 0.0)       # conv bias (16,1) broadcast + ReLU, f32

    # ---- 2x2 max-pool: the 4 phase chunks are 128-aligned contiguous lane slices ----
    pooled = jnp.maximum(
        jnp.maximum(y[:, 0:bcols], y[:, bcols:2 * bcols]),
        jnp.maximum(y[:, 2 * bcols:3 * bcols], y[:, 3 * bcols:4 * bcols]))  # (16, bcols)

    # ---- regroup (c, b*144+s) -> (c, b, s) via VMEM scratch (no lane-split reshape) ----
    for b in range(block_b):
        p3_ref[:, b, :] = pooled[:, b * NPOS:(b + 1) * NPOS]

    # ---- FC: ONE channel-batched contraction + channel-plane reduce ----
    # (16, block_b, 144) x (16, 144, 10) -> (16, block_b, 10), sum over channels.
    p3 = p3_ref[...].astype(jnp.bfloat16)
    partial = lax.dot_general(
        p3, wfc_ref[...],
        dimension_numbers=(((2,), (1,)), ((0,), (0,))),
        preferred_element_type=jnp.float32)                 # (16, block_b, 10) f32
    o_ref[...] = jnp.sum(partial, axis=0) + bfc_ref[...]    # single dense (block_b,10) store


def _build_gather_indices():
    """im2col indices, shaped (tap k, pool phase w, pooled position s)."""
    hh = np.zeros((NTAP, NPHASE, NPOS), dtype=np.int32)
    ww = np.zeros((NTAP, NPHASE, NPOS), dtype=np.int32)
    for k in range(NTAP):
        dh, dw = divmod(k, CONV_K)
        for w in range(NPHASE):
            di, dj = divmod(w, 2)
            for s in range(NPOS):
                i, j = divmod(s, POOL_OUT)
                hh[k, w, s] = 2 * i + di + dh
                ww[k, w, s] = 2 * j + dj + dw
    return hh, ww


_HH, _WW = _build_gather_indices()


def _pick_block_b(n):
    # Largest tile in {64,32,16,8} that still leaves >=2 grid steps (v7x megacore);
    # tiny batches fall back to a single 8-image tile.  block_b % 8 == 0 keeps the
    # per-phase chunk (block_b*144 lanes) a multiple of 128.
    for bb in (64, 32, 16, 8):
        if n >= 2 * bb:
            return bb
    return 8


@functools.partial(jax.jit, static_argnames=("block_b",))
def model_forward(x, wconv, bconv, wfc, bfc, block_b=None):
    """x: (N, 1, 28, 28) float32 NCHW (same as the PyTorch module)."""
    n = x.shape[0]
    if block_b is None:
        block_b = _pick_block_b(n)
    n_pad = ((n + block_b - 1) // block_b) * block_b
    n_tiles = n_pad // block_b
    ncol = NPHASE * block_b * NPOS

    xs = x[:, 0]                                        # (N, 28, 28) f32
    if n_pad != n:
        xs = jnp.pad(xs, ((0, n_pad - n), (0, 0), (0, 0)))
    xt = xs.reshape(n_tiles, block_b, IMG, IMG).astype(jnp.bfloat16)

    # Host-side im2col gather, producing per-tile phase-major columns
    #   col = w*(block_b*144) + b*144 + s   (w = pool phase, b = image, s = pooled pos)
    bb_idx = np.arange(block_b, dtype=np.int32).reshape(1, 1, block_b, 1)
    hh = _HH[:, :, None, :]                             # (25, 4, 1, 144)
    ww = _WW[:, :, None, :]
    patches = xt[:, bb_idx, hh, ww]                     # (n_tiles, 25, 4, block_b, 144) bf16
    patches = patches.reshape(n_tiles, NTAP, ncol)      # (n_tiles, 25, 4*block_b*144)

    wc_t = wconv.reshape(COUT, NTAP).astype(jnp.bfloat16)          # (16, 25)
    bc_col = bconv.reshape(COUT, 1)                                # (16, 1)  f32
    wfc_r = wfc.T.reshape(COUT, NPOS, FC_OUT).astype(jnp.bfloat16)  # (16, 144, 10), (c, s) order
    bfc_row = bfc.reshape(1, FC_OUT)                               # (1, 10)  f32

    kernel = functools.partial(_model_kernel, block_b=block_b)
    out = pl.pallas_call(
        kernel,
        out_shape=jax.ShapeDtypeStruct((n_pad, FC_OUT), jnp.float32),
        grid_spec=pltpu.PrefetchScalarGridSpec(
            num_scalar_prefetch=0,
            grid=(n_tiles,),
            in_specs=[
                pl.BlockSpec((1, NTAP, ncol), lambda t: (t, 0, 0)),
                pl.BlockSpec((COUT, NTAP), lambda t: (0, 0)),
                pl.BlockSpec((COUT, 1), lambda t: (0, 0)),
                pl.BlockSpec((COUT, NPOS, FC_OUT), lambda t: (0, 0, 0)),
                pl.BlockSpec((1, FC_OUT), lambda t: (0, 0)),
            ],
            out_specs=pl.BlockSpec((block_b, FC_OUT), lambda t: (t, 0)),
            scratch_shapes=[pltpu.VMEM((COUT, block_b, NPOS), jnp.float32)],
        ),
        compiler_params=pltpu.CompilerParams(
            dimension_semantics=("parallel",)),
    )(patches, wc_t, bc_col, wfc_r, bfc_row)
    return out[:n]


def ref_forward(x, wconv, bconv, wfc, bfc):
    """Pure-JAX f32 reference mirroring the PyTorch forward."""
    y = lax.conv_general_dilated(
        x, wconv, window_strides=(1, 1), padding="VALID",
        dimension_numbers=("NCHW", "OIHW", "NCHW"))              # (N,16,24,24)
    y = jnp.maximum(y + bconv[None, :, None, None], 0.0)
    n = x.shape[0]
    y = y.reshape(n, COUT, POOL_OUT, 2, POOL_OUT, 2).max(axis=(3, 5))
    flat = y.reshape(n, FC_IN)
    return flat @ wfc.T + bfc


if __name__ == "__main__":
    key = jax.random.PRNGKey(0)
    kx, kwc, kbc, kwf, kbf = jax.random.split(key, 5)

    # Parameter shapes from nn.Conv2d(1,16,5) / nn.Linear(2304,10)
    wconv = 0.1 * jax.random.normal(kwc, (COUT, 1, CONV_K, CONV_K), dtype=jnp.float32)
    bconv = 0.1 * jax.random.normal(kbc, (COUT,), dtype=jnp.float32)
    wfc = 0.05 * jax.random.normal(kwf, (FC_OUT, FC_IN), dtype=jnp.float32)
    bfc = 0.05 * jax.random.normal(kbf, (FC_OUT,), dtype=jnp.float32)

    # Small single-step case (batch=2 -> one 8-image tile).
    x = jax.random.normal(kx, (2, 1, IMG, IMG), dtype=jnp.float32)
    out = jax.block_until_ready(model_forward(x, wconv, bconv, wfc, bfc))
    ref = ref_forward(x, wconv, bconv, wfc, bfc)
    assert out.shape == (2, FC_OUT)
    # bf16 patch / weight streams (f32 accumulation) -> ~1e-2 absolute on the logits.
    assert jnp.allclose(out, ref, atol=5e-2, rtol=5e-2), (
        f"mismatch: max abs err {jnp.max(jnp.abs(out - ref))}")

    # Multi-step case (batch=20 -> three 8-image tiles): exercises batch padding and
    # the multi-step "parallel" grid path used for v7x megacore sharding.
    x2 = jax.random.normal(kx, (20, 1, IMG, IMG), dtype=jnp.float32)
    out2 = jax.block_until_ready(model_forward(x2, wconv, bconv, wfc, bfc))
    ref2 = ref_forward(x2, wconv, bconv, wfc, bfc)
    assert out2.shape == (20, FC_OUT)
    assert jnp.allclose(out2, ref2, atol=5e-2, rtol=5e-2), (
        f"mismatch: max abs err {jnp.max(jnp.abs(out2 - ref2))}")

    print("KERNEL_OK")
</pallas_src>

<mosaic_0001>
module attributes {stable_mosaic.version = 11 : i64} {
  func.func @_model_kernel(%arg0: i32, %arg1: memref<1x25x4608xbf16, #tpu.memory_space<vmem>>, %arg2: memref<16x25xbf16, #tpu.memory_space<vmem>>, %arg3: memref<16x1xf32, #tpu.memory_space<vmem>>, %arg4: memref<16x144x10xbf16, #tpu.memory_space<vmem>>, %arg5: memref<1x10xf32, #tpu.memory_space<vmem>>, %arg6: memref<8x10xf32, #tpu.memory_space<vmem>>, %arg7: memref<16x8x144xf32, #tpu.memory_space<vmem>>) attributes {dimension_semantics = [#tpu.dimension_semantics<parallel>], iteration_bounds = array<i64: 1>, scalar_prefetch = 0 : i64, scratch_operands = 1 : i64, tpu.core_type = #tpu.core_type<tc>, window_params = [{transform_indices = @transform_0, window_bounds = array<i64: 1, 25, 4608>}, {pipeline_mode = #tpu.pipeline_mode<synchronous>, transform_indices = @transform_1, window_bounds = array<i64: 16, 25>}, {pipeline_mode = #tpu.pipeline_mode<synchronous>, transform_indices = @transform_2, window_bounds = array<i64: 16, 1>}, {pipeline_mode = #tpu.pipeline_mode<synchronous>, transform_indices = @transform_3, window_bounds = array<i64: 16, 144, 10>}, {pipeline_mode = #tpu.pipeline_mode<synchronous>, transform_indices = @transform_4, window_bounds = array<i64: 1, 10>}, {transform_indices = @transform_5, window_bounds = array<i64: 8, 10>}]} {
    %c0 = arith.constant 0 : index
    %c0_0 = arith.constant 0 : index
    %0 = vector.load %arg2[%c0, %c0_0] : memref<16x25xbf16, #tpu.memory_space<vmem>>, vector<16x25xbf16>
    %c0_1 = arith.constant 0 : index
    %c0_2 = arith.constant 0 : index
    %c0_3 = arith.constant 0 : index
    %1 = vector.load %arg1[%c0_1, %c0_2, %c0_3] : memref<1x25x4608xbf16, #tpu.memory_space<vmem>>, vector<1x25x4608xbf16>
    %2 = vector.shape_cast %1 : vector<1x25x4608xbf16> to vector<25x4608xbf16>
    %cst = arith.constant dense<0.000000e+00> : vector<16x4608xf32>
    %3 = tpu.matmul %0, %2, %cst {dimension_numbers = #tpu.dot_dimension_numbers<[1], [0], [0], [1], [0, 0, 1, 1], [], []>} : vector<16x25xbf16>, vector<25x4608xbf16>, vector<16x4608xf32> -> vector<16x4608xf32>
    %c0_4 = arith.constant 0 : index
    %c0_5 = arith.constant 0 : index
    %4 = vector.load %arg3[%c0_4, %c0_5] : memref<16x1xf32, #tpu.memory_space<vmem>>, vector<16x1xf32>
    %5 = vector.broadcast %4 : vector<16x1xf32> to vector<16x4608xf32>
    %6 = arith.addf %3, %5 : vector<16x4608xf32>
    %cst_6 = arith.constant 0.000000e+00 : f32
    %7 = vector.broadcast %cst_6 : f32 to vector<16x4608xf32>
    %8 = arith.maximumf %6, %7 : vector<16x4608xf32>
    %9 = vector.extract_strided_slice %8 {offsets = [0, 0], sizes = [16, 1152], strides = [1, 1]} : vector<16x4608xf32> to vector<16x1152xf32>
    %10 = vector.extract_strided_slice %8 {offsets = [0, 1152], sizes = [16, 1152], strides = [1, 1]} : vector<16x4608xf32> to vector<16x1152xf32>
    %11 = arith.maximumf %9, %10 : vector<16x1152xf32>
    %12 = vector.extract_strided_slice %8 {offsets = [0, 2304], sizes = [16, 1152], strides = [1, 1]} : vector<16x4608xf32> to vector<16x1152xf32>
    %13 = vector.extract_strided_slice %8 {offsets = [0, 3456], sizes = [16, 1152], strides = [1, 1]} : vector<16x4608xf32> to vector<16x1152xf32>
    %14 = arith.maximumf %12, %13 : vector<16x1152xf32>
    %15 = arith.maximumf %11, %14 : vector<16x1152xf32>
    %16 = vector.extract_strided_slice %15 {offsets = [0, 0], sizes = [16, 144], strides = [1, 1]} : vector<16x1152xf32> to vector<16x144xf32>
    %c0_7 = arith.constant 0 : index
    %c0_8 = arith.constant 0 : index
    %c0_9 = arith.constant 0 : index
    %17 = vector.load %arg7[%c0_7, %c0_8, %c0_9] : memref<16x8x144xf32, #tpu.memory_space<vmem>>, vector<16x1x144xf32>
    %18 = vector.shape_cast %17 : vector<16x1x144xf32> to vector<16x144xf32>
    %19 = vector.shape_cast %16 : vector<16x144xf32> to vector<16x1x144xf32>
    tpu.vector_store %arg7[%c0_7, %c0_8, %c0_9], %19 {strides = array<i32>} : memref<16x8x144xf32, #tpu.memory_space<vmem>>, vector<16x1x144xf32>,
    %20 = vector.extract_strided_slice %15 {offsets = [0, 144], sizes = [16, 144], strides = [1, 1]} : vector<16x1152xf32> to vector<16x144xf32>
    %c0_10 = arith.constant 0 : index
    %c1 = arith.constant 1 : index
    %c0_11 = arith.constant 0 : index
    %21 = vector.load %arg7[%c0_10, %c1, %c0_11] : memref<16x8x144xf32, #tpu.memory_space<vmem>>, vector<16x1x144xf32>
    %22 = vector.shape_cast %21 : vector<16x1x144xf32> to vector<16x144xf32>
    %23 = vector.shape_cast %20 : vector<16x144xf32> to vector<16x1x144xf32>
    tpu.vector_store %arg7[%c0_10, %c1, %c0_11], %23 {strides = array<i32>} : memref<16x8x144xf32, #tpu.memory_space<vmem>>, vector<16x1x144xf32>,
    %24 = vector.extract_strided_slice %15 {offsets = [0, 288], sizes = [16, 144], strides = [1, 1]} : vector<16x1152xf32> to vector<16x144xf32>
    %c0_12 = arith.constant 0 : index
    %c2 = arith.constant 2 : index
    %c0_13 = arith.constant 0 : index
    %25 = vector.load %arg7[%c0_12, %c2, %c0_13] : memref<16x8x144xf32, #tpu.memory_space<vmem>>, vector<16x1x144xf32>
    %26 = vector.shape_cast %25 : vector<16x1x144xf32> to vector<16x144xf32>
    %27 = vector.shape_cast %24 : vector<16x144xf32> to vector<16x1x144xf32>
    tpu.vector_store %arg7[%c0_12, %c2, %c0_13], %27 {strides = array<i32>} : memref<16x8x144xf32, #tpu.memory_space<vmem>>, vector<16x1x144xf32>,
    %28 = vector.extract_strided_slice %15 {offsets = [0, 432], sizes = [16, 144], strides = [1, 1]} : vector<16x1152xf32> to vector<16x144xf32>
    %c0_14 = arith.constant 0 : index
    %c3 = arith.constant 3 : index
    %c0_15 = arith.constant 0 : index
    %29 = vector.load %arg7[%c0_14, %c3, %c0_15] : memref<16x8x144xf32, #tpu.memory_space<vmem>>, vector<16x1x144xf32>
    %30 = vector.shape_cast %29 : vector<16x1x144xf32> to vector<16x144xf32>
    %31 = vector.shape_cast %28 : vector<16x144xf32> to vector<16x1x144xf32>
    tpu.vector_store %arg7[%c0_14, %c3, %c0_15], %31 {strides = array<i32>} : memref<16x8x144xf32, #tpu.memory_space<vmem>>, vector<16x1x144xf32>,
    %32 = vector.extract_strided_slice %15 {offsets = [0, 576], sizes = [16, 144], strides = [1, 1]} : vector<16x1152xf32> to vector<16x144xf32>
    %c0_16 = arith.constant 0 : index
    %c4 = arith.constant 4 : index
    %c0_17 = arith.constant 0 : index
    %33 = vector.load %arg7[%c0_16, %c4, %c0_17] : memref<16x8x144xf32, #tpu.memory_space<vmem>>, vector<16x1x144xf32>
    %34 = vector.shape_cast %33 : vector<16x1x144xf32> to vector<16x144xf32>
    %35 = vector.shape_cast %32 : vector<16x144xf32> to vector<16x1x144xf32>
    tpu.vector_store %arg7[%c0_16, %c4, %c0_17], %35 {strides = array<i32>} : memref<16x8x144xf32, #tpu.memory_space<vmem>>, vector<16x1x144xf32>,
    %36 = vector.extract_strided_slice %15 {offsets = [0, 720], sizes = [16, 144], strides = [1, 1]} : vector<16x1152xf32> to vector<16x144xf32>
    %c0_18 = arith.constant 0 : index
    %c5 = arith.constant 5 : index
    %c0_19 = arith.constant 0 : index
    %37 = vector.load %arg7[%c0_18, %c5, %c0_19] : memref<16x8x144xf32, #tpu.memory_space<vmem>>, vector<16x1x144xf32>
    %38 = vector.shape_cast %37 : vector<16x1x144xf32> to vector<16x144xf32>
    %39 = vector.shape_cast %36 : vector<16x144xf32> to vector<16x1x144xf32>
    tpu.vector_store %arg7[%c0_18, %c5, %c0_19], %39 {strides = array<i32>} : memref<16x8x144xf32, #tpu.memory_space<vmem>>, vector<16x1x144xf32>,
    %40 = vector.extract_strided_slice %15 {offsets = [0, 864], sizes = [16, 144], strides = [1, 1]} : vector<16x1152xf32> to vector<16x144xf32>
    %c0_20 = arith.constant 0 : index
    %c6 = arith.constant 6 : index
    %c0_21 = arith.constant 0 : index
    %41 = vector.load %arg7[%c0_20, %c6, %c0_21] : memref<16x8x144xf32, #tpu.memory_space<vmem>>, vector<16x1x144xf32>
    %42 = vector.shape_cast %41 : vector<16x1x144xf32> to vector<16x144xf32>
    %43 = vector.shape_cast %40 : vector<16x144xf32> to vector<16x1x144xf32>
    tpu.vector_store %arg7[%c0_20, %c6, %c0_21], %43 {strides = array<i32>} : memref<16x8x144xf32, #tpu.memory_space<vmem>>, vector<16x1x144xf32>,
    %44 = vector.extract_strided_slice %15 {offsets = [0, 1008], sizes = [16, 144], strides = [1, 1]} : vector<16x1152xf32> to vector<16x144xf32>
    %c0_22 = arith.constant 0 : index
    %c7 = arith.constant 7 : index
    %c0_23 = arith.constant 0 : index
    %45 = vector.load %arg7[%c0_22, %c7, %c0_23] : memref<16x8x144xf32, #tpu.memory_space<vmem>>, vector<16x1x144xf32>
    %46 = vector.shape_cast %45 : vector<16x1x144xf32> to vector<16x144xf32>
    %47 = vector.shape_cast %44 : vector<16x144xf32> to vector<16x1x144xf32>
    tpu.vector_store %arg7[%c0_22, %c7, %c0_23], %47 {strides = array<i32>} : memref<16x8x144xf32, #tpu.memory_space<vmem>>, vector<16x1x144xf32>,
    %c0_24 = arith.constant 0 : index
    %c0_25 = arith.constant 0 : index
    %c0_26 = arith.constant 0 : index
    %48 = vector.load %arg7[%c0_24, %c0_25, %c0_26] : memref<16x8x144xf32, #tpu.memory_space<vmem>>, vector<16x8x144xf32>
    %49 = arith.truncf %48 : vector<16x8x144xf32> to vector<16x8x144xbf16>
    %c0_27 = arith.constant 0 : index
    %c0_28 = arith.constant 0 : index
    %c0_29 = arith.constant 0 : index
    %50 = vector.load %arg4[%c0_27, %c0_28, %c0_29] : memref<16x144x10xbf16, #tpu.memory_space<vmem>>, vector<16x144x10xbf16>
    %cst_30 = arith.constant dense<0.000000e+00> : vector<16x8x10xf32>
    %51 = tpu.matmul %49, %50, %cst_30 {dimension_numbers = #tpu.dot_dimension_numbers<[2], [1], [1], [2], [0, 0, 0, 1, 1, 2], [0], [0]>} : vector<16x8x144xbf16>, vector<16x144x10xbf16>, vector<16x8x10xf32> -> vector<16x8x10xf32>
    %cst_31 = arith.constant dense<0.000000e+00> : vector<8x10xf32>
    %52 = vector.multi_reduction <add>, %51, %cst_31 [0] : vector<16x8x10xf32> to vector<8x10xf32>
    %c0_32 = arith.constant 0 : index
    %c0_33 = arith.constant 0 : index
    %53 = vector.load %arg5[%c0_32, %c0_33] : memref<1x10xf32, #tpu.memory_space<vmem>>, vector<1x10xf32>
    %54 = vector.broadcast %53 : vector<1x10xf32> to vector<8x10xf32>
    %55 = arith.addf %52, %54 : vector<8x10xf32>
    %c0_34 = arith.constant 0 : index
    %c0_35 = arith.constant 0 : index
    %56 = vector.load %arg6[%c0_34, %c0_35] : memref<8x10xf32, #tpu.memory_space<vmem>>, vector<8x10xf32>
    tpu.vector_store %arg6[%c0_34, %c0_35], %55 {strides = array<i32>} : memref<8x10xf32, #tpu.memory_space<vmem>>, vector<8x10xf32>,
    return
  }
  func.func @transform_0(%arg0: i32) -> (i32, i32, i32) {
    %c0_i32 = arith.constant 0 : i32
    %c0_i32_0 = arith.constant 0 : i32
    %c0_i32_1 = arith.constant 0 : i32
    return %arg0, %c0_i32, %c0_i32_0 : i32, i32, i32
  }
  func.func @transform_1(%arg0: i32) -> (i32, i32) {
    %c0_i32 = arith.constant 0 : i32
    %c0_i32_0 = arith.constant 0 : i32
    %c0_i32_1 = arith.constant 0 : i32
    return %c0_i32, %c0_i32_0 : i32, i32
  }
  func.func @transform_2(%arg0: i32) -> (i32, i32) {
    %c0_i32 = arith.constant 0 : i32
    %c0_i32_0 = arith.constant 0 : i32
    %c0_i32_1 = arith.constant 0 : i32
    return %c0_i32, %c0_i32_0 : i32, i32
  }
  func.func @transform_3(%arg0: i32) -> (i32, i32, i32) {
    %c0_i32 = arith.constant 0 : i32
    %c0_i32_0 = arith.constant 0 : i32
    %c0_i32_1 = arith.constant 0 : i32
    %c0_i32_2 = arith.constant 0 : i32
    return %c0_i32, %c0_i32_0, %c0_i32_1 : i32, i32, i32
  }
  func.func @transform_4(%arg0: i32) -> (i32, i32) {
    %c0_i32 = arith.constant 0 : i32
    %c0_i32_0 = arith.constant 0 : i32
    %c0_i32_1 = arith.constant 0 : i32
    return %c0_i32, %c0_i32_0 : i32, i32
  }
  func.func @transform_5(%arg0: i32) -> (i32, i32) {
    %c0_i32 = arith.constant 0 : i32
    %c0_i32_0 = arith.constant 0 : i32
    return %arg0, %c0_i32 : i32, i32
  }
}

</mosaic_0001>

<bundles_post_ra>
// kernel: model_forward.1
= control target key start
LH: loop header
LB: loop body
LE: loop exit
PB: predicated region body
PF: predicated region fallthrough
CT: control target
= control target key end

     0   :  { %vm440_vm0 = vcmask 1043456   ;;  %vm441_vm1 = vcmask 1044480   ;;  %v7853_v1 = vmov 0   ;;  %v5707_v2 = vmov 65535   ;;  %s5709_s25 = smov 96   ;;  %s5710_s26 = smov 112   ;;  %s7847_s0 = inlined_call_operand.vmem [shape: bf16[1,25,4608], index: 0, kind: input, shape index: {}]   ;;  %s7848_s1 = inlined_call_operand.vmem [shape: bf16[16,25], index: 1, kind: input, shape index: {}]   ;;  %s7849_s2 = inlined_call_operand.vmem [shape: f32[16,1], index: 2, kind: input, shape index: {}]   ;;  %s7850_s3 = inlined_call_operand.vmem [shape: bf16[16,144,10], index: 3, kind: input, shape index: {}]   ;;  %s7851_s4 = inlined_call_operand.vmem [shape: f32[1,10], index: 4, kind: input, shape index: {}]   ;;  %s7852_s5 = inlined_call_operand.vmem [shape: f32[8,10], index: 5, kind: output, shape index: {}]  }
   0x1   :  { %v5453_v0 = vld [vmem:[%s7847_s0 + $0x124] ss:$144 sps:$4 sm:$0x1f]   ;;  %584 = vmatprep.mubr.bf16.mxu0 %v7853_v1  ;;  %627 = vmatprep.mubr.bf16.mxu1 %v7853_v1  ;;  %v442_v3 = vsel %vm440_vm0, 4294967295, %v5707_v2  ;;  %v5461_v11 = vld [vmem:[%s7847_s0 + $0xc] ss:$144 sps:$4 sm:$0xff]  }
   0x2   :  { %5451 = vset.pattern.permute.xlu0 %v7853_v1  ;;  %5452 = vset.pattern.permute.xlu1 %v7853_v1  ;;  %v5753_v4 = vsel %vm441_vm1, %v442_v3, 0  ;;  %v5455_v5 = vld [vmem:[%s7847_s0 + $0x12c] ss:$144 sps:$4 sm:$0x1f]   ;;  %v5459_v10 = vld [vmem:[%s7847_s0 + $0x4] ss:$144 sps:$4 sm:$0xff]  }
   0x3   :  { %v448_v6 = vand.u32 %v5453_v0, %v5753_v4  ;;  %v5457_v7 = vld [vmem:[%s7847_s0 + $0x120] ss:$144 sps:$4 sm:$0x1f]   ;;  %v5458_v8 = vld [vmem:[%s7847_s0 + $0x128] ss:$144 sps:$4 sm:$0x1f]   ;;  %v454_v9 = vand.u32 %v5455_v5, %v5753_v4 }
   0x4   :  { %v445_v12 = vand.u32 %v5457_v7, %v5753_v4  ;;  %v451_v13 = vand.u32 %v5458_v8, %v5753_v4  ;;  %v5463_v14 = vld [vmem:[%s7847_s0] ss:$144 sps:$4 sm:$0xff]   ;;  %v5464_v15 = vld [vmem:[%s7847_s0 + $0x8] ss:$144 sps:$4 sm:$0xff]   ;;  %vm436_vm2 = vcmask 203776   ;;  %s5711_s6 = smov 80  }
   0x5   :  { %564 = vmatprep.subr.bf16.mxu0 %v448_v6  ;;  %607 = vmatprep.subr.bf16.mxu1 %v454_v9  ;;  %v5466_v16 = vld [vmem:[%s7847_s0 + $0x130] ss:$144 sps:$4 sm:$0x1f]   ;;  %v5468_v17 = vld [vmem:[%s7847_s0 + $0x134] ss:$144 sps:$4 sm:$0x1f]  }
   0x6   :  { %565 = vmatpush1.bf16.msra.mxu0 %v445_v12  ;;  %608 = vmatpush1.bf16.msra.mxu1 %v451_v13  ;;  %v5469_v18 = vld [vmem:[%s7847_s0 + $0x138] ss:$144 sps:$4 sm:$0x1f]   ;;  %v5471_v19 = vld [vmem:[%s7847_s0 + $0x13c] ss:$144 sps:$4 sm:$0x1f]   ;;  %v460_v21 = vand.u32 %v5468_v17, %v5753_v4  ;;  %v457_v23 = vand.u32 %v5466_v16, %v5753_v4 }
   0x7   :  { %566 = vmatprep.subr.bf16.mxu0 %v5459_v10  ;;  %609 = vmatprep.subr.bf16.mxu1 %v5461_v11  ;;  %v5795_v20 = vld [vmem:[%s7848_s1] sm:$0xff]   ;;  %v466_v22 = vand.u32 %v5471_v19, %v5753_v4  ;;  %v463_v24 = vand.u32 %v5469_v18, %v5753_v4  ;;  %v5477_v26 = vld [vmem:[%s7847_s0 + $0x1c] ss:$144 sps:$4 sm:$0xff]   ;;  %v5475_v28 = vld [vmem:[%s7847_s0 + $0x18] ss:$144 sps:$4 sm:$0xff]   ;;  %s5712_s12 = smov 48  }
   0x8   :  { %v5474_v25 = vld [vmem:[%s7847_s0 + $0x14] ss:$144 sps:$4 sm:$0xff]   ;;  %v5472_v27 = vld [vmem:[%s7847_s0 + $0x10] ss:$144 sps:$4 sm:$0xff]   ;;  %v5489_v38 = vld [vmem:[%s7847_s0 + $0x2c] ss:$144 sps:$4 sm:$0xff]  }
   0x9   :  { %v5478_v29 = vld [vmem:[%s7847_s0 + $0x140] ss:$144 sps:$4 sm:$0x1f]   ;;  %v5480_v30 = vld [vmem:[%s7847_s0 + $0x144] ss:$144 sps:$4 sm:$0x1f]  }
   0xa   :  { %567 = vmatpush1.bf16.msra.mxu0 %v5463_v14  ;;  %610 = vmatpush1.bf16.msra.mxu1 %v5464_v15  ;;  %v5481_v31 = vld [vmem:[%s7847_s0 + $0x148] ss:$144 sps:$4 sm:$0x1f]   ;;  %v5483_v32 = vld [vmem:[%s7847_s0 + $0x14c] ss:$144 sps:$4 sm:$0x1f]   ;;  %v472_v33 = vand.u32 %v5480_v30, %v5753_v4  ;;  %v469_v36 = vand.u32 %v5478_v29, %v5753_v4 }
   0xb   :  { %650 = vmatprep.subr.bf16.mxu0 %v460_v21  ;;  %693 = vmatprep.subr.bf16.mxu1 %v466_v22  ;;  %v478_v34 = vand.u32 %v5483_v32, %v5753_v4  ;;  %v5486_v35 = vld [vmem:[%s7847_s0 + $0x24] ss:$144 sps:$4 sm:$0xff]   ;;  %v475_v37 = vand.u32 %v5481_v31, %v5753_v4  ;;  %v5495_v40 = vld [vmem:[%s7847_s0 + $0x15c] ss:$144 sps:$4 sm:$0x1f]   ;;  %s5713_s13 = smov 64  }
   0xc   :  { %v5492_v39 = vld [vmem:[%s7847_s0 + $0x154] ss:$144 sps:$4 sm:$0x1f]   ;;  %v5484_v41 = vld [vmem:[%s7847_s0 + $0x20] ss:$144 sps:$4 sm:$0xff]   ;;  %v490_v46 = vand.u32 %v5495_v40, %v5753_v4  ;;  %s5714_s16 = smov 16  }
   0xd   :  { %5262 = vmatmul.mubr.msk.bf16.vlgmr.msra.gmra.mxu0 %vm436_vm2, %v5795_v20  ;;  %5263 = vmatmul.mubr.msk.bf16.vlgmr.msra.gmra.mxu1 %vm436_vm2, %v5795_v20  ;;  %v5490_v42 = vld [vmem:[%s7847_s0 + $0x150] ss:$144 sps:$4 sm:$0x1f]   ;;  %v5487_v43 = vld [vmem:[%s7847_s0 + $0x28] ss:$144 sps:$4 sm:$0xff]   ;;  %v484_v45 = vand.u32 %v5492_v39, %v5753_v4  ;;  %s5715_s17 = smov 32  }
   0xe   :  { %651 = vmatpush1.bf16.msra.mxu0 %v457_v23  ;;  %694 = vmatpush1.bf16.msra.mxu1 %v463_v24  ;;  %v5493_v44 = vld [vmem:[%s7847_s0 + $0x158] ss:$144 sps:$4 sm:$0x1f]   ;;  %v5498_v47 = vld [vmem:[%s7847_s0 + $0x34] ss:$144 sps:$4 sm:$0xff]   ;;  %v481_v48 = vand.u32 %v5490_v42, %v5753_v4  ;;  %vm2004_vm4 = vcmask 785408  }
   0xf   :  { %652 = vmatprep.subr.bf16.mxu0 %v5474_v25  ;;  %695 = vmatprep.subr.bf16.mxu1 %v5477_v26  ;;  %v487_v49 = vand.u32 %v5493_v44, %v5753_v4  ;;  %v5501_v50 = vld [vmem:[%s7847_s0 + $0x3c] ss:$144 sps:$4 sm:$0xff]   ;;  %v5504_v51 = vld [vmem:[%s7847_s0 + $0x164] ss:$144 sps:$4 sm:$0x1f]   ;;  %vm1773_vm5 = vcmask 916480  }
  0x10   :  { %670 = vmatprep.mubr.bf16.mxu0 %v7853_v1  ;;  %713 = vmatprep.mubr.bf16.mxu1 %v7853_v1  ;;  %v5507_v52 = vld [vmem:[%s7847_s0 + $0x16c] ss:$144 sps:$4 sm:$0x1f]   ;;  %v5496_v53 = vld [vmem:[%s7847_s0 + $0x30] ss:$144 sps:$4 sm:$0xff]   ;;  %v496_v57 = vand.u32 %v5504_v51, %v5753_v4  ;;  %vm2235_vm6 = vcmask 654336  }
  0x11   :  { %v5499_v54 = vld [vmem:[%s7847_s0 + $0x38] ss:$144 sps:$4 sm:$0xff]   ;;  %v5502_v55 = vld [vmem:[%s7847_s0 + $0x160] ss:$144 sps:$4 sm:$0x1f]   ;;  %v502_v58 = vand.u32 %v5507_v52, %v5753_v4  ;;  %vm2697_vm7 = vcmask 392192  }
  0x12   :  { %653 = vmatpush1.bf16.msra.mxu0 %v5472_v27  ;;  %696 = vmatpush1.bf16.msra.mxu1 %v5475_v28  ;;  %v5505_v56 = vld [vmem:[%s7847_s0 + $0x168] ss:$144 sps:$4 sm:$0x1f]   ;;  %v5510_v59 = vld [vmem:[%s7847_s0 + $0x44] ss:$144 sps:$4 sm:$0xff]   ;;  %v493_v61 = vand.u32 %v5502_v55, %v5753_v4  ;;  %vm2466_vm8 = vcmask 523264  }
  0x13   :  { %736 = vmatprep.subr.bf16.mxu0 %v472_v33  ;;  %779 = vmatprep.subr.bf16.mxu1 %v478_v34  ;;  %v5513_v60 = vld [vmem:[%s7847_s0 + $0x4c] ss:$144 sps:$4 sm:$0xff]   ;;  %v499_v62 = vand.u32 %v5505_v56, %v5753_v4  ;;  %v5516_v63 = vld [vmem:[%s7847_s0 + $0x174] ss:$144 sps:$4 sm:$0x1f]   ;;  %vm3159_vm9 = vcmask 130048  }
  0x14   :  { %v5519_v0 = vld [vmem:[%s7847_s0 + $0x17c] ss:$144 sps:$4 sm:$0x1f]   ;;  %v5508_v2 = vld [vmem:[%s7847_s0 + $0x40] ss:$144 sps:$4 sm:$0xff]   ;;  %v508_v7 = vand.u32 %v5516_v63, %v5753_v4  ;;  %vm2928_vm10 = vcmask 261120  }
  0x15   :  { %5264 = vmatmul.mubr.msk.bf16.vlgmr.msra.gmra.mxu0 %vm436_vm2, %v5795_v20  ;;  %5265 = vmatmul.mubr.msk.bf16.vlgmr.msra.gmra.mxu1 %vm436_vm2, %v5795_v20  ;;  %v5511_v3 = vld [vmem:[%s7847_s0 + $0x48] ss:$144 sps:$4 sm:$0xff]   ;;  %v5514_v5 = vld [vmem:[%s7847_s0 + $0x170] ss:$144 sps:$4 sm:$0x1f]   ;;  %v514_v8 = vand.u32 %v5519_v0, %v5753_v4  ;;  %vm5144_vm11 = vcmask 80896  }
  0x16   :  { %737 = vmatpush1.bf16.msra.mxu0 %v469_v36  ;;  %780 = vmatpush1.bf16.msra.mxu1 %v475_v37  ;;  %v5517_v6 = vld [vmem:[%s7847_s0 + $0x178] ss:$144 sps:$4 sm:$0x1f]   ;;  %v505_v9 = vand.u32 %v5514_v5, %v5753_v4  ;;  %v5522_v11 = vld [vmem:[%s7847_s0 + $0x54] ss:$144 sps:$4 sm:$0xff]  }
  0x17   :  { %738 = vmatprep.subr.bf16.mxu0 %v5486_v35  ;;  %781 = vmatprep.subr.bf16.mxu1 %v5489_v38  ;;  %v511_v10 = vand.u32 %v5517_v6, %v5753_v4  ;;  %v5528_v12 = vld [vmem:[%s7847_s0 + $0x184] ss:$144 sps:$4 sm:$0x1f]   ;;  %v5525_v13 = vld [vmem:[%s7847_s0 + $0x5c] ss:$144 sps:$4 sm:$0xff]  }
  0x18   :  { %756 = vmatprep.mubr.bf16.mxu0 %v7853_v1  ;;  %799 = vmatprep.mubr.bf16.mxu1 %v7853_v1  ;;  %v5531_v14 = vld [vmem:[%s7847_s0 + $0x18c] ss:$144 sps:$4 sm:$0x1f]   ;;  %v5520_v15 = vld [vmem:[%s7847_s0 + $0x50] ss:$144 sps:$4 sm:$0xff]   ;;  %v520_v21 = vand.u32 %v5528_v12, %v5753_v4 }
  0x19   :  { %v5523_v16 = vld [vmem:[%s7847_s0 + $0x58] ss:$144 sps:$4 sm:$0xff]   ;;  %v5526_v17 = vld [vmem:[%s7847_s0 + $0x180] ss:$144 sps:$4 sm:$0x1f]   ;;  %v526_v22 = vand.u32 %v5531_v14, %v5753_v4 }
  0x1a   :  { %739 = vmatpush1.bf16.msra.mxu0 %v5484_v41  ;;  %782 = vmatpush1.bf16.msra.mxu1 %v5487_v43  ;;  %v5529_v18 = vld [vmem:[%s7847_s0 + $0x188] ss:$144 sps:$4 sm:$0x1f]   ;;  %v5968_v19 = vld [vmem:[%s7847_s0 + $0x1a0] ss:$144 sps:$4 sm:$0x1f]   ;;  %v517_v26 = vand.u32 %v5526_v17, %v5753_v4 }
  0x1b   :  { %822 = vmatprep.subr.bf16.mxu0 %v484_v45  ;;  %865 = vmatprep.subr.bf16.mxu1 %v490_v46  ;;  %v5975_v23 = vld [vmem:[%s7847_s0 + $0x1a8] ss:$144 sps:$4 sm:$0x1f]   ;;  %v541_v24 = vand.u32 %v5968_v19, %v5753_v4  ;;  %v523_v27 = vand.u32 %v5529_v18, %v5753_v4  ;;  %v5534_v28 = vld [vmem:[%s7847_s0 + $0x64] ss:$144 sps:$4 sm:$0xff]  }
  0x1c   :  { %v547_v25 = vand.u32 %v5975_v23, %v5753_v4  ;;  %v5540_v29 = vld [vmem:[%s7847_s0 + $0x194] ss:$144 sps:$4 sm:$0x1f]   ;;  %v5537_v30 = vld [vmem:[%s7847_s0 + $0x6c] ss:$144 sps:$4 sm:$0xff]  }
  0x1d   :  { %5266 = vmatmul.mubr.msk.bf16.vlgmr.msra.gmra.mxu0 %vm436_vm2, %v5795_v20  ;;  %5267 = vmatmul.mubr.msk.bf16.vlgmr.msra.gmra.mxu1 %vm436_vm2, %v5795_v20  ;;  %v5543_v31 = vld [vmem:[%s7847_s0 + $0x19c] ss:$144 sps:$4 sm:$0x1f]   ;;  %v95_v32 = vld [vmem:[%s7849_s2] sm:$0xff]  ;;  %v5535_v34 = vld [vmem:[%s7847_s0 + $0x68] ss:$144 sps:$4 sm:$0xff]   ;;  %v532_v37 = vand.u32 %v5540_v29, %v5753_v4 }
  0x1e   :  { %823 = vmatpush1.bf16.msra.mxu0 %v481_v48  ;;  %866 = vmatpush1.bf16.msra.mxu1 %v487_v49  ;;  %v5532_v33 = vld [vmem:[%s7847_s0 + $0x60] ss:$144 sps:$4 sm:$0xff]   ;;  %v5541_v36 = vld [vmem:[%s7847_s0 + $0x198] ss:$144 sps:$4 sm:$0x1f]   ;;  %v538_v38 = vand.u32 %v5543_v31, %v5753_v4 }
  0x1f   :  { %824 = vmatprep.subr.bf16.mxu0 %v5498_v47  ;;  %867 = vmatprep.subr.bf16.mxu1 %v5501_v50  ;;  %v5538_v35 = vld [vmem:[%s7847_s0 + $0x190] ss:$144 sps:$4 sm:$0x1f]   ;;  %v535_v40 = vand.u32 %v5541_v36, %v5753_v4  ;;  %v5546_v41 = vld [vmem:[%s7847_s0 + $0x74] ss:$144 sps:$4 sm:$0xff]  }
  0x20   :  { %842 = vmatprep.mubr.bf16.mxu0 %v7853_v1  ;;  %885 = vmatprep.mubr.bf16.mxu1 %v7853_v1  ;;  %v529_v39 = vand.u32 %v5538_v35, %v5753_v4  ;;  %v5549_v42 = vld [vmem:[%s7847_s0 + $0x7c] ss:$144 sps:$4 sm:$0xff]   ;;  %v5552_v43 = vld [vmem:[%s7847_s0 + $0x1a4] ss:$144 sps:$4 sm:$0x1f]   ;;  %v7855_v35 = vlaneseq }
  0x21   :  { %99 = vperm.xlu0 %5451, %v95_v32   ;;  %v5555_v44 = vld [vmem:[%s7847_s0 + $0x1ac] ss:$144 sps:$4 sm:$0x1f]   ;;  %v5544_v45 = vld [vmem:[%s7847_s0 + $0x70] ss:$144 sps:$4 sm:$0xff]   ;;  %v544_v47 = vand.u32 %v5552_v43, %v5753_v4 }
  0x22   :  { %825 = vmatpush1.bf16.msra.mxu0 %v5496_v53  ;;  %868 = vmatpush1.bf16.msra.mxu1 %v5499_v54  ;;  %v5547_v46 = vld [vmem:[%s7847_s0 + $0x78] ss:$144 sps:$4 sm:$0xff]   ;;  %v550_v48 = vand.u32 %v5555_v44, %v5753_v4  ;;  %v5558_v49 = vld [vmem:[%s7847_s0 + $0x84] ss:$144 sps:$4 sm:$0xff]   ;;  %v5561_v50 = vld [vmem:[%s7847_s0 + $0x8c] ss:$144 sps:$4 sm:$0xff]  }
  0x23   :  { %908 = vmatprep.subr.bf16.mxu0 %v496_v57  ;;  %951 = vmatprep.subr.bf16.mxu1 %v502_v58  ;;  %v5556_v4 = vld [vmem:[%s7847_s0 + $0x80] ss:$144 sps:$4 sm:$0xff]   ;;  %v5559_v51 = vld [vmem:[%s7847_s0 + $0x88] ss:$144 sps:$4 sm:$0xff]  }
  0x25   :  { %5268 = vmatmul.mubr.msk.bf16.vlgmr.msra.gmra.mxu0 %vm436_vm2, %v5795_v20  ;;  %5269 = vmatmul.mubr.msk.bf16.vlgmr.msra.gmra.mxu1 %vm436_vm2, %v5795_v20 }
  0x26   :  { %909 = vmatpush1.bf16.msra.mxu0 %v493_v61  ;;  %952 = vmatpush1.bf16.msra.mxu1 %v499_v62 }
  0x27   :  { %910 = vmatprep.subr.bf16.mxu0 %v5510_v59  ;;  %953 = vmatprep.subr.bf16.mxu1 %v5513_v60 }
  0x28   :  { %928 = vmatprep.mubr.bf16.mxu0 %v7853_v1  ;;  %971 = vmatprep.mubr.bf16.mxu1 %v7853_v1 }
  0x2a   :  { %911 = vmatpush1.bf16.msra.mxu0 %v5508_v2  ;;  %954 = vmatpush1.bf16.msra.mxu1 %v5511_v3 }
  0x2b   :  { %994 = vmatprep.subr.bf16.mxu0 %v508_v7  ;;  %1037 = vmatprep.subr.bf16.mxu1 %v514_v8 }
  0x2d   :  { %5270 = vmatmul.mubr.msk.bf16.vlgmr.msra.gmra.mxu0 %vm436_vm2, %v5795_v20  ;;  %5271 = vmatmul.mubr.msk.bf16.vlgmr.msra.gmra.mxu1 %vm436_vm2, %v5795_v20 }
  0x2e   :  { %995 = vmatpush1.bf16.msra.mxu0 %v505_v9  ;;  %1038 = vmatpush1.bf16.msra.mxu1 %v511_v10 }
  0x2f   :  { %996 = vmatprep.subr.bf16.mxu0 %v5522_v11  ;;  %1039 = vmatprep.subr.bf16.mxu1 %v5525_v13 }
  0x30   :  { %1014 = vmatprep.mubr.bf16.mxu0 %v7853_v1  ;;  %1057 = vmatprep.mubr.bf16.mxu1 %v7853_v1 }
  0x32   :  { %997 = vmatpush1.bf16.msra.mxu0 %v5520_v15  ;;  %1040 = vmatpush1.bf16.msra.mxu1 %v5523_v16 }
  0x33   :  { %1080 = vmatprep.subr.bf16.mxu0 %v520_v21  ;;  %1123 = vmatprep.subr.bf16.mxu1 %v526_v22 }
  0x35   :  { %5272 = vmatmul.mubr.msk.bf16.vlgmr.msra.gmra.mxu0 %vm436_vm2, %v5795_v20  ;;  %5273 = vmatmul.mubr.msk.bf16.vlgmr.msra.gmra.mxu1 %vm436_vm2, %v5795_v20 }
  0x36   :  { %1081 = vmatpush1.bf16.msra.mxu0 %v517_v26  ;;  %1124 = vmatpush1.bf16.msra.mxu1 %v523_v27 }
  0x37   :  { %1082 = vmatprep.subr.bf16.mxu0 %v5534_v28  ;;  %1125 = vmatprep.subr.bf16.mxu1 %v5537_v30 }
  0x38   :  { %1100 = vmatprep.mubr.bf16.mxu0 %v7853_v1  ;;  %1143 = vmatprep.mubr.bf16.mxu1 %v7853_v1 }
  0x3a   :  { %1083 = vmatpush1.bf16.msra.mxu0 %v5532_v33  ;;  %1126 = vmatpush1.bf16.msra.mxu1 %v5535_v34 }
  0x3b   :  { %1166 = vmatprep.subr.bf16.mxu0 %v532_v37  ;;  %1209 = vmatprep.subr.bf16.mxu1 %v538_v38 }
  0x3d   :  { %5274 = vmatmul.mubr.msk.bf16.vlgmr.msra.gmra.mxu0 %vm436_vm2, %v5795_v20  ;;  %5275 = vmatmul.mubr.msk.bf16.vlgmr.msra.gmra.mxu1 %vm436_vm2, %v5795_v20 }
  0x3e   :  { %1167 = vmatpush1.bf16.msra.mxu0 %v529_v39  ;;  %1210 = vmatpush1.bf16.msra.mxu1 %v535_v40 }
  0x3f   :  { %1168 = vmatprep.subr.bf16.mxu0 %v5546_v41  ;;  %1211 = vmatprep.subr.bf16.mxu1 %v5549_v42 }
  0x40   :  { %1186 = vmatprep.mubr.bf16.mxu0 %v7853_v1  ;;  %1229 = vmatprep.mubr.bf16.mxu1 %v7853_v1 }
  0x42   :  { %1169 = vmatpush1.bf16.msra.mxu0 %v5544_v45  ;;  %1212 = vmatpush1.bf16.msra.mxu1 %v5547_v46 }
  0x43   :  { %1252 = vmatprep.subr.bf16.mxu0 %v544_v47  ;;  %1295 = vmatprep.subr.bf16.mxu1 %v550_v48 }
  0x45   :  { %5276 = vmatmul.mubr.msk.bf16.vlgmr.msra.gmra.mxu0 %vm436_vm2, %v5795_v20  ;;  %5277 = vmatmul.mubr.msk.bf16.vlgmr.msra.gmra.mxu1 %vm436_vm2, %v5795_v20 }
  0x46   :  { %1253 = vmatpush1.bf16.msra.mxu0 %v541_v24  ;;  %1296 = vmatpush1.bf16.msra.mxu1 %v547_v25 }
  0x47   :  { %1254 = vmatprep.subr.bf16.mxu0 %v5558_v49  ;;  %1297 = vmatprep.subr.bf16.mxu1 %v5561_v50  ;;  %v5708_v49 = vmov 1966171168  }
  0x48   :  { %1272 = vmatprep.mubr.bf16.mxu0 %v7853_v1  ;;  %1315 = vmatprep.mubr.bf16.mxu1 %v7853_v1  ;;  %v6149_v50 = vunpack.c.l.s4 %v5708_v49 }
  0x4a   :  { %1255 = vmatpush1.bf16.msra.mxu0 %v5556_v4  ;;  %1298 = vmatpush1.bf16.msra.mxu1 %v5559_v51  ;;  %v6152_v4 = vshrl.u32 %v7855_v35, 7 }
  0x4b   :  { %3649 = vmatprep.subr.bf16.mxu0 %v7853_v1  ;;  %3746 = vmatprep.subr.bf16.mxu1 %v7853_v1 }
  0x4d   :  { %5278 = vmatmul.mubr.msk.bf16.vlgmr.msra.gmra.mxu0 %vm436_vm2, %v5795_v20  ;;  %5279 = vmatmul.mubr.msk.bf16.vlgmr.msra.gmra.mxu1 %vm436_vm2, %v5795_v20 }
  0x9c   :  { %v6112_v30 = vpop.permute.xlu0 %99 }
  0xcd   :  { %v586_v52 = vpop.f32.mrf.mxu0  ;;  %v629_v53 = vpop.f32.mrf.mxu1 }
  0xce   :  { %v6121_v38 = vadd.f32 %v586_v52, %v6112_v30  ;;  %v6124_v39 = vadd.f32 %v629_v53, %v6112_v30 }
  0xcf   :  { %v588_v54 = vpop.f32.mrf.mxu0  ;;  %v631_v55 = vpop.f32.mrf.mxu1 }
  0xd0   :  { %v6115_v36 = vadd.f32 %v588_v54, %v6112_v30  ;;  %v6118_v37 = vadd.f32 %v631_v55, %v6112_v30 }
  0xd1   :  { %v6072_v56 = vpop.f32.mrf.mxu0  ;;  %v6074_v57 = vpop.f32.mrf.mxu1 }
  0xd3   :  { %v6076_v58 = vpop.f32.mrf.mxu0  ;;  %v6078_v59 = vpop.f32.mrf.mxu1 }
  0xd5   :  { %v672_v60 = vpop.f32.mrf.mxu0  ;;  %v715_v61 = vpop.f32.mrf.mxu1 }
  0xd6   :  { %v6127_v40 = vadd.f32 %v672_v60, %v6112_v30  ;;  %v6130_v41 = vadd.f32 %v715_v61, %v6112_v30 }
  0xd7   :  { %v674_v62 = vpop.f32.mrf.mxu0  ;;  %v717_v63 = vpop.f32.mrf.mxu1 }
  0xd8   :  { %v6133_v42 = vadd.f32 %v674_v62, %v6112_v30  ;;  %v6136_v43 = vadd.f32 %v717_v63, %v6112_v30 }
  0xd9   :  { %v6080_v0 = vpop.f32.mrf.mxu0  ;;  %v6082_v2 = vpop.f32.mrf.mxu1 }
  0xda   :  { %7856 = vst [vmem:[#allocation3_spill] sm:$0xff] %v6082_v2 }
  0xdb   :  { %v6084_v20 = vpop.f32.mrf.mxu0  ;;  %v6086_v3 = vpop.f32.mrf.mxu1 }
  0xdc   :  { %7857 = vst [vmem:[#allocation4_spill] sm:$0xff] %v6084_v20  ;;  %7858 = vst [vmem:[#allocation5_spill] sm:$0xff] %v6086_v3 }
  0xdd   :  { %v758_v5 = vpop.f32.mrf.mxu0  ;;  %v801_v6 = vpop.f32.mrf.mxu1 }
  0xde   :  { %v6143_v46 = vadd.f32 %v758_v5, %v6112_v30  ;;  %v802_v49 = vadd.f32 %v801_v6, %v6112_v30 }
  0xdf   :  { %v760_v7 = vpop.f32.mrf.mxu0  ;;  %v803_v8 = vpop.f32.mrf.mxu1 }
  0xe0   :  { %v761_v1 = vadd.f32 %v760_v7, %v6112_v30  ;;  %v6165_v52 = vadd.f32 %v803_v8, %v6112_v30 }
  0xe1   :  { %v6088_v9 = vpop.f32.mrf.mxu0  ;;  %v6090_v10 = vpop.f32.mrf.mxu1 }
  0xe2   :  { %7859 = vst [vmem:[#allocation6_spill] sm:$0xff] %v6088_v9 }
  0xe3   :  { %v6092_v11 = vpop.f32.mrf.mxu0  ;;  %v6094_v12 = vpop.f32.mrf.mxu1 }
  0xe5   :  { %v844_v13 = vpop.f32.mrf.mxu0  ;;  %v887_v14 = vpop.f32.mrf.mxu1 }
  0xe6   :  { %v6168_v35 = vadd.f32 %v844_v13, %v6112_v30  ;;  %v6172_v60 = vadd.f32 %v887_v14, %v6112_v30 }
  0xe7   :  { %v846_v15 = vpop.f32.mrf.mxu0  ;;  %v889_v16 = vpop.f32.mrf.mxu1 }
  0xe8   :  { %v6175_v61 = vadd.f32 %v846_v15, %v6112_v30  ;;  %v6178_v62 = vadd.f32 %v889_v16, %v6112_v30 }
  0xe9   :  { %v6096_v17 = vpop.f32.mrf.mxu0  ;;  %v6098_v18 = vpop.f32.mrf.mxu1 }
  0xea   :  { %7860 = vst [vmem:[#allocation7_spill] sm:$0xff] %v6098_v18  ;;  %v7877_v18 = vmax.f32 %v6118_v37, 0.0 }
  0xeb   :  { %v6100_v19 = vpop.f32.mrf.mxu0  ;;  %v6102_v21 = vpop.f32.mrf.mxu1 }
  0xec   :  { %7861 = vst [vmem:[#allocation8_spill] sm:$0xff] %v6100_v19  ;;  %7862 = vst [vmem:[#allocation9_spill] sm:$0xff] %v6102_v21 }
  0xed   :  { %v930_v22 = vpop.f32.mrf.mxu0  ;;  %v973_v23 = vpop.f32.mrf.mxu1 }
  0xee   :  { %v6181_v7 = vadd.f32 %v930_v22, %v6112_v30  ;;  %v974_v8 = vadd.f32 %v973_v23, %v6112_v30  ;;  %v1336_v23 = vmax.f32 %v802_v49, 0.0 }
  0xef   :  { %v932_v24 = vpop.f32.mrf.mxu0  ;;  %v975_v25 = vpop.f32.mrf.mxu1 }
  0xf0   :  { %v6185_v13 = vadd.f32 %v932_v24, %v6112_v30  ;;  %v976_v14 = vadd.f32 %v975_v25, %v6112_v30  ;;  %v1337_v24 = vmax.f32 %v6165_v52, 0.0  ;;  %v1344_v49 = vmax.f32 %v974_v8, 0.0 }
  0xf1   :  { %v6104_v26 = vpop.f32.mrf.mxu0  ;;  %v6106_v27 = vpop.f32.mrf.mxu1 }
  0xf2   :  { %7863 = vst [vmem:[#allocation10_spill] sm:$0xff] %v6104_v26 }
  0xf3   :  { %v6108_v28 = vpop.f32.mrf.mxu0  ;;  %v6110_v29 = vpop.f32.mrf.mxu1 }
  0xf4   :  { %7864 = vst [vmem:[#allocation11_spill] sm:$0xff] %v6108_v28  ;;  %v1335_v28 = vmax.f32 %v761_v1, 0.0  ;;  %v7870_v1 = vmax.f32 %v6115_v36, 0.0 }
  0xf5   :  { %v1016_v31 = vpop.f32.mrf.mxu0  ;;  %v1059_v32 = vpop.f32.mrf.mxu1 }
  0xf6   :  { %v6190_v15 = vadd.f32 %v1016_v31, %v6112_v30  ;;  %v6193_v16 = vadd.f32 %v1059_v32, %v6112_v30  ;;  %v1339_v31 = vmax.f32 %v6175_v61, 0.0  ;;  %v1399_v2 = vmax.f32 %v7870_v1, %v1336_v23 }
  0xf7   :  { %v1018_v33 = vpop.f32.mrf.mxu0  ;;  %v1061_v34 = vpop.f32.mrf.mxu1  ;;  %v7875_v23 = vmov 0  }
  0xf8   :  { %v1019_v53 = vadd.f32 %v1018_v33, %v6112_v30  ;;  %v6205_v9 = vadd.f32 %v1061_v34, %v6112_v30  ;;  %v1346_v25 = vmax.f32 %v6190_v15, 0.0  ;;  %v1348_v61 = vmax.f32 %v6193_v16, 0.0 }
  0xf9   :  { %v6138_v44 = vpop.f32.mrf.mxu0  ;;  %v6140_v45 = vpop.f32.mrf.mxu1 }
  0xfa   :  { %7865 = vst [vmem:[#allocation12_spill] sm:$0xff] %v6140_v45  ;;  %v1347_v3 = vmax.f32 %v1019_v53, 0.0  ;;  %v1460_v53 = vunpack.c.0.s8 %v6149_v50  ;;  %v5694_v50 = vld [vmem:[%s7850_s3 + $0x408] sm:$0xff]  }
  0xfb   :  { %v6145_v47 = vpop.f32.mrf.mxu0  ;;  %v6147_v48 = vpop.f32.mrf.mxu1 }
  0xfc   :  { %7866 = vst [vmem:[#allocation13_spill] sm:$0xff] %v6147_v48  ;;  %v6255_v1 = vsub.s32 %v1460_v53, %v6152_v4 }
  0xfd   :  { %v1102_v63 = vpop.f32.mrf.mxu0  ;;  %v1145_v5 = vpop.f32.mrf.mxu1 }
  0xff   :  { %v1104_v6 = vpop.f32.mrf.mxu0  ;;  %v1147_v54 = vpop.f32.mrf.mxu1 }
 0x100   :  { %v1148_v55 = vadd.f32 %v1147_v54, %v6112_v30  ;;  %v1338_v54 = vmax.f32 %v6168_v35, 0.0  ;;  %v1345_v35 = vmax.f32 %v976_v14, 0.0  ;;  %v6226_v14 = vadd.f32 %v1104_v6, %v6112_v30 }
 0x101   :  { %v6196_v51 = vpop.f32.mrf.mxu0  ;;  %v6198_v22 = vpop.f32.mrf.mxu1  ;;  %v7871_v6 = vmax.f32 %v6121_v38, 0.0 }
 0x102   :  { %7867 = vst [vmem:[#allocation14_spill] sm:$0xff] %v6196_v51  ;;  %7868 = vst [vmem:[#allocation15_spill] sm:$0xff] %v6198_v22  ;;  %v1353_v32 = vmax.f32 %v1148_v55, 0.0  ;;  %v6217_v55 = vadd.f32 %v1102_v63, %v6112_v30  ;;  %v5562_v63 = vld [vmem:[%s7850_s3 + $0x38] sm:$0xff]   ;;  %v1401_v19 = vmax.f32 %v7877_v18, %v1338_v54 }
 0x103   :  { %v6207_v26 = vpop.f32.mrf.mxu0  ;;  %v6209_v33 = vpop.f32.mrf.mxu1  ;;  %3650 = vmatpush1.bf16.msra.mxu0 %v5562_v63 }
 0x104   :  { %7869 = vst [vmem:[#allocation16_spill] sm:$0xff] %v6207_v26  ;;  %v6220_v26 = vadd.f32 %v1145_v5, %v6112_v30  ;;  %v1416_v15 = vmax.f32 %v1344_v49, %v1353_v32  ;;  %v1398_v32 = vmax.f32 %v7871_v6, %v1335_v28  ;;  %v7872_v49 = vlaneseq  ;;  %3651 = vmatprep.subr.bf16.mxu0 %v7875_v23  ;;  %v5563_v28 = vld [vmem:[%s7850_s3 + $0x30] sm:$0xff]  }
 0x105   :  { %v1188_v34 = vpop.f32.mrf.mxu0  ;;  %v1231_v51 = vpop.f32.mrf.mxu1 }
 0x106   :  { %v1189_v22 = vadd.f32 %v1188_v34, %v6112_v30  ;;  %v1232_v8 = vadd.f32 %v1231_v51, %v6112_v30  ;;  %vm6239_vm3 = vcmp.lt.s32.totalorder %v7872_v49, 144 }
 0x107   :  { %v1190_v16 = vpop.f32.mrf.mxu0  ;;  %v1233_v52 = vpop.f32.mrf.mxu1  ;;  %3652 = vmatpush1.bf16.msra.mxu0 %v5563_v28 }
 0x108   :  { %v1354_v5 = vmax.f32 %v1189_v22, 0.0  ;;  %v1356_v21 = vmax.f32 %v1232_v8, 0.0  ;;  %v1191_v34 = vadd.f32 %v1190_v16, %v6112_v30  ;;  %v1234_v51 = vadd.f32 %v1233_v52, %v6112_v30  ;;  %3653 = vmatprep.subr.bf16.mxu0 %v7875_v23 }
 0x109   :  { %v6243_v48 = vpop.f32.mrf.mxu0  ;;  %v6245_v45 = vpop.f32.mrf.mxu1 }
 0x10a   :  { %v1417_v8 = vmax.f32 %v1345_v35, %v1354_v5  ;;  %v1355_v36 = vmax.f32 %v1191_v34, 0.0  ;;  %v1419_v16 = vmax.f32 %v1347_v3, %v1356_v21  ;;  %v1357_v6 = vmax.f32 %v1234_v51, 0.0 }
 0x10b   :  { %v6257_v63 = vpop.f32.mrf.mxu0  ;;  %v6259_v49 = vpop.f32.mrf.mxu1  ;;  %v7876_v35 = vmax.f32 %v6124_v39, 0.0  ;;  %v1434_v34 = vmax.f32 %v1398_v32, %v1416_v15  ;;  %v7878_v3 = vmax.f32 %v6127_v40, 0.0 }
 0x10c   :  { %v6263_v52 = vmax.f32 %v1399_v2, %v1417_v8  ;;  %v1418_v22 = vmax.f32 %v1346_v25, %v1355_v36  ;;  %v6274_v2 = vmax.f32 %v1401_v19, %v1419_v16  ;;  %v1420_v39 = vmax.f32 %v1348_v61, %v1357_v6  ;;  %v5564_v19 = vld [vmem:[%s7850_s3 + $0x28] sm:$0xff]   ;;  %v5565_v61 = vld [vmem:[%s7850_s3 + $0x80] sm:$0xff]  }
 0x10d   :  { %v1400_v5 = vmax.f32 %v7876_v35, %v1337_v24  ;;  %v1274_v38 = vpop.f32.mrf.mxu0  ;;  %v1317_v20 = vpop.f32.mrf.mxu1  ;;  %v1402_v21 = vmax.f32 %v7878_v3, %v1339_v31  ;;  %3654 = vmatpush1.bf16.msra.mxu0 %v5564_v19  ;;  %v7879_v6 = vmax.f32 %v6205_v9, 0.0  ;;  %3747 = vmatpush1.bf16.msra.mxu1 %v5565_v61  ;;  %v5566_v9 = vld [vmem:[%s7850_s3 + $0x20] sm:$0xff]  }
 0x10e   :  { %v1456_v4 = vcombine.low %v1434_v34, %v6263_v52  ;;  %v1457_v53 = vcombine.high %v1434_v34, %v6263_v52  ;;  %v1275_v37 = vadd.f32 %v1274_v38, %v6112_v30  ;;  %v1318_v18 = vadd.f32 %v1317_v20, %v6112_v30  ;;  %3655 = vmatprep.subr.bf16.mxu0 %v7875_v23 }
 0x10f   :  { %v6271_v51 = vmax.f32 %v1400_v5, %v1418_v22  ;;  %v1276_v24 = vpop.f32.mrf.mxu0  ;;  %v1319_v54 = vpop.f32.mrf.mxu1  ;;  %v6294_v16 = vmax.f32 %v1402_v21, %v1420_v39  ;;  %3748 = vmatprep.subr.bf16.mxu1 %v7875_v23  ;;  %v5567_v21 = vld [vmem:[%s7850_s3 + $0x78] sm:$0xff]   ;;  %v7880_v39 = vmax.f32 %v6172_v60, 0.0 }
 0x110   :  { %v1464_v40 = vrot.slane %v1456_v4, %v6255_v1  ;;  %v1471_v25 = vrot.slane %v1457_v53, %v6255_v1  ;;  %v1277_v31 = vadd.f32 %v1276_v24, %v6112_v30  ;;  %v1320_v15 = vadd.f32 %v1319_v54, %v6112_v30 }
 0x111   :  { %v1358_v32 = vmax.f32 %v1275_v37, 0.0  ;;  %v1360_v20 = vmax.f32 %v1318_v18, 0.0  ;;  %v1856_v22 = vcombine.low %v6271_v51, %v6274_v2  ;;  %v1625_v8 = vcombine.low %v6263_v52, %v6271_v51  ;;  %3656 = vmatpush1.bf16.msra.mxu0 %v5566_v9  ;;  %3749 = vmatpush1.bf16.msra.mxu1 %v5567_v21 }
 0x112   :  { %v1472_v36 = vcombine.high %v1464_v40, %v1464_v40  ;;  %v1473_v28 = vcombine.high %v1471_v25, %v1471_v25  ;;  %v1480_v30 = vrot.slane %v1464_v40, %v6255_v1  ;;  %v1487_v38 = vrot.slane %v1471_v25, %v6255_v1  ;;  %3657 = vmatprep.subr.bf16.mxu0 %v7875_v23 }
 0x113   :  { %v1421_v35 = vmax.f32 %v7879_v6, %v1358_v32  ;;  %v1359_v5 = vmax.f32 %v1277_v31, 0.0  ;;  %v1361_v34 = vmax.f32 %v1320_v15, 0.0  ;;  %v7881_v18 = vmax.f32 %v6133_v42, 0.0  ;;  %3750 = vmatprep.subr.bf16.mxu1 %v7875_v23 }
 0x114   :  { %v1494_v3 = vrot.slane %v1472_v36, %v6255_v1  ;;  %v1501_v4 = vrot.slane %v1473_v28, %v6255_v1  ;;  %v1502_v53 = vcombine.high %v1480_v30, %v1480_v30  ;;  %v1503_v37 = vcombine.high %v1487_v38, %v1487_v38  ;;  %1576 = vst.msk [vmem:[#allocation2] ss:$8 sm:$0x3] %vm6239_vm3, %v1480_v30  ;;  %v5568_v28 = vld [vmem:[%s7850_s3 + $0x18] sm:$0xff]   ;;  %v5569_v30 = vld [vmem:[%s7850_s3 + $0x70] sm:$0xff]  }
 0x115   :  { %1588 = vst.msk [vmem:[#allocation2 + $0x40] ss:$8 sm:$0x3] %vm6239_vm3, %v1487_v38  ;;  %v1403_v24 = vmax.f32 %v7881_v18, %v7880_v39  ;;  %v7882_v54 = vmax.f32 %v6178_v62, 0.0  ;;  %v7883_v40 = vmax.f32 %v6130_v41, 0.0  ;;  %v7884_v31 = vmax.f32 %v6217_v55, 0.0  ;;  %3658 = vmatpush1.bf16.msra.mxu0 %v5568_v28  ;;  %3751 = vmatpush1.bf16.msra.mxu1 %v5569_v30 }
 0x116   :  { %v1504_v19 = vcombine.high %v1494_v3, %v1494_v3  ;;  %v1505_v61 = vcombine.high %v1501_v4, %v1501_v4  ;;  %1579 = vst.msk [vmem:[#allocation2 + $0x10] ss:$8 sm:$0x3] %vm6239_vm3, %v1494_v3  ;;  %1582 = vst.msk [vmem:[#allocation2 + $0x20] ss:$8 sm:$0x3] %vm6239_vm3, %v1502_v53  ;;  %v1864_v41 = vrot.slane %v1856_v22, %v6255_v1  ;;  %3659 = vmatprep.subr.bf16.mxu0 %v7875_v23 }
 0x117   :  { %v1404_v25 = vmax.f32 %v7883_v40, %v7882_v54  ;;  %v1422_v15 = vmax.f32 %v7884_v31, %v1359_v5  ;;  %1591 = vst.msk [vmem:[#allocation2 + $0x50] ss:$8 sm:$0x3] %vm6239_vm3, %v1501_v4  ;;  %1594 = vst.msk [vmem:[#allocation2 + $0x60] ss:$8 sm:$0x3] %vm6239_vm3, %v1503_v37  ;;  %v1633_v42 = vrot.slane %v1625_v8, %v6255_v1  ;;  %3752 = vmatprep.subr.bf16.mxu1 %v7875_v23 }
 0x118   :  { %v6332_v60 = vmax.f32 %v1403_v24, %v1421_v35  ;;  %v7885_v62 = vmax.f32 %v6220_v26, 0.0  ;;  %v2087_v32 = vcombine.low %v6274_v2, %v6294_v16  ;;  %1585 = vst.msk [vmem:[#allocation2 + $0x30] ss:$8 sm:$0x3] %vm6239_vm3, %v1504_v19  ;;  %v6345_v22 = vrot.slane %v1864_v41, %v6255_v1  ;;  %v5571_v39 = vld [vmem:[%s7850_s3 + $0x68] sm:$0xff]  }
 0x119   :  { %1597 = vst.msk [vmem:[#allocation2 + $0x70] ss:$8 sm:$0x3] %vm6239_vm3, %v1505_v61  ;;  %v6342_v36 = vmax.f32 %v1404_v25, %v1422_v15  ;;  %v6348_v8 = vrot.slane %v1633_v42, %v6255_v1  ;;  %v1641_v26 = vcombine.high %v1633_v42, %v1633_v42  ;;  %v7886_v38 = vmax.f32 %v6185_v13, 0.0  ;;  %v5572_v19 = vld [vmem:[%s7850_s3 + $0x8] sm:$0xff]   ;;  %3753 = vmatpush1.bf16.msra.mxu1 %v5571_v39  ;;  %v5573_v61 = vld [vmem:[%s7850_s3 + $0x60] sm:$0xff]  }
 0x11a   :  { %v1424_v55 = vmax.f32 %v7885_v62, %v1361_v34  ;;  %v7887_v6 = vmax.f32 %v6143_v46, 0.0  ;;  %v7888_v5 = vmax.f32 %v6226_v14, 0.0  ;;  %v2095_v3 = vrot.slane %v2087_v32, %v6255_v1  ;;  %1956 = vrot.lane.b32.xlu1 %v6345_v22, %s5709_s25  ;;  %3754 = vmatprep.subr.bf16.mxu1 %v7875_v23  ;;  %v5574_v32 = vld [vmem:[%s7850_s3] sm:$0xff]  }
 0x11b   :  { %1725 = vrot.lane.b32.xlu0 %v6348_v8, %s5710_s26  ;;  %v7889_v13 = vmax.f32 %v6181_v7, 0.0  ;;  %v7890_v46 = vmax.f32 %v6136_v43, 0.0  ;;  %v1872_v14 = vcombine.high %v1864_v41, %v1864_v41  ;;  %v6381_v9 = vrot.slane %v1641_v26, %v6255_v1  ;;  %v5570_v43 = vld [vmem:[%s7850_s3 + $0x10] sm:$0xff]  }
 0x11c   :  { %v1406_v35 = vmax.f32 %v7887_v6, %v7886_v38  ;;  %v1423_v34 = vmax.f32 %v7888_v5, %v1360_v20  ;;  %v2318_v20 = vcombine.low %v6294_v16, %v6332_v60  ;;  %v6378_v37 = vrot.slane %v2095_v3, %v6255_v1  ;;  %3660 = vmatpush1.bf16.msra.mxu0 %v5570_v43  ;;  %v5575_v6 = vld [vmem:[%s7850_s3 + $0x58] sm:$0xff]   ;;  %v5580_v43 = vld [vmem:[%s7850_s3 + $0x88] sm:$0xff]  }
 0x11d   :  { %v1405_v4 = vmax.f32 %v7890_v46, %v7889_v13  ;;  %v2103_v21 = vcombine.high %v2095_v3, %v2095_v3  ;;  %v2549_v7 = vcombine.low %v6332_v60, %v6342_v36  ;;  %v6401_v54 = vrot.slane %v1872_v14, %v6255_v1  ;;  %3661 = vmatprep.subr.bf16.mxu0 %v7875_v23  ;;  %v5576_v13 = vld [vmem:[%s7850_s3 + $0x40] sm:$0xff]   ;;  %v5577_v46 = vld [vmem:[%s7850_s3 + $0x50] sm:$0xff]  }
 0x11e   :  { %v6373_v53 = vmax.f32 %v1406_v35, %v1424_v55  ;;  %2187 = vrot.lane.b32.xlu1 %v6378_v37, %s5711_s6  ;;  %v2326_v31 = vrot.slane %v2318_v20, %v6255_v1  ;;  %3755 = vmatpush1.bf16.msra.mxu1 %v5573_v61  ;;  %v5578_v20 = vld [vmem:[%s7850_s3 + $0x48] sm:$0xff]   ;;  %v2133_v39 = vcombine.high %v6378_v37, %v6378_v37 }
 0x11f   :  { %v6391_v18 = vmax.f32 %v1405_v4, %v1423_v34  ;;  %1727 = vrot.lane.b32.xlu0 %v6381_v9, %s5710_s26  ;;  %v6405_v40 = vrot.slane %v2103_v21, %v6255_v1  ;;  %v2557_v25 = vrot.slane %v2549_v7, %v6255_v1  ;;  %3756 = vmatprep.subr.bf16.mxu1 %v7875_v23 }
 0x120   :  { %v2342_v42 = vrot.slane %v2326_v31, %v6255_v1  ;;  %3662 = vmatpush1.bf16.msra.mxu0 %v5572_v19  ;;  %v2334_v30 = vcombine.high %v2326_v31, %v2326_v31  ;;  %v1902_v21 = vcombine.high %v6345_v22, %v6345_v22  ;;  %v1671_v7 = vcombine.high %v6348_v8, %v6348_v8 }
 0x121   :  { %v3011_v24 = vcombine.low %v6391_v18, %v6373_v53  ;;  %v2780_v15 = vcombine.low %v6342_v36, %v6391_v18  ;;  %v6423_v41 = vrot.slane %v2557_v25, %v6255_v1  ;;  %v2565_v38 = vcombine.high %v2557_v25, %v2557_v25  ;;  %3663 = vmatprep.subr.bf16.mxu0 %v7875_v23 }
 0x122   :  { %1958 = vrot.lane.b32.xlu1 %v6401_v54, %s5709_s25  ;;  %v2356_v35 = vrot.slane %v2334_v30, %v6255_v1  ;;  %3757 = vmatpush1.bf16.msra.mxu1 %v5575_v6  ;;  %v1904_v22 = vcombine.high %v6401_v54, %v6401_v54  ;;  %v1673_v8 = vcombine.high %v6381_v9, %v6381_v9 }
 0x123   :  { %2189 = vrot.lane.b32.xlu0 %v6405_v40, %s5711_s6  ;;  %v3019_v62 = vrot.slane %v3011_v24, %v6255_v1  ;;  %v2788_v55 = vrot.slane %v2780_v15, %v6255_v1  ;;  %v2587_v5 = vrot.slane %v2565_v38, %v6255_v1  ;;  %3758 = vmatprep.subr.bf16.mxu1 %v7875_v23 }
 0x124   :  { %3664 = vmatpush1.bf16.msra.mxu0 %v5574_v32  ;;  %v2364_v24 = vcombine.high %v2342_v42, %v2342_v42  ;;  %v2595_v37 = vcombine.high %v6423_v41, %v6423_v41  ;;  %v2135_v25 = vcombine.high %v6405_v40, %v6405_v40  ;;  %v2366_v9 = vcombine.high %v2356_v35, %v2356_v35 }
 0x125   :  { %v3035_v26 = vrot.slane %v3019_v62, %v6255_v1  ;;  %v2804_v28 = vrot.slane %v2788_v55, %v6255_v1  ;;  %v2796_v34 = vcombine.high %v2788_v55, %v2788_v55  ;;  %v3027_v3 = vcombine.high %v3019_v62, %v3019_v62  ;;  %3679 = vmatprep.subr.bf16.mxu0 %v7875_v23  ;;  %v96_v55 = vld [vmem:[%s7849_s2 + $0x8] sm:$0xff] }
 0x126   :  { %2649 = vrot.lane.b32.xlu1 %v6423_v41, %s5712_s12  ;;  %3759 = vmatpush1.bf16.msra.mxu1 %v5577_v46  ;;  %v2597_v54 = vcombine.high %v2587_v5, %v2587_v5  ;;  %v1626_v19 = vcombine.high %v6263_v52, %v6271_v51  ;;  %v2088_v62 = vcombine.high %v6274_v2, %v6294_v16 }
 0x127   :  { %2418 = vrot.lane.b32.xlu0 %v2342_v42, %s5713_s13  ;;  %v2818_v4 = vrot.slane %v2796_v34, %v6255_v1  ;;  %v3049_v14 = vrot.slane %v3027_v3, %v6255_v1  ;;  %3760 = vmatprep.subr.bf16.mxu1 %v7875_v23  ;;  %v3057_v31 = vcombine.high %v3035_v26, %v3035_v26 }
 0x128   :  { %3680 = vmatpush2.bf16.msra.mxu0 %v5576_v13  ;;  %v2826_v15 = vcombine.high %v2804_v28, %v2804_v28  ;;  %v1640_v41 = vrot.slane %v1626_v19, %v6255_v1  ;;  %v1857_v42 = vcombine.high %v6271_v51, %v6274_v2  ;;  %v2319_v52 = vcombine.high %v6294_v16, %v6332_v60 }
 0x129   :  { %3843 = vmatprep.subr.bf16.mxu0 %v7875_v23  ;;  %v3059_v40 = vcombine.high %v3049_v14, %v3049_v14  ;;  %v2828_v61 = vcombine.high %v2818_v4, %v2818_v4  ;;  %v2102_v51 = vrot.slane %v2088_v62, %v6255_v1  ;;  %v2550_v2 = vcombine.high %v6332_v60, %v6342_v36 }
 0x12a   :  { %3111 = vrot.lane.b32.xlu1 %v3035_v26, %s5714_s16  ;;  %3761 = vmatpush1.bf16.msra.mxu1 %v5578_v20  ;;  %v1656_v32 = vrot.slane %v1640_v41, %v6255_v1  ;;  %v1871_v26 = vrot.slane %v1857_v42, %v6255_v1  ;;  %v2781_v30 = vcombine.high %v6342_v36, %v6391_v18 }
 0x12b   :  { %2880 = vrot.lane.b32.xlu0 %v2804_v28, %s5715_s17  ;;  %3776 = vmatprep.subr.bf16.mxu1 %v7875_v23  ;;  %v3012_v28 = vcombine.high %v6391_v18, %v6373_v53  ;;  %v2118_v38 = vrot.slane %v2102_v51, %v6255_v1  ;;  %v2333_v6 = vrot.slane %v2319_v52, %v6255_v1 }
 0x12c   :  { %v1887_v16 = vrot.slane %v1871_v26, %v6255_v1  ;;  %v2795_v53 = vrot.slane %v2781_v30, %v6255_v1  ;;  %v1642_v3 = vcombine.high %v1640_v41, %v1640_v41  ;;  %v1873_v13 = vcombine.high %v1871_v26, %v1871_v26 }
 0x12d   :  { %v2349_v60 = vrot.slane %v2333_v6, %v6255_v1  ;;  %v3026_v36 = vrot.slane %v3012_v28, %v6255_v1  ;;  %v2335_v20 = vcombine.high %v2333_v6, %v2333_v6 }
 0x12e   :  { %2420 = vrot.lane.b32.xlu1 %v2356_v35, %s5713_s13  ;;  %3777 = vmatpush2.bf16.msra.mxu1 %v5580_v43  ;;  %v2564_v35 = vrot.slane %v2550_v2, %v6255_v1  ;;  %v2811_v18 = vrot.slane %v2795_v53, %v6255_v1  ;;  %v1670_v46 = vrot.slane %v1642_v3, %v6255_v1 }
 0x12f   :  { %2651 = vrot.lane.b32.xlu0 %v2587_v5, %s5712_s12  ;;  %3940 = vmatprep.subr.bf16.mxu1 %v7875_v23  ;;  %v3042_v34 = vrot.slane %v3026_v36, %v6255_v1 }
 0x130   :  { %v2580_v5 = vrot.slane %v2564_v35, %v6255_v1  ;;  %v2566_v43 = vcombine.high %v2564_v35, %v2564_v35  ;;  %v2827_v19 = vcombine.high %v2811_v18, %v2811_v18 }
 0x132   :  { %2882 = vrot.lane.b32.xlu1 %v2818_v4, %s5715_s17  ;;  %v1901_v4 = vrot.slane %v1873_v13, %v6255_v1 }
 0x133   :  { %3113 = vrot.lane.b32.xlu0 %v3049_v14, %s5714_s16  ;;  %v2104_v14 = vcombine.high %v2102_v51, %v2102_v51 }
 0x134   :  { %v1905_v41 = vcombine.high %v1901_v4, %v1901_v4 }
 0x136   :  { %1729 = vrot.lane.b32.xlu1 %v1671_v7, %s5710_s26  ;;  %v2363_v7 = vrot.slane %v2335_v20, %v6255_v1 }
 0x137   :  { %1960 = vrot.lane.b32.xlu0 %v1902_v21, %s5709_s25  ;;  %v2132_v21 = vrot.slane %v2104_v14, %v6255_v1 }
 0x138   :  { %v2367_v62 = vcombine.high %v2363_v7, %v2363_v7 }
 0x139   :  { %v2136_v42 = vcombine.high %v2132_v21, %v2132_v21 }
 0x13a   :  { %2191 = vrot.lane.b32.xlu1 %v2133_v39, %s5711_s6  ;;  %v2797_v39 = vcombine.high %v2795_v53, %v2795_v53 }
 0x13b   :  { %2422 = vrot.lane.b32.xlu0 %v2364_v24, %s5713_s13  ;;  %v2594_v24 = vrot.slane %v2566_v43, %v6255_v1 }
 0x13e   :  { %1962 = vrot.lane.b32.xlu1 %v1904_v22, %s5709_s25  ;;  %v2825_v22 = vrot.slane %v2797_v39, %v6255_v1 }
 0x13f   :  { %1731 = vrot.lane.b32.xlu0 %v1673_v8, %s5710_s26  ;;  %v3028_v8 = vcombine.high %v3026_v36, %v3026_v36 }
 0x140   :  { %v2829_v52 = vcombine.high %v2825_v22, %v2825_v22 }
 0x142   :  { %2653 = vrot.lane.b32.xlu1 %v2595_v37, %s5712_s12  ;;  %v3056_v37 = vrot.slane %v3028_v8, %v6255_v1 }
 0x143   :  { %2193 = vrot.lane.b32.xlu0 %v2135_v25, %s5711_s6  ;;  %v1672_v25 = vcombine.high %v1656_v32, %v1656_v32 }
 0x146   :  { %3115 = vrot.lane.b32.xlu1 %v3057_v31, %s5714_s16  ;;  %v1903_v31 = vcombine.high %v1887_v16, %v1887_v16 }
 0x147   :  { %2884 = vrot.lane.b32.xlu0 %v2826_v15, %s5715_s17  ;;  %v2134_v15 = vcombine.high %v2118_v38, %v2118_v38 }
 0x14a   :  { %2424 = vrot.lane.b32.xlu1 %v2366_v9, %s5713_s13  ;;  %v2365_v9 = vcombine.high %v2349_v60, %v2349_v60 }
 0x14b   :  { %2655 = vrot.lane.b32.xlu0 %v2597_v54, %s5712_s12  ;;  %v2596_v54 = vcombine.high %v2580_v5, %v2580_v5 }
 0x14e   :  { %2886 = vrot.lane.b32.xlu1 %v2828_v61, %s5715_s17  ;;  %v1674_v61 = vcombine.high %v1670_v46, %v1670_v46 }
 0x14f   :  { %3117 = vrot.lane.b32.xlu0 %v3059_v40, %s5714_s16  ;;  %v3058_v40 = vcombine.high %v3042_v34, %v3042_v34 }
 0x152   :  { %104 = vperm.xlu1 %5452, %v96_v55   ;;  %v2598_v55 = vcombine.high %v2594_v24, %v2594_v24 }
 0x153   :  { %1733 = vrot.lane.b32.xlu0 %v1656_v32, %s5710_s26  ;;  %v3060_v32 = vcombine.high %v3056_v37, %v3056_v37 }
 0x156   :  { %1964 = vrot.lane.b32.xlu1 %v1887_v16, %s5709_s25 }
 0x157   :  { %2195 = vrot.lane.b32.xlu0 %v2118_v38, %s5711_s6 }
 0x15a   :  { %2426 = vrot.lane.b32.xlu1 %v2349_v60, %s5713_s13 }
 0x15b   :  { %2657 = vrot.lane.b32.xlu0 %v2580_v5, %s5712_s12 }
 0x15e   :  { %2888 = vrot.lane.b32.xlu1 %v2811_v18, %s5715_s17 }
 0x15f   :  { %3119 = vrot.lane.b32.xlu0 %v3042_v34, %s5714_s16 }
 0x162   :  { %1735 = vrot.lane.b32.xlu1 %v1670_v46, %s5710_s26 }
 0x163   :  { %1966 = vrot.lane.b32.xlu0 %v1901_v4, %s5709_s25 }
 0x166   :  { %2197 = vrot.lane.b32.xlu1 %v2132_v21, %s5711_s6 }
 0x167   :  { %2428 = vrot.lane.b32.xlu0 %v2363_v7, %s5713_s13 }
 0x16a   :  { %2659 = vrot.lane.b32.xlu1 %v2594_v24, %s5712_s12 }
 0x16b   :  { %2890 = vrot.lane.b32.xlu0 %v2825_v22, %s5715_s17 }
 0x16e   :  { %3121 = vrot.lane.b32.xlu1 %v3056_v37, %s5714_s16 }
 0x16f   :  { %1737 = vrot.lane.b32.xlu0 %v1672_v25, %s5710_s26 }
 0x172   :  { %1968 = vrot.lane.b32.xlu1 %v1903_v31, %s5709_s25 }
 0x173   :  { %2199 = vrot.lane.b32.xlu0 %v2134_v15, %s5711_s6 }
 0x176   :  { %2430 = vrot.lane.b32.xlu1 %v2365_v9, %s5713_s13 }
 0x177   :  { %2661 = vrot.lane.b32.xlu0 %v2596_v54, %s5712_s12 }
 0x17a   :  { %2892 = vrot.lane.b32.xlu1 %v2827_v19, %s5715_s17 }
 0x17b   :  { %3123 = vrot.lane.b32.xlu0 %v3058_v40, %s5714_s16 }
 0x17e   :  { %1739 = vrot.lane.b32.xlu1 %v1674_v61, %s5710_s26 }
 0x17f   :  { %1970 = vrot.lane.b32.xlu0 %v1905_v41, %s5709_s25 }
 0x182   :  { %2201 = vrot.lane.b32.xlu1 %v2136_v42, %s5711_s6 }
 0x183   :  { %2432 = vrot.lane.b32.xlu0 %v2367_v62, %s5713_s13 }
 0x186   :  { %2663 = vrot.lane.b32.xlu1 %v2598_v55, %s5712_s12 }
 0x187   :  { %2894 = vrot.lane.b32.xlu0 %v2829_v52, %s5715_s17 }
 0x18a   :  { %3125 = vrot.lane.b32.xlu1 %v3060_v32, %s5714_s16 }
 0x18c   :  { %v1957_v26 = vpop.permute.xlu1 %1956 }
 0x18d   :  { %v1726_v51 = vpop.permute.xlu0 %1725  ;;  %v1988_v2 = vrot.slane %v1957_v26, 1 }
 0x18e   :  { %v1757_v28 = vrot.slane %v1726_v51, 1 }
 0x18f   :  { %v2005_v30 = vsel %vm2004_vm4, %v1957_v26, %v1988_v2 }
 0x190   :  { %v1774_v16 = vsel %vm1773_vm5, %v1726_v51, %v1757_v28  ;;  %2038 = vst.msk [vmem:[#allocation2 + $0x2] ss:$8 sm:$0x3] %vm6239_vm3, %v2005_v30  ;;  %v2188_v38 = vpop.permute.xlu1 %2187 }
 0x191   :  { %1807 = vst.msk [vmem:[#allocation2 + $0x1] ss:$8 sm:$0x3] %vm6239_vm3, %v1774_v16  ;;  %v1728_v6 = vpop.permute.xlu0 %1727  ;;  %v2219_v35 = vrot.slane %v2188_v38, 1  ;;  %v5579_v16 = vld [vmem:[%s7850_s3 + $0xc8] sm:$0xff]  }
 0x192   :  { %v1758_v60 = vrot.slane %v1728_v6, 1 }
 0x193   :  { %v2236_v5 = vsel %vm2235_vm6, %v2188_v38, %v2219_v35 }
 0x194   :  { %v1775_v53 = vsel %vm1773_vm5, %v1728_v6, %v1758_v60  ;;  %2269 = vst.msk [vmem:[#allocation2 + $0x3] ss:$8 sm:$0x3] %vm6239_vm3, %v2236_v5  ;;  %v1959_v36 = vpop.permute.xlu1 %1958 }
 0x195   :  { %1810 = vst.msk [vmem:[#allocation2 + $0x11] ss:$8 sm:$0x3] %vm6239_vm3, %v1775_v53  ;;  %v2190_v18 = vpop.permute.xlu0 %2189  ;;  %v1989_v34 = vrot.slane %v1959_v36, 1 }
 0x196   :  { %v2220_v3 = vrot.slane %v2190_v18, 1 }
 0x197   :  { %v2006_v13 = vsel %vm2004_vm4, %v1959_v36, %v1989_v34  ;;  %v5581_v36 = vld [vmem:[%s7850_s3 + $0xc0] sm:$0xff]  }
 0x198   :  { %v2237_v46 = vsel %vm2235_vm6, %v2190_v18, %v2220_v3  ;;  %2041 = vst.msk [vmem:[#allocation2 + $0x12] ss:$8 sm:$0x3] %vm6239_vm3, %v2006_v13  ;;  %v2650_v4 = vpop.permute.xlu1 %2649 }
 0x199   :  { %2272 = vst.msk [vmem:[#allocation2 + $0x13] ss:$8 sm:$0x3] %vm6239_vm3, %v2237_v46  ;;  %v2419_v14 = vpop.permute.xlu0 %2418  ;;  %v2681_v20 = vrot.slane %v2650_v4, 1 }
 0x19a   :  { %v2450_v21 = vrot.slane %v2419_v14, 1 }
 0x19b   :  { %v2698_v7 = vsel %vm2697_vm7, %v2650_v4, %v2681_v20 }
 0x19c   :  { %v2467_v43 = vsel %vm2466_vm8, %v2419_v14, %v2450_v21  ;;  %2731 = vst.msk [vmem:[#allocation2 + $0x5] ss:$8 sm:$0x3] %vm6239_vm3, %v2698_v7  ;;  %v3112_v39 = vpop.permute.xlu1 %3111 }
 0x19d   :  { %2500 = vst.msk [vmem:[#allocation2 + $0x4] ss:$8 sm:$0x3] %vm6239_vm3, %v2467_v43  ;;  %v2881_v24 = vpop.permute.xlu0 %2880  ;;  %v3143_v22 = vrot.slane %v3112_v39, 1  ;;  %v5582_v43 = vld [vmem:[%s7850_s3 + $0xb8] sm:$0xff]  }
 0x19e   :  { %v2912_v8 = vrot.slane %v2881_v24, 1 }
 0x19f   :  { %v3160_v37 = vsel %vm3159_vm9, %v3112_v39, %v3143_v22  ;;  %v5583_v39 = vld [vmem:[%s7850_s3 + $0x110] sm:$0xff]  }
 0x1a0   :  { %v2929_v25 = vsel %vm2928_vm10, %v2881_v24, %v2912_v8  ;;  %3193 = vst.msk [vmem:[#allocation2 + $0x7] ss:$8 sm:$0x3] %vm6239_vm3, %v3160_v37  ;;  %v2421_v31 = vpop.permute.xlu1 %2420 }
 0x1a1   :  { %2962 = vst.msk [vmem:[#allocation2 + $0x6] ss:$8 sm:$0x3] %vm6239_vm3, %v2929_v25  ;;  %v2652_v15 = vpop.permute.xlu0 %2651  ;;  %v2451_v9 = vrot.slane %v2421_v31, 1 }
 0x1a2   :  { %v2682_v54 = vrot.slane %v2652_v15, 1 }
 0x1a3   :  { %v2468_v19 = vsel %vm2466_vm8, %v2421_v31, %v2451_v9  ;;  %v5585_v9 = vld [vmem:[%s7850_s3 + $0x108] sm:$0xff]  }
 0x1a4   :  { %v2699_v40 = vsel %vm2697_vm7, %v2652_v15, %v2682_v54  ;;  %2503 = vst.msk [vmem:[#allocation2 + $0x14] ss:$8 sm:$0x3] %vm6239_vm3, %v2468_v19  ;;  %v2883_v61 = vpop.permute.xlu1 %2882  ;;  %v5584_v15 = vld [vmem:[%s7850_s3 + $0xb0] sm:$0xff]  }
 0x1a5   :  { %2734 = vst.msk [vmem:[#allocation2 + $0x15] ss:$8 sm:$0x3] %vm6239_vm3, %v2699_v40  ;;  %v3114_v41 = vpop.permute.xlu0 %3113  ;;  %v2913_v42 = vrot.slane %v2883_v61, 1 }
 0x1a6   :  { %v3144_v62 = vrot.slane %v3114_v41, 1 }
 0x1a7   :  { %v2930_v55 = vsel %vm2928_vm10, %v2883_v61, %v2913_v42 }
 0x1a8   :  { %v3161_v52 = vsel %vm3159_vm9, %v3114_v41, %v3144_v62  ;;  %v3241_v32 = vld [vmem:[#allocation2 + $0x8] sm:$0xff]  ;;  %v3240_v26 = vld [vmem:[#allocation2] sm:$0xff]  ;;  %2965 = vst.msk [vmem:[#allocation2 + $0x16] ss:$8 sm:$0x3] %vm6239_vm3, %v2930_v55  ;;  %v1730_v51 = vpop.permute.xlu1 %1729 }
 0x1a9   :  { %3196 = vst.msk [vmem:[#allocation2 + $0x17] ss:$8 sm:$0x3] %vm6239_vm3, %v3161_v52  ;;  %v1961_v2 = vpop.permute.xlu0 %1960  ;;  %v3273_v28 = vpack.c.bf16 %v3241_v32, %v3241_v32  ;;  %v3272_v30 = vpack.c.bf16 %v3240_v26, %v3240_v26  ;;  %v1759_v38 = vrot.slane %v1730_v51, 1  ;;  %v5586_v62 = vld [vmem:[%s7850_s3 + $0xa8] sm:$0xff]   ;;  %v5587_v55 = vld [vmem:[%s7850_s3 + $0x100] sm:$0xff]  }
 0x1aa   :  { %v1990_v6 = vrot.slane %v1961_v2, 1 }
 0x1ab   :  { %5289 = vmatprep.mubr.msk.bf16.mxu0 %vm3159_vm9, %v3273_v28  ;;  %v1776_v35 = vsel %vm1773_vm5, %v1730_v51, %v1759_v38 }
 0x1ac   :  { %v2007_v60 = vsel %vm2004_vm4, %v1961_v2, %v1990_v6  ;;  %3682 = vmatmul.mubr.bf16.vlgmr.msra.gmra.mxu0 %v3272_v30  ;;  %1813 = vst.msk [vmem:[#allocation2 + $0x21] ss:$8 sm:$0x3] %vm6239_vm3, %v1776_v35  ;;  %v2192_v5 = vpop.permute.xlu1 %2191  ;;  %v5588_v30 = vld [vmem:[%s7850_s3 + $0xa0] sm:$0xff]  }
 0x1ad   :  { %2044 = vst.msk [vmem:[#allocation2 + $0x22] ss:$8 sm:$0x3] %vm6239_vm3, %v2007_v60  ;;  %3844 = vmatpush1.bf16.msra.mxu0 %v5579_v16  ;;  %v2423_v53 = vpop.permute.xlu0 %2422  ;;  %v2221_v18 = vrot.slane %v2192_v5, 1  ;;  %v5589_v16 = vld [vmem:[%s7850_s3 + $0xf8] sm:$0xff]  }
 0x1ae   :  { %v2452_v34 = vrot.slane %v2423_v53, 1  ;;  %3845 = vmatprep.subr.bf16.mxu0 %v7875_v23 }
 0x1af   :  { %v2238_v3 = vsel %vm2235_vm6, %v2192_v5, %v2221_v18  ;;  %v5591_v18 = vld [vmem:[%s7850_s3 + $0xf0] sm:$0xff]  }
 0x1b0   :  { %v2469_v13 = vsel %vm2466_vm8, %v2423_v53, %v2452_v34  ;;  %v3243_v46 = vld [vmem:[#allocation2 + $0x18] sm:$0xff]  ;;  %v3242_v4 = vld [vmem:[#allocation2 + $0x10] sm:$0xff]  ;;  %2275 = vst.msk [vmem:[#allocation2 + $0x23] ss:$8 sm:$0x3] %vm6239_vm3, %v2238_v3  ;;  %v1963_v14 = vpop.permute.xlu1 %1962 }
 0x1b1   :  { %2506 = vst.msk [vmem:[#allocation2 + $0x24] ss:$8 sm:$0x3] %vm6239_vm3, %v2469_v13  ;;  %3846 = vmatpush1.bf16.msra.mxu0 %v5581_v36  ;;  %v1732_v20 = vpop.permute.xlu0 %1731  ;;  %v3275_v21 = vpack.c.bf16 %v3243_v46, %v3243_v46  ;;  %v3274_v7 = vpack.c.bf16 %v3242_v4, %v3242_v4  ;;  %v1991_v24 = vrot.slane %v1963_v14, 1  ;;  %v5590_v36 = vld [vmem:[%s7850_s3 + $0x98] sm:$0xff]  }
 0x1b2   :  { %v1760_v22 = vrot.slane %v1732_v20, 1  ;;  %3847 = vmatprep.subr.bf16.mxu0 %v7875_v23 }
 0x1b3   :  { %5299 = vmatprep.mubr.msk.bf16.mxu1 %vm3159_vm9, %v3275_v21  ;;  %v2008_v8 = vsel %vm2004_vm4, %v1963_v14, %v1991_v24  ;;  %v5592_v21 = vld [vmem:[%s7850_s3 + $0x90] sm:$0xff]  }
 0x1b4   :  { %v1777_v37 = vsel %vm1773_vm5, %v1732_v20, %v1760_v22  ;;  %3779 = vmatmul.mubr.bf16.vlgmr.msra.gmra.mxu1 %v3274_v7  ;;  %2047 = vst.msk [vmem:[#allocation2 + $0x32] ss:$8 sm:$0x3] %vm6239_vm3, %v2008_v8  ;;  %v2654_v25 = vpop.permute.xlu1 %2653  ;;  %v5593_v7 = vld [vmem:[%s7850_s3 + $0xe8] sm:$0xff]   ;;  %v5594_v22 = vld [vmem:[%s7850_s3 + $0xd0] sm:$0xff]   ;;  %v5595_v8 = vld [vmem:[%s7850_s3 + $0xe0] sm:$0xff]  }
 0x1b5   :  { %1816 = vst.msk [vmem:[#allocation2 + $0x31] ss:$8 sm:$0x3] %vm6239_vm3, %v1777_v37  ;;  %3848 = vmatpush1.bf16.msra.mxu0 %v5582_v43  ;;  %3941 = vmatpush1.bf16.msra.mxu1 %v5583_v39  ;;  %v2194_v31 = vpop.permute.xlu0 %2193  ;;  %v2683_v54 = vrot.slane %v2654_v25, 1 }
 0x1b6   :  { %v2222_v19 = vrot.slane %v2194_v31, 1  ;;  %3849 = vmatprep.subr.bf16.mxu0 %v7875_v23  ;;  %3942 = vmatprep.subr.bf16.mxu1 %v7875_v23 }
 0x1b7   :  { %v2700_v40 = vsel %vm2697_vm7, %v2654_v25, %v2683_v54 }
 0x1b8   :  { %v2239_v61 = vsel %vm2235_vm6, %v2194_v31, %v2222_v19  ;;  %2737 = vst.msk [vmem:[#allocation2 + $0x25] ss:$8 sm:$0x3] %vm6239_vm3, %v2700_v40  ;;  %v3116_v41 = vpop.permute.xlu1 %3115  ;;  %v5596_v40 = vld [vmem:[%s7850_s3 + $0xd8] sm:$0xff]  }
 0x1b9   :  { %2278 = vst.msk [vmem:[#allocation2 + $0x33] ss:$8 sm:$0x3] %vm6239_vm3, %v2239_v61  ;;  %3850 = vmatpush1.bf16.msra.mxu0 %v5584_v15  ;;  %3943 = vmatpush1.bf16.msra.mxu1 %v5585_v9  ;;  %v2885_v42 = vpop.permute.xlu0 %2884  ;;  %v3145_v52 = vrot.slane %v3116_v41, 1  ;;  %v5597_v61 = vld [vmem:[%s7850_s3 + $0x158] sm:$0xff]  }
 0x1ba   :  { %v2914_v32 = vrot.slane %v2885_v42, 1  ;;  %3851 = vmatprep.subr.bf16.mxu0 %v7875_v23  ;;  %3944 = vmatprep.subr.bf16.mxu1 %v7875_v23 }
 0x1bb   :  { %v3162_v26 = vsel %vm3159_vm9, %v3116_v41, %v3145_v52 }
 0x1bc   :  { %v2931_v51 = vsel %vm2928_vm10, %v2885_v42, %v2914_v32  ;;  %3199 = vst.msk [vmem:[#allocation2 + $0x27] ss:$8 sm:$0x3] %vm6239_vm3, %v3162_v26  ;;  %v2425_v2 = vpop.permute.xlu1 %2424 }
 0x1bd   :  { %2968 = vst.msk [vmem:[#allocation2 + $0x26] ss:$8 sm:$0x3] %vm6239_vm3, %v2931_v51  ;;  %3852 = vmatpush1.bf16.msra.mxu0 %v5586_v62  ;;  %3945 = vmatpush1.bf16.msra.mxu1 %v5587_v55  ;;  %v2656_v28 = vpop.permute.xlu0 %2655  ;;  %v2453_v38 = vrot.slane %v2425_v2, 1 }
 0x1be   :  { %v2684_v6 = vrot.slane %v2656_v28, 1  ;;  %3853 = vmatprep.subr.bf16.mxu0 %v7875_v23  ;;  %3946 = vmatprep.subr.bf16.mxu1 %v7875_v23 }
 0x1bf   :  { %v2470_v35 = vsel %vm2466_vm8, %v2425_v2, %v2453_v38 }
 0x1c0   :  { %v2701_v60 = vsel %vm2697_vm7, %v2656_v28, %v2684_v6  ;;  %2509 = vst.msk [vmem:[#allocation2 + $0x34] ss:$8 sm:$0x3] %vm6239_vm3, %v2470_v35  ;;  %v2887_v5 = vpop.permute.xlu1 %2886 }
 0x1c1   :  { %2740 = vst.msk [vmem:[#allocation2 + $0x35] ss:$8 sm:$0x3] %vm6239_vm3, %v2701_v60  ;;  %3854 = vmatpush1.bf16.msra.mxu0 %v5588_v30  ;;  %3947 = vmatpush1.bf16.msra.mxu1 %v5589_v16  ;;  %v3118_v53 = vpop.permute.xlu0 %3117  ;;  %v2915_v34 = vrot.slane %v2887_v5, 1 }
 0x1c2   :  { %v3146_v3 = vrot.slane %v3118_v53, 1  ;;  %3855 = vmatprep.subr.bf16.mxu0 %v7875_v23  ;;  %3948 = vmatprep.subr.bf16.mxu1 %v7875_v23 }
 0x1c3   :  { %v2932_v13 = vsel %vm2928_vm10, %v2887_v5, %v2915_v34 }
 0x1c4   :  { %v3163_v46 = vsel %vm3159_vm9, %v3118_v53, %v3146_v3  ;;  %v3245_v4 = vld [vmem:[#allocation2 + $0x28] sm:$0xff]  ;;  %2971 = vst.msk [vmem:[#allocation2 + $0x36] ss:$8 sm:$0x3] %vm6239_vm3, %v2932_v13  ;;  %v3244_v25 = vld [vmem:[#allocation2 + $0x20] sm:$0xff] }
 0x1c5   :  { %3202 = vst.msk [vmem:[#allocation2 + $0x37] ss:$8 sm:$0x3] %vm6239_vm3, %v3163_v46  ;;  %3856 = vmatpush1.bf16.msra.mxu0 %v5590_v36  ;;  %3949 = vmatpush1.bf16.msra.mxu1 %v5591_v18  ;;  %v1734_v14 = vpop.permute.xlu0 %1733  ;;  %v3277_v20 = vpack.c.bf16 %v3245_v4, %v3245_v4  ;;  %v3276_v62 = vpack.c.bf16 %v3244_v25, %v3244_v25 }
 0x1c6   :  { %v1761_v43 = vrot.slane %v1734_v14, 1  ;;  %3857 = vmatprep.subr.bf16.mxu0 %v7875_v23  ;;  %3950 = vmatprep.subr.bf16.mxu1 %v7875_v23 }
 0x1c7   :  { %5309 = vmatprep.mubr.msk.bf16.mxu0 %vm3159_vm9, %v3277_v20  ;;  %v5600_v20 = vld [vmem:[%s7850_s3 + $0x148] sm:$0xff]  }
 0x1c8   :  { %v1778_v39 = vsel %vm1773_vm5, %v1734_v14, %v1761_v43 }
 0x1c9   :  { %1819 = vst.msk [vmem:[#allocation2 + $0x41] ss:$8 sm:$0x3] %vm6239_vm3, %v1778_v39  ;;  %3858 = vmatpush1.bf16.msra.mxu0 %v5592_v21  ;;  %3951 = vmatpush1.bf16.msra.mxu1 %v5593_v7  ;;  %v2196_v24 = vpop.permute.xlu0 %2195  ;;  %v5601_v21 = vld [vmem:[%s7850_s3 + $0x1a0] sm:$0xff]  }
 0x1ca   :  { %v2223_v37 = vrot.slane %v2196_v24, 1  ;;  %3873 = vmatprep.subr.bf16.mxu0 %v7875_v23  ;;  %3952 = vmatprep.subr.bf16.mxu1 %v7875_v23 }
 0x1cc   :  { %v2240_v31 = vsel %vm2235_vm6, %v2196_v24, %v2223_v37  ;;  %v3247_v15 = vld [vmem:[#allocation2 + $0x38] sm:$0xff]  ;;  %v6717_v9 = vld [vmem:[#allocation2 + $0x30] sm:$0xff] }
 0x1cd   :  { %2281 = vst.msk [vmem:[#allocation2 + $0x43] ss:$8 sm:$0x3] %vm6239_vm3, %v2240_v31  ;;  %3874 = vmatpush2.bf16.msra.mxu0 %v5594_v22  ;;  %3953 = vmatpush1.bf16.msra.mxu1 %v5595_v8  ;;  %v2658_v54 = vpop.permute.xlu0 %2657  ;;  %v3279_v19 = vpack.c.bf16 %v3247_v15, %v3247_v15  ;;  %v6727_v42 = vpop.permute.xlu1 %104  ;;  %v3278_v55 = vpack.c.bf16 %v6717_v9, %v6717_v9 }
 0x1ce   :  { %v2685_v41 = vrot.slane %v2658_v54, 1  ;;  %3954 = vmatprep.subr.bf16.mxu1 %v7875_v23  ;;  %4037 = vmatprep.subr.bf16.mxu0 %v7875_v23  ;;  %v634_v52 = vadd.f32 %v6074_v57, %v6727_v42  ;;  %v636_v32 = vadd.f32 %v6078_v59, %v6727_v42  ;;  %v808_v26 = vadd.f32 %v6094_v12, %v6727_v42  ;;  %v5598_v12 = vld [vmem:[%s7850_s3 + $0x118] sm:$0xff]  }
 0x1cf   :  { %5319 = vmatprep.mubr.msk.bf16.mxu1 %vm3159_vm9, %v3279_v19  ;;  %v849_v51 = vadd.f32 %v6096_v17, %v6727_v42  ;;  %v1021_v28 = vadd.f32 %v6138_v44, %v6727_v42  ;;  %v1023_v30 = vadd.f32 %v6145_v47, %v6727_v42  ;;  %v1195_v57 = vadd.f32 %v6257_v63, %v6727_v42  ;;  %v5599_v17 = vld [vmem:[%s7850_s3 + $0x150] sm:$0xff]  }
 0x1d0   :  { %v2702_v2 = vsel %vm2697_vm7, %v2658_v54, %v2685_v41  ;;  %3876 = vmatmul.mubr.bf16.vlgmr.msra.gmra.mxu0 %v3276_v62  ;;  %v1236_v44 = vadd.f32 %v6245_v45, %v6727_v42  ;;  %v1364_v47 = vmax.f32 %v634_v52, 0.0  ;;  %v1365_v16 = vmax.f32 %v636_v32, 0.0 }
 0x1d1   :  { %2743 = vst.msk [vmem:[#allocation2 + $0x45] ss:$8 sm:$0x3] %vm6239_vm3, %v2702_v2  ;;  %3955 = vmatpush1.bf16.msra.mxu1 %v5596_v40  ;;  %4038 = vmatpush1.bf16.msra.mxu0 %v5597_v61  ;;  %v3120_v59 = vpop.permute.xlu0 %3119  ;;  %v1373_v63 = vmax.f32 %v808_v26, 0.0  ;;  %v1965_v6 = vpop.permute.xlu1 %1964  ;;  %v1374_v35 = vmax.f32 %v849_v51, 0.0  ;;  %v1382_v60 = vmax.f32 %v1021_v28, 0.0  ;;  %v591_v45 = vadd.f32 %v6072_v56, %v6727_v42 }
 0x1d2   :  { %v3147_v38 = vrot.slane %v3120_v59, 1  ;;  %3970 = vmatprep.subr.bf16.mxu1 %v7875_v23  ;;  %4039 = vmatprep.subr.bf16.mxu0 %v7875_v23  ;;  %v1383_v5 = vmax.f32 %v1023_v30, 0.0  ;;  %v1992_v53 = vrot.slane %v1965_v6, 1  ;;  %v1391_v36 = vmax.f32 %v1195_v57, 0.0 }
 0x1d3   :  { %v1392_v18 = vmax.f32 %v1236_v44, 0.0  ;;  %v1409_v34 = vmax.f32 %v1364_v47, %v1373_v63  ;;  %v1410_v13 = vmax.f32 %v1365_v16, %v1374_v35  ;;  %v593_v46 = vadd.f32 %v6076_v58, %v6727_v42  ;;  %v5604_v16 = vld [vmem:[%s7850_s3 + $0x138] sm:$0xff]   ;;  %v7891_v35 = vld [vmem:[#allocation4_spill] sm:$0xff] }
 0x1d4   :  { %v3164_v3 = vsel %vm3159_vm9, %v3120_v59, %v3147_v38  ;;  %v2009_v4 = vsel %vm2004_vm4, %v1965_v6, %v1992_v53  ;;  %v1427_v56 = vmax.f32 %v1382_v60, %v1391_v36  ;;  %v765_v39 = vadd.f32 %v6092_v11, %v6727_v42 }
 0x1d5   :  { %3205 = vst.msk [vmem:[#allocation2 + $0x47] ss:$8 sm:$0x3] %vm6239_vm3, %v3164_v3  ;;  %3971 = vmatpush2.bf16.msra.mxu1 %v5598_v12  ;;  %4040 = vmatpush1.bf16.msra.mxu0 %v5599_v17  ;;  %v1967_v14 = vpop.permute.xlu0 %1966  ;;  %v1428_v7 = vmax.f32 %v1383_v5, %v1392_v18  ;;  %2050 = vst.msk [vmem:[#allocation2 + $0x42] ss:$8 sm:$0x3] %vm6239_vm3, %v2009_v4  ;;  %v2427_v43 = vpop.permute.xlu1 %2426  ;;  %v806_v24 = vadd.f32 %v6090_v10, %v6727_v42 }
 0x1d6   :  { %v1993_v58 = vrot.slane %v1967_v14, 1  ;;  %4041 = vmatprep.subr.bf16.mxu0 %v7875_v23  ;;  %4134 = vmatprep.subr.bf16.mxu1 %v7875_v23  ;;  %v978_v22 = vadd.f32 %v6106_v27, %v6727_v42  ;;  %v2454_v8 = vrot.slane %v2427_v43, 1  ;;  %v6785_v37 = vmax.f32 %v1409_v34, %v1427_v56  ;;  %v7892_v5 = vld [vmem:[#allocation8_spill] sm:$0xff]  ;;  %v7893_v34 = vld [vmem:[#allocation7_spill] sm:$0xff] }
 0x1d7   :  { %v6787_v25 = vmax.f32 %v1410_v13, %v1428_v7  ;;  %v980_v31 = vadd.f32 %v6110_v29, %v6727_v42  ;;  %v1152_v11 = vadd.f32 %v6209_v33, %v6727_v42  ;;  %v1193_v10 = vadd.f32 %v6243_v48, %v6727_v42  ;;  %v5602_v29 = vld [vmem:[%s7850_s3 + $0x140] sm:$0xff]   ;;  %v5603_v33 = vld [vmem:[%s7850_s3 + $0x198] sm:$0xff]   ;;  %v7894_v13 = vld [vmem:[#allocation12_spill] sm:$0xff] }
 0x1d8   :  { %v2010_v15 = vsel %vm2004_vm4, %v1967_v14, %v1993_v58  ;;  %3973 = vmatmul.mubr.bf16.vlgmr.msra.gmra.mxu1 %v3278_v55  ;;  %v1362_v9 = vmax.f32 %v591_v45, 0.0  ;;  %v2471_v27 = vsel %vm2466_vm8, %v2427_v43, %v2454_v8  ;;  %v1363_v19 = vmax.f32 %v593_v46, 0.0  ;;  %v1278_v46 = vpop.f32.mrf.mxu0 }
 0x1d9   :  { %2053 = vst.msk [vmem:[#allocation2 + $0x52] ss:$8 sm:$0x3] %vm6239_vm3, %v2010_v15  ;;  %4042 = vmatpush1.bf16.msra.mxu0 %v5600_v20  ;;  %4135 = vmatpush1.bf16.msra.mxu1 %v5601_v21  ;;  %v2429_v54 = vpop.permute.xlu0 %2428  ;;  %v1906_v48 = vcombine.low %v6785_v37, %v6787_v25  ;;  %v1371_v40 = vmax.f32 %v765_v39, 0.0  ;;  %v2889_v41 = vpop.permute.xlu1 %2888  ;;  %v1372_v62 = vmax.f32 %v806_v24, 0.0  ;;  %v1380_v55 = vmax.f32 %v978_v22, 0.0 }
 0x1da   :  { %2512 = vst.msk [vmem:[#allocation2 + $0x44] ss:$8 sm:$0x3] %vm6239_vm3, %v2471_v27  ;;  %v2455_v61 = vrot.slane %v2429_v54, 1  ;;  %4043 = vmatprep.subr.bf16.mxu0 %v7875_v23  ;;  %4136 = vmatprep.subr.bf16.mxu1 %v7875_v23  ;;  %v1381_v52 = vmax.f32 %v980_v31, 0.0  ;;  %v2916_v32 = vrot.slane %v2889_v41, 1  ;;  %v677_v59 = vadd.f32 %v6080_v0, %v6727_v42 }
 0x1db   :  { %v6812_v26 = vrot.slane %v1906_v48, %v6255_v1  ;;  %v1389_v51 = vmax.f32 %v1152_v11, 0.0  ;;  %v1390_v2 = vmax.f32 %v1193_v10, 0.0  ;;  %v1407_v30 = vmax.f32 %v1362_v9, %v1371_v40  ;;  %v5605_v0 = vld [vmem:[%s7850_s3 + $0x190] sm:$0xff]  }
 0x1dc   :  { %v2472_v28 = vsel %vm2466_vm8, %v2429_v54, %v2455_v61  ;;  %v1408_v57 = vmax.f32 %v1363_v19, %v1372_v62  ;;  %v2933_v12 = vsel %vm2928_vm10, %v2889_v41, %v2916_v32  ;;  %v679_v60 = vadd.f32 %v7891_v35, %v6727_v42  ;;  %v7895_v20 = vld [vmem:[#allocation13_spill] sm:$0xff]  ;;  %v5608_v32 = vld [vmem:[%s7850_s3 + $0x128] sm:$0xff]  }
 0x1dd   :  { %2515 = vst.msk [vmem:[#allocation2 + $0x54] ss:$8 sm:$0x3] %vm6239_vm3, %v2472_v28  ;;  %4044 = vmatpush1.bf16.msra.mxu0 %v5602_v29  ;;  %4137 = vmatpush1.bf16.msra.mxu1 %v5603_v33  ;;  %v6822_v17 = vrot.slane %v6812_v26, %v6255_v1  ;;  %v1425_v44 = vmax.f32 %v1380_v55, %v1389_v51  ;;  %v2891_v47 = vpop.permute.xlu0 %2890  ;;  %2974 = vst.msk [vmem:[#allocation2 + $0x46] ss:$8 sm:$0x3] %vm6239_vm3, %v2933_v12  ;;  %v1736_v6 = vpop.permute.xlu1 %1735 }
 0x1de   :  { %v1426_v63 = vmax.f32 %v1381_v52, %v1390_v2  ;;  %v2917_v38 = vrot.slane %v2891_v47, 1  ;;  %4045 = vmatprep.subr.bf16.mxu0 %v7875_v23  ;;  %4138 = vmatprep.subr.bf16.mxu1 %v7875_v23  ;;  %v851_v53 = vadd.f32 %v7892_v5, %v6727_v42  ;;  %v1762_v18 = vrot.slane %v1736_v6, 1  ;;  %v5606_v22 = vld [vmem:[%s7850_s3 + $0x130] sm:$0xff]  }
 0x1df   :  { %1972 = vrot.lane.b32.xlu1 %v6822_v17, %s5709_s25  ;;  %v1443_v36 = vmax.f32 %v1407_v30, %v1425_v44  ;;  %v892_v3 = vadd.f32 %v7893_v34, %v6727_v42  ;;  %v1064_v45 = vadd.f32 %v7894_v13, %v6727_v42  ;;  %v1066_v21 = vadd.f32 %v7895_v20, %v6727_v42  ;;  %v5610_v34 = vld [vmem:[%s7850_s3 + $0x120] sm:$0xff]  }
 0x1e0   :  { %v6844_v4 = vmax.f32 %v1408_v57, %v1426_v63  ;;  %v2934_v14 = vsel %vm2928_vm10, %v2891_v47, %v2917_v38  ;;  %v1238_v56 = vadd.f32 %v6259_v49, %v6727_v42  ;;  %v1779_v7 = vsel %vm1773_vm5, %v1736_v6, %v1762_v18  ;;  %v5607_v49 = vld [vmem:[%s7850_s3 + $0x188] sm:$0xff]  }
 0x1e1   :  { %2977 = vst.msk [vmem:[#allocation2 + $0x56] ss:$8 sm:$0x3] %vm6239_vm3, %v2934_v14  ;;  %4046 = vmatpush1.bf16.msra.mxu0 %v5604_v16  ;;  %4139 = vmatpush1.bf16.msra.mxu1 %v5605_v0  ;;  %v1279_v58 = vadd.f32 %v1278_v46, %v6727_v42  ;;  %v1366_v43 = vmax.f32 %v677_v59, 0.0  ;;  %v1367_v39 = vmax.f32 %v679_v60, 0.0  ;;  %v1738_v24 = vpop.permute.xlu0 %1737  ;;  %v1375_v11 = vmax.f32 %v851_v53, 0.0  ;;  %v2198_v10 = vpop.permute.xlu1 %2197 }
 0x1e2   :  { %v1506_v8 = vcombine.low %v1443_v36, %v6844_v4  ;;  %v1507_v31 = vcombine.high %v1443_v36, %v6844_v4  ;;  %v1675_v15 = vcombine.low %v6844_v4, %v6785_v37  ;;  %1822 = vst.msk [vmem:[#allocation2 + $0x51] ss:$8 sm:$0x3] %vm6239_vm3, %v1779_v7  ;;  %4047 = vmatprep.subr.bf16.mxu0 %v7875_v23  ;;  %v1376_v9 = vmax.f32 %v892_v3, 0.0  ;;  %v5609_v59 = vld [vmem:[%s7850_s3 + $0x180] sm:$0xff]   ;;  %v5611_v7 = vld [vmem:[%s7850_s3 + $0x178] sm:$0xff]  }
 0x1e3   :  { %4140 = vmatprep.subr.bf16.mxu1 %v7875_v23  ;;  %v1384_v27 = vmax.f32 %v1064_v45, 0.0  ;;  %v1385_v54 = vmax.f32 %v1066_v21, 0.0  ;;  %v1393_v29 = vmax.f32 %v1238_v56, 0.0  ;;  %v1394_v40 = vmax.f32 %v1279_v58, 0.0 }
 0x1e4   :  { %v1514_v33 = vrot.slane %v1506_v8, %v6255_v1  ;;  %v1521_v48 = vrot.slane %v1507_v31, %v6255_v1  ;;  %v1683_v19 = vrot.slane %v1675_v15, %v6255_v1  ;;  %v1411_v61 = vmax.f32 %v1366_v43, %v1375_v11  ;;  %v3249_v36 = vld [vmem:[#allocation2 + $0x48] sm:$0xff]  ;;  %v7896_v31 = vld [vmem:[#allocation3_spill] sm:$0xff] }
 0x1e5   :  { %v1412_v41 = vmax.f32 %v1367_v39, %v1376_v9  ;;  %v1429_v62 = vmax.f32 %v1384_v27, %v1393_v29  ;;  %v1763_v55 = vrot.slane %v1738_v24, 1  ;;  %4048 = vmatpush1.bf16.msra.mxu0 %v5606_v22  ;;  %4141 = vmatpush1.bf16.msra.mxu1 %v5607_v49  ;;  %v2200_v52 = vpop.permute.xlu0 %2199  ;;  %v2660_v57 = vpop.permute.xlu1 %2659  ;;  %v1430_v44 = vmax.f32 %v1385_v54, %v1394_v40  ;;  %v7897_v9 = vld [vmem:[#allocation9_spill] sm:$0xff]  ;;  %v7898_v54 = vld [vmem:[#allocation14_spill] sm:$0xff] }
 0x1e6   :  { %v1522_v51 = vcombine.high %v1514_v33, %v1514_v33  ;;  %v1523_v2 = vcombine.high %v1521_v48, %v1521_v48  ;;  %v1530_v28 = vrot.slane %v1514_v33, %v6255_v1  ;;  %v1537_v30 = vrot.slane %v1521_v48, %v6255_v1  ;;  %4049 = vmatprep.subr.bf16.mxu0 %v7875_v23 }
 0x1e7   :  { %v6882_v12 = vrot.slane %v1683_v19, %v6255_v1  ;;  %v6884_v47 = vmax.f32 %v1411_v61, %v1429_v62  ;;  %v1780_v16 = vsel %vm1773_vm5, %v1738_v24, %v1763_v55  ;;  %4142 = vmatprep.subr.bf16.mxu1 %v7875_v23  ;;  %v6898_v35 = vmax.f32 %v1412_v41, %v1430_v44  ;;  %v1280_v24 = vpop.f32.mrf.mxu0  ;;  %v5613_v55 = vld [vmem:[%s7850_s3 + $0x170] sm:$0xff]   ;;  %v7900_v44 = vld [vmem:[#allocation10_spill] sm:$0xff] }
 0x1e8   :  { %v1544_v0 = vrot.slane %v1522_v51, %v6255_v1  ;;  %v1551_v63 = vrot.slane %v1523_v2, %v6255_v1  ;;  %v1552_v38 = vcombine.high %v1530_v28, %v1530_v28  ;;  %v1553_v6 = vcombine.high %v1537_v30, %v1537_v30  ;;  %1600 = vst.msk [vmem:[#allocation2 + $0x80] ss:$8 sm:$0x3] %vm6239_vm3, %v1530_v28 }
 0x1e9   :  { %1612 = vst.msk [vmem:[#allocation2 + $0xc0] ss:$8 sm:$0x3] %vm6239_vm3, %v1537_v30  ;;  %1825 = vst.msk [vmem:[#allocation2 + $0x61] ss:$8 sm:$0x3] %vm6239_vm3, %v1780_v16  ;;  %1741 = vrot.lane.b32.xlu0 %v6882_v12, %s5710_s26  ;;  %v2137_v60 = vcombine.low %v6787_v25, %v6884_v47  ;;  %v1691_v53 = vcombine.high %v1683_v19, %v1683_v19  ;;  %4050 = vmatpush1.bf16.msra.mxu0 %v5608_v32  ;;  %v2662_v18 = vpop.permute.xlu0 %2661  ;;  %v3122_v14 = vpop.permute.xlu1 %3121 }
 0x1ea   :  { %v2224_v5 = vrot.slane %v2198_v10, 1  ;;  %v1554_v3 = vcombine.high %v1544_v0, %v1544_v0  ;;  %v1555_v13 = vcombine.high %v1551_v63, %v1551_v63  ;;  %1603 = vst.msk [vmem:[#allocation2 + $0x90] ss:$8 sm:$0x3] %vm6239_vm3, %v1544_v0  ;;  %v1922_v45 = vcombine.high %v6812_v26, %v6812_v26  ;;  %4143 = vmatpush1.bf16.msra.mxu1 %v5609_v59  ;;  %v5612_v19 = vld [vmem:[%s7850_s3 + $0x160] sm:$0xff]   ;;  %v7901_v0 = vld [vmem:[#allocation16_spill] sm:$0xff] }
 0x1eb   :  { %1606 = vst.msk [vmem:[#allocation2 + $0xa0] ss:$8 sm:$0x3] %vm6239_vm3, %v1552_v38  ;;  %1615 = vst.msk [vmem:[#allocation2 + $0xd0] ss:$8 sm:$0x3] %vm6239_vm3, %v1551_v63  ;;  %4051 = vmatprep.subr.bf16.mxu0 %v7875_v23  ;;  %v2368_v20 = vcombine.low %v6884_v47, %v6898_v35  ;;  %v6919_v21 = vrot.slane %v2137_v60, %v6255_v1  ;;  %4144 = vmatprep.subr.bf16.mxu1 %v7875_v23 }
 0x1ec   :  { %1618 = vst.msk [vmem:[#allocation2 + $0xe0] ss:$8 sm:$0x3] %vm6239_vm3, %v1553_v6  ;;  %v2225_v46 = vrot.slane %v2200_v52, 1  ;;  %v2241_v56 = vsel %vm2235_vm6, %v2198_v10, %v2224_v5  ;;  %v6933_v26 = vrot.slane %v1691_v53, %v6255_v1  ;;  %v2686_v43 = vrot.slane %v2660_v57, 1 }
 0x1ed   :  { %1609 = vst.msk [vmem:[#allocation2 + $0xb0] ss:$8 sm:$0x3] %vm6239_vm3, %v1554_v3  ;;  %1621 = vst.msk [vmem:[#allocation2 + $0xf0] ss:$8 sm:$0x3] %vm6239_vm3, %v1555_v13  ;;  %v3281_v39 = vpack.c.bf16 %v3249_v36, %v3249_v36  ;;  %v6937_v22 = vrot.slane %v2368_v20, %v6255_v1  ;;  %v6941_v49 = vrot.slane %v6919_v21, %v6255_v1  ;;  %4052 = vmatpush1.bf16.msra.mxu0 %v5610_v34  ;;  %v6950_v11 = vpop.permute.xlu0 %3123  ;;  %v6959_v48 = vpop.permute.xlu1 %1968 }
 0x1ee   :  { %2284 = vst.msk [vmem:[#allocation2 + $0x53] ss:$8 sm:$0x3] %vm6239_vm3, %v2241_v56  ;;  %v2242_v58 = vsel %vm2235_vm6, %v2200_v52, %v2225_v46  ;;  %v6944_v8 = vrot.slane %v1922_v45, %v6255_v1  ;;  %v720_v15 = vadd.f32 %v7896_v31, %v6727_v42  ;;  %v2703_v10 = vsel %vm2697_vm7, %v2660_v57, %v2686_v43  ;;  %v1321_v52 = vpop.f32.mrf.mxu1  ;;  %v7899_v57 = vld [vmem:[#allocation5_spill] sm:$0xff]  ;;  %v7902_v13 = vld [vmem:[#allocation6_spill] sm:$0xff]  ;;  %v5614_v46 = vld [vmem:[%s7850_s3 + $0x168] sm:$0xff]  }
 0x1ef   :  { %2287 = vst.msk [vmem:[#allocation2 + $0x63] ss:$8 sm:$0x3] %vm6239_vm3, %v2242_v58  ;;  %5329 = vmatprep.mubr.msk.bf16.mxu0 %vm3159_vm9, %v3281_v39  ;;  %v894_v27 = vadd.f32 %v7897_v9, %v6727_v42  ;;  %v1107_v29 = vadd.f32 %v7898_v54, %v6727_v42  ;;  %v1281_v33 = vadd.f32 %v1280_v24, %v6727_v42  ;;  %2746 = vst.msk [vmem:[#allocation2 + $0x55] ss:$8 sm:$0x3] %vm6239_vm3, %v2703_v10 }
 0x1f0   :  { %v6966_v40 = vrot.slane %v6937_v22, %v6255_v1  ;;  %2203 = vrot.lane.b32.xlu0 %v6941_v49, %s5711_s6  ;;  %v2153_v61 = vcombine.high %v6919_v21, %v6919_v21  ;;  %v1368_v41 = vmax.f32 %v720_v15, 0.0  ;;  %v2687_v62 = vrot.slane %v2662_v18, 1  ;;  %4145 = vmatpush1.bf16.msra.mxu1 %v5611_v7  ;;  %v7903_v56 = vld [vmem:[#allocation11_spill] sm:$0xff] }
 0x1f1   :  { %v1377_v32 = vmax.f32 %v894_v27, 0.0  ;;  %v1386_v51 = vmax.f32 %v1107_v29, 0.0  ;;  %v1395_v2 = vmax.f32 %v1281_v33, 0.0  ;;  %v3148_v28 = vrot.slane %v3122_v14, 1  ;;  %4067 = vmatprep.subr.bf16.mxu0 %v7875_v23  ;;  %4146 = vmatprep.subr.bf16.mxu1 %v7875_v23  ;;  %v1971_v38 = vpop.permute.xlu0 %1970  ;;  %v2431_v36 = vpop.permute.xlu1 %2430  ;;  %v7904_v58 = vld [vmem:[#allocation15_spill] sm:$0xff] }
 0x1f2   :  { %2434 = vrot.lane.b32.xlu1 %v6966_v40, %s5713_s13  ;;  %v2704_v30 = vsel %vm2697_vm7, %v2662_v18, %v2687_v62  ;;  %v722_v59 = vadd.f32 %v7899_v57, %v6727_v42  ;;  %v935_v16 = vadd.f32 %v7900_v44, %v6727_v42  ;;  %v1109_v63 = vadd.f32 %v7901_v0, %v6727_v42 }
 0x1f3   :  { %v1413_v6 = vmax.f32 %v1368_v41, %v1377_v32  ;;  %v1431_v60 = vmax.f32 %v1386_v51, %v1395_v2  ;;  %2749 = vst.msk [vmem:[#allocation2 + $0x65] ss:$8 sm:$0x3] %vm6239_vm3, %v2704_v30  ;;  %v3165_v5 = vsel %vm3159_vm9, %v3122_v14, %v3148_v28  ;;  %v1322_v53 = vadd.f32 %v1321_v52, %v6727_v42  ;;  %v1323_v14 = vpop.f32.mrf.mxu1  ;;  %v3248_v2 = vld [vmem:[#allocation2 + $0x40] sm:$0xff] }
 0x1f4   :  { %4068 = vmatpush2.bf16.msra.mxu0 %v5612_v19  ;;  %1974 = vrot.lane.b32.xlu0 %v6944_v8, %s5709_s25  ;;  %3208 = vst.msk [vmem:[#allocation2 + $0x57] ss:$8 sm:$0x3] %vm6239_vm3, %v3165_v5  ;;  %v1369_v18 = vmax.f32 %v722_v59, 0.0  ;;  %v1378_v34 = vmax.f32 %v935_v16, 0.0  ;;  %v1387_v3 = vmax.f32 %v1109_v63, 0.0  ;;  %v763_v45 = vadd.f32 %v7902_v13, %v6727_v42 }
 0x1f5   :  { %4147 = vmatpush1.bf16.msra.mxu1 %v5613_v55  ;;  %v7001_v20 = vmax.f32 %v1413_v6, %v1431_v60  ;;  %v1396_v21 = vmax.f32 %v1322_v53, 0.0  ;;  %v937_v7 = vadd.f32 %v7903_v56, %v6727_v42  ;;  %v1150_v43 = vadd.f32 %v7904_v58, %v6727_v42  ;;  %4231 = vmatprep.subr.bf16.mxu0 %v7875_v23  ;;  %v2433_v10 = vpop.permute.xlu0 %2432  ;;  %v2893_v33 = vpop.permute.xlu1 %2892  ;;  %v5616_v55 = vld [vmem:[%s7850_s3 + $0x1a8] sm:$0xff]  }
 0x1f6   :  { %4148 = vmatprep.subr.bf16.mxu1 %v7875_v23  ;;  %1743 = vrot.lane.b32.xlu1 %v6933_v26, %s5710_s26  ;;  %v1414_v39 = vmax.f32 %v1369_v18, %v1378_v34  ;;  %v1324_v24 = vadd.f32 %v1323_v14, %v6727_v42  ;;  %v1370_v31 = vmax.f32 %v763_v45, 0.0  ;;  %v3149_v15 = vrot.slane %v6950_v11, 1  ;;  %v5615_v16 = vld [vmem:[%s7850_s3 + $0x1e8] sm:$0xff]  }
 0x1f7   :  { %v2599_v9 = vcombine.low %v6898_v35, %v7001_v20  ;;  %v1432_v27 = vmax.f32 %v1387_v3, %v1396_v21  ;;  %v1379_v54 = vmax.f32 %v937_v7, 0.0  ;;  %v1388_v29 = vmax.f32 %v1150_v43, 0.0  ;;  %v5617_v21 = vld [vmem:[%s7850_s3 + $0x1e0] sm:$0xff]   ;;  %v5619_v7 = vld [vmem:[%s7850_s3 + $0x230] sm:$0xff]  }
 0x1f8   :  { %v7016_v19 = vrot.slane %v2153_v61, %v6255_v1  ;;  %v1397_v41 = vmax.f32 %v1324_v24, 0.0  ;;  %v3166_v62 = vsel %vm3159_vm9, %v6950_v11, %v3149_v15  ;;  %v1994_v42 = vrot.slane %v6959_v48, 1 }
 0x1f9   :  { %4149 = vmatpush1.bf16.msra.mxu1 %v5614_v46  ;;  %v2607_v52 = vrot.slane %v2599_v9, %v6255_v1  ;;  %v7025_v32 = vmax.f32 %v1414_v39, %v1432_v27  ;;  %v1415_v51 = vmax.f32 %v1370_v31, %v1379_v54  ;;  %3211 = vst.msk [vmem:[#allocation2 + $0x67] ss:$8 sm:$0x3] %vm6239_vm3, %v3166_v62  ;;  %v1995_v61 = vrot.slane %v1971_v38, 1  ;;  %v1740_v63 = vpop.permute.xlu1 %1739  ;;  %v2895_v53 = vpop.permute.xlu0 %2894 }
 0x1fa   :  { %4164 = vmatprep.subr.bf16.mxu1 %v7875_v23  ;;  %2205 = vrot.lane.b32.xlu1 %v7016_v19, %s5711_s6  ;;  %v1433_v11 = vmax.f32 %v1388_v29, %v1397_v41  ;;  %v2011_v28 = vsel %vm2004_vm4, %v6959_v48, %v1994_v42  ;;  %v2456_v30 = vrot.slane %v2431_v36, 1  ;;  %v3280_v60 = vpack.c.bf16 %v3248_v2, %v3248_v2  ;;  %v5621_v41 = vld [vmem:[%s7850_s3 + $0x228] sm:$0xff]  }
 0x1fb   :  { %v7035_v57 = vrot.slane %v2607_v52, %v6255_v1  ;;  %v2830_v59 = vcombine.low %v7001_v20, %v7025_v32  ;;  %2056 = vst.msk [vmem:[#allocation2 + $0x62] ss:$8 sm:$0x3] %vm6239_vm3, %v2011_v28  ;;  %v2012_v44 = vsel %vm2004_vm4, %v1971_v38, %v1995_v61  ;;  %v3251_v0 = vld [vmem:[#allocation2 + $0x58] sm:$0xff]  ;;  %v2457_v5 = vrot.slane %v2433_v10, 1  ;;  %v3250_v3 = vld [vmem:[#allocation2 + $0x50] sm:$0xff] }
 0x1fc   :  { %v7045_v6 = vmax.f32 %v1415_v51, %v1433_v11  ;;  %2059 = vst.msk [vmem:[#allocation2 + $0x72] ss:$8 sm:$0x3] %vm6239_vm3, %v2012_v44  ;;  %v2473_v48 = vsel %vm2466_vm8, %v2431_v36, %v2456_v30  ;;  %v2918_v18 = vrot.slane %v2893_v33, 1  ;;  %v3283_v34 = vpack.c.bf16 %v3251_v0, %v3251_v0  ;;  %4070 = vmatmul.mubr.bf16.vlgmr.msra.gmra.mxu0 %v3280_v60  ;;  %v5620_v11 = vld [vmem:[%s7850_s3 + $0x1d0] sm:$0xff]   ;;  %v5623_v30 = vld [vmem:[%s7850_s3 + $0x220] sm:$0xff]  }
 0x1fd   :  { %4165 = vmatpush2.bf16.msra.mxu1 %v5616_v55  ;;  %2665 = vrot.lane.b32.xlu0 %v7035_v57, %s5712_s12  ;;  %v7053_v38 = vrot.slane %v2830_v59, %v6255_v1  ;;  %2518 = vst.msk [vmem:[#allocation2 + $0x64] ss:$8 sm:$0x3] %vm6239_vm3, %v2473_v48  ;;  %v2474_v13 = vsel %vm2466_vm8, %v2433_v10, %v2457_v5  ;;  %v2919_v56 = vrot.slane %v2895_v53, 1  ;;  %v2202_v58 = vpop.permute.xlu1 %2201  ;;  %v1764_v39 = vrot.slane %v1740_v63, 1 }
 0x1fe   :  { %4328 = vmatprep.subr.bf16.mxu1 %v7875_v23  ;;  %v3061_v36 = vcombine.low %v7025_v32, %v7045_v6  ;;  %v2615_v46 = vcombine.high %v2607_v52, %v2607_v52  ;;  %4232 = vmatpush1.bf16.msra.mxu0 %v5615_v16  ;;  %2521 = vst.msk [vmem:[#allocation2 + $0x74] ss:$8 sm:$0x3] %vm6239_vm3, %v2474_v13  ;;  %v2226_v15 = vrot.slane %v2202_v58, 1  ;;  %v5626_v13 = vld [vmem:[%s7850_s3 + $0x1b8] sm:$0xff]  }
 0x1ff   :  { %v7063_v45 = vrot.slane %v7053_v38, %v6255_v1  ;;  %v2935_v14 = vsel %vm2928_vm10, %v2893_v33, %v2918_v18  ;;  %5339 = vmatprep.mubr.msk.bf16.mxu1 %vm3159_vm9, %v3283_v34  ;;  %4233 = vmatprep.subr.bf16.mxu0 %v7875_v23  ;;  %v3282_v24 = vpack.c.bf16 %v3250_v3, %v3250_v3  ;;  %v5618_v33 = vld [vmem:[%s7850_s3 + $0x1d8] sm:$0xff]   ;;  %v5624_v34 = vld [vmem:[%s7850_s3 + $0x1c0] sm:$0xff]   ;;  %v5627_v3 = vld [vmem:[%s7850_s3 + $0x210] sm:$0xff]  }
 0x200   :  { %v3069_v43 = vrot.slane %v3061_v36, %v6255_v1  ;;  %2980 = vst.msk [vmem:[#allocation2 + $0x66] ss:$8 sm:$0x3] %vm6239_vm3, %v2935_v14  ;;  %v2936_v31 = vsel %vm2928_vm10, %v2895_v53, %v2919_v56  ;;  %v2384_v9 = vcombine.high %v6937_v22, %v6937_v22  ;;  %v1781_v27 = vsel %vm1773_vm5, %v1740_v63, %v1764_v39  ;;  %v5622_v53 = vld [vmem:[%s7850_s3 + $0x1c8] sm:$0xff]   ;;  %v5631_v56 = vld [vmem:[%s7850_s3 + $0x200] sm:$0xff]   ;;  %v5633_v39 = vld [vmem:[%s7850_s3 + $0x238] sm:$0xff]  }
 0x201   :  { %2896 = vrot.lane.b32.xlu1 %v7063_v45, %s5715_s17  ;;  %2983 = vst.msk [vmem:[#allocation2 + $0x76] ss:$8 sm:$0x3] %vm6239_vm3, %v2936_v31  ;;  %4167 = vmatmul.mubr.bf16.vlgmr.msra.gmra.mxu1 %v3282_v24  ;;  %v7091_v54 = vrot.slane %v2615_v46, %v6255_v1  ;;  %1828 = vst.msk [vmem:[#allocation2 + $0x71] ss:$8 sm:$0x3] %vm6239_vm3, %v1781_v27  ;;  %v2243_v22 = vsel %vm2235_vm6, %v2202_v58, %v2226_v15  ;;  %v2664_v62 = vpop.permute.xlu1 %2663 }
 0x202   :  { %v7083_v10 = vrot.slane %v3069_v43, %v6255_v1  ;;  %v3077_v29 = vcombine.high %v3069_v43, %v3069_v43  ;;  %4234 = vmatpush1.bf16.msra.mxu0 %v5617_v21  ;;  %4329 = vmatpush1.bf16.msra.mxu1 %v5619_v7  ;;  %2290 = vst.msk [vmem:[#allocation2 + $0x73] ss:$8 sm:$0x3] %vm6239_vm3, %v2243_v22  ;;  %v2688_v42 = vrot.slane %v2664_v62, 1  ;;  %v5629_v46 = vld [vmem:[%s7850_s3 + $0x208] sm:$0xff]   ;;  %v5628_v21 = vld [vmem:[%s7850_s3 + $0x1b0] sm:$0xff]  }
 0x203   :  { %4235 = vmatprep.subr.bf16.mxu0 %v7875_v23  ;;  %4330 = vmatprep.subr.bf16.mxu1 %v7875_v23  ;;  %v7111_v55 = vrot.slane %v2384_v9, %v6255_v1  ;;  %v2846_v52 = vcombine.high %v7053_v38, %v7053_v38  ;;  %v1907_v61 = vcombine.high %v6785_v37, %v6787_v25  ;;  %v5625_v38 = vld [vmem:[%s7850_s3 + $0x218] sm:$0xff]   ;;  %v5630_v7 = vld [vmem:[%s7850_s3 + $0x1f0] sm:$0xff]  }
 0x204   :  { %3127 = vrot.lane.b32.xlu0 %v7083_v10, %s5714_s16  ;;  %v2705_v51 = vsel %vm2697_vm7, %v2664_v62, %v2688_v42  ;;  %v7119_v2 = vrot.slane %v3077_v29, %v6255_v1  ;;  %v1676_v44 = vcombine.high %v6844_v4, %v6785_v37  ;;  %v2138_v16 = vcombine.high %v6787_v25, %v6884_v47  ;;  %v5632_v58 = vld [vmem:[%s7850_s3 + $0x1f8] sm:$0xff]   ;;  %v5635_v29 = vld [vmem:[%s7850_s3 + $0x270] sm:$0xff]  }
 0x205   :  { %2667 = vrot.lane.b32.xlu1 %v7091_v54, %s5712_s12  ;;  %2752 = vst.msk [vmem:[#allocation2 + $0x75] ss:$8 sm:$0x3] %vm6239_vm3, %v2705_v51  ;;  %v3126_v59 = vpop.permute.xlu1 %3125  ;;  %v7140_v48 = vrot.slane %v2846_v52, %v6255_v1  ;;  %v1952_v5 = vcombine.high %v6822_v17, %v6822_v17  ;;  %v1721_v17 = vcombine.high %v6882_v12, %v6882_v12  ;;  %v5634_v24 = vld [vmem:[%s7850_s3 + $0x278] sm:$0xff]   ;;  %v5636_v51 = vld [vmem:[%s7850_s3 + $0x268] sm:$0xff]   ;;  %v5641_v25 = vld [vmem:[%s7850_s3 + $0x2b0] sm:$0xff]  }
 0x206   :  { %4236 = vmatpush1.bf16.msra.mxu0 %v5618_v33  ;;  %4331 = vmatpush1.bf16.msra.mxu1 %v5621_v41  ;;  %v3150_v63 = vrot.slane %v3126_v59, 1  ;;  %v2414_v18 = vcombine.high %v6966_v40, %v6966_v40  ;;  %v2183_v12 = vcombine.high %v6941_v49, %v6941_v49  ;;  %v1723_v36 = vcombine.high %v6933_v26, %v6933_v26  ;;  %v5637_v33 = vld [vmem:[%s7850_s3 + $0x2c0] sm:$0xff]   ;;  %v5639_v37 = vld [vmem:[%s7850_s3 + $0x2b8] sm:$0xff]  }
 0x207   :  { %v3253_v28 = vld [vmem:[#allocation2 + $0x68] sm:$0xff]  ;;  %4237 = vmatprep.subr.bf16.mxu0 %v7875_v23  ;;  %4332 = vmatprep.subr.bf16.mxu1 %v7875_v23  ;;  %v1954_v26 = vcombine.high %v6944_v8, %v6944_v8  ;;  %v2185_v49 = vcombine.high %v7016_v19, %v7016_v19  ;;  %v2645_v8 = vcombine.high %v7035_v57, %v7035_v57  ;;  %v3252_v57 = vld [vmem:[#allocation2 + $0x60] sm:$0xff] }
 0x208   :  { %2436 = vrot.lane.b32.xlu0 %v7111_v55, %s5713_s13  ;;  %v3285_v0 = vpack.c.bf16 %v3253_v28, %v3253_v28  ;;  %v3167_v60 = vsel %vm3159_vm9, %v3126_v59, %v3150_v63  ;;  %v2876_v19 = vcombine.high %v7063_v45, %v7063_v45  ;;  %v3107_v45 = vcombine.high %v7083_v10, %v7083_v10 }
 0x209   :  { %3129 = vrot.lane.b32.xlu1 %v7119_v2, %s5714_s16  ;;  %3214 = vst.msk [vmem:[#allocation2 + $0x77] ss:$8 sm:$0x3] %vm6239_vm3, %v3167_v60  ;;  %v2647_v43 = vcombine.high %v7091_v54, %v7091_v54  ;;  %v3284_v31 = vpack.c.bf16 %v3252_v57, %v3252_v57  ;;  %v2416_v10 = vcombine.high %v7111_v55, %v7111_v55  ;;  %v5642_v60 = vld [vmem:[%s7850_s3 + $0x250] sm:$0xff]  }
 0x20a   :  { %5349 = vmatprep.mubr.msk.bf16.mxu0 %vm3159_vm9, %v3285_v0  ;;  %4238 = vmatpush1.bf16.msra.mxu0 %v5620_v11  ;;  %v3109_v9 = vcombine.high %v7119_v2, %v7119_v2  ;;  %v7238_v27 = vrot.slane %v1907_v61, %v6255_v1  ;;  %v2369_v54 = vcombine.high %v6884_v47, %v6898_v35  ;;  %v5643_v0 = vld [vmem:[%s7850_s3 + $0x2a8] sm:$0xff]  }
 0x20b   :  { %4333 = vmatpush1.bf16.msra.mxu1 %v5623_v30  ;;  %4239 = vmatprep.subr.bf16.mxu0 %v7875_v23  ;;  %v2878_v41 = vcombine.high %v7140_v48, %v7140_v48  ;;  %v1690_v62 = vrot.slane %v1676_v44, %v6255_v1  ;;  %v2831_v52 = vcombine.high %v7001_v20, %v7025_v32  ;;  %v5638_v30 = vld [vmem:[%s7850_s3 + $0x260] sm:$0xff]  }
 0x20c   :  { %2898 = vrot.lane.b32.xlu0 %v7140_v48, %s5715_s17  ;;  %4334 = vmatprep.subr.bf16.mxu1 %v7875_v23  ;;  %v7260_v42 = vrot.slane %v7238_v27, %v6255_v1  ;;  %v7263_v55 = vrot.slane %v2369_v54, %v6255_v1  ;;  %v2152_v61 = vrot.slane %v2138_v16, %v6255_v1  ;;  %v5640_v16 = vld [vmem:[%s7850_s3 + $0x258] sm:$0xff]  }
 0x20d   :  { %1976 = vrot.lane.b32.xlu1 %v1952_v5, %s5709_s25  ;;  %v7279_v4 = vrot.slane %v1690_v62, %v6255_v1  ;;  %v2600_v2 = vcombine.high %v6898_v35, %v7001_v20  ;;  %v7292_v28 = vrot.slane %v2831_v52, %v6255_v1  ;;  %v3062_v20 = vcombine.high %v7025_v32, %v7045_v6  ;;  %v5645_v5 = vld [vmem:[%s7850_s3 + $0x2a0] sm:$0xff]  }
 0x20e   :  { %4240 = vmatpush1.bf16.msra.mxu0 %v5622_v53  ;;  %v7289_v11 = vrot.slane %v7263_v55, %v6255_v1  ;;  %v7307_v47 = vrot.slane %v2152_v61, %v6255_v1  ;;  %v1692_v44 = vcombine.high %v1690_v62, %v1690_v62  ;;  %v2154_v48 = vcombine.high %v2152_v61, %v2152_v61 }
 0x20f   :  { %4335 = vmatpush1.bf16.msra.mxu1 %v5625_v38  ;;  %4241 = vmatprep.subr.bf16.mxu0 %v7875_v23  ;;  %v2614_v35 = vrot.slane %v2600_v2, %v6255_v1  ;;  %v7314_v59 = vrot.slane %v7292_v28, %v6255_v1  ;;  %v3076_v6 = vrot.slane %v3062_v20, %v6255_v1 }
 0x210   :  { %1745 = vrot.lane.b32.xlu0 %v1721_v17, %s5710_s26  ;;  %4336 = vmatprep.subr.bf16.mxu1 %v7875_v23  ;;  %v3255_v40 = vld [vmem:[#allocation2 + $0x78] sm:$0xff]  ;;  %v3254_v15 = vld [vmem:[#allocation2 + $0x70] sm:$0xff]  ;;  %v7333_v63 = vrot.slane %v1692_v44, %v6255_v1  ;;  %v1923_v38 = vcombine.high %v7238_v27, %v7238_v27  ;;  %v2182_v17 = vrot.slane %v2154_v48, %v6255_v1 }
 0x211   :  { %2438 = vrot.lane.b32.xlu1 %v2414_v18, %s5713_s13  ;;  %v3287_v14 = vpack.c.bf16 %v3255_v40, %v3255_v40  ;;  %v3286_v22 = vpack.c.bf16 %v3254_v15, %v3254_v15  ;;  %v7329_v32 = vrot.slane %v2614_v35, %v6255_v1  ;;  %v3092_v53 = vrot.slane %v3076_v6, %v6255_v1 }
 0x212   :  { %4242 = vmatpush1.bf16.msra.mxu0 %v5624_v34  ;;  %v2616_v18 = vcombine.high %v2614_v35, %v2614_v35  ;;  %v5644_v34 = vld [vmem:[%s7850_s3 + $0x248] sm:$0xff]   ;;  %v2385_v40 = vcombine.high %v7263_v55, %v7263_v55  ;;  %v2415_v57 = vcombine.high %v7289_v11, %v7289_v11 }
 0x213   :  { %4337 = vmatpush1.bf16.msra.mxu1 %v5627_v3  ;;  %4243 = vmatprep.subr.bf16.mxu0 %v7875_v23  ;;  %v5647_v3 = vld [vmem:[%s7850_s3 + $0x298] sm:$0xff]  }
 0x214   :  { %2207 = vrot.lane.b32.xlu0 %v2183_v12, %s5711_s6  ;;  %4338 = vmatprep.subr.bf16.mxu1 %v7875_v23  ;;  %v1951_v12 = vrot.slane %v1923_v38, %v6255_v1 }
 0x215   :  { %1747 = vrot.lane.b32.xlu1 %v1723_v36, %s5710_s26  ;;  %5359 = vmatprep.mubr.msk.bf16.mxu1 %vm3159_vm9, %v3287_v14  ;;  %v3078_v36 = vcombine.high %v3076_v6, %v3076_v6  ;;  %v5649_v14 = vld [vmem:[%s7850_s3 + $0x290] sm:$0xff]  }
 0x216   :  { %4244 = vmatpush1.bf16.msra.mxu0 %v5626_v13  ;;  %v2644_v13 = vrot.slane %v2616_v18, %v6255_v1  ;;  %v1955_v54 = vcombine.high %v1951_v12, %v1951_v12 }
 0x217   :  { %4339 = vmatpush1.bf16.msra.mxu1 %v5629_v46  ;;  %4245 = vmatprep.subr.bf16.mxu0 %v7875_v23  ;;  %v5646_v46 = vld [vmem:[%s7850_s3 + $0x240] sm:$0xff]  }
 0x218   :  { %1978 = vrot.lane.b32.xlu0 %v1954_v26, %s5709_s25  ;;  %4340 = vmatprep.subr.bf16.mxu1 %v7875_v23  ;;  %v2847_v26 = vcombine.high %v7292_v28, %v7292_v28 }
 0x219   :  { %2209 = vrot.lane.b32.xlu1 %v2185_v49, %s5711_s6  ;;  %v2413_v49 = vrot.slane %v2385_v40, %v6255_v1 }
 0x21a   :  { %4246 = vmatpush1.bf16.msra.mxu0 %v5628_v21  ;;  %v3106_v21 = vrot.slane %v3078_v36, %v6255_v1 }
 0x21b   :  { %4341 = vmatpush1.bf16.msra.mxu1 %v5631_v56  ;;  %4261 = vmatprep.subr.bf16.mxu0 %v7875_v23  ;;  %v5648_v56 = vld [vmem:[%s7850_s3 + $0x280] sm:$0xff]  }
 0x21c   :  { %2669 = vrot.lane.b32.xlu0 %v2645_v8, %s5712_s12  ;;  %4342 = vmatprep.subr.bf16.mxu1 %v7875_v23  ;;  %v5650_v8 = vld [vmem:[%s7850_s3 + $0x288] sm:$0xff]  }
 0x21d   :  { %2900 = vrot.lane.b32.xlu1 %v2876_v19, %s5715_s17  ;;  %v2875_v19 = vrot.slane %v2847_v26, %v6255_v1  ;;  %v1722_v1 = vcombine.high %v7279_v4, %v7279_v4 }
 0x21e   :  { %4262 = vmatpush2.bf16.msra.mxu0 %v5630_v7  ;;  %v1953_v7 = vcombine.high %v7260_v42, %v7260_v42 }
 0x21f   :  { %4343 = vmatpush1.bf16.msra.mxu1 %v5632_v58  ;;  %4425 = vmatprep.subr.bf16.mxu0 %v7875_v23  ;;  %v5652_v58 = vld [vmem:[%s7850_s3 + $0x2c8] sm:$0xff]  }
 0x220   :  { %3131 = vrot.lane.b32.xlu0 %v3107_v45, %s5714_s16  ;;  %4358 = vmatprep.subr.bf16.mxu1 %v7875_v23  ;;  %v2184_v45 = vcombine.high %v7307_v47, %v7307_v47 }
 0x221   :  { %2671 = vrot.lane.b32.xlu1 %v2647_v43, %s5712_s12  ;;  %4264 = vmatmul.mubr.bf16.vlgmr.msra.gmra.mxu0 %v3284_v31  ;;  %v2877_v43 = vcombine.high %v7314_v59, %v7314_v59  ;;  %v3108_v31 = vcombine.high %v3092_v53, %v3092_v53 }
 0x222   :  { %4426 = vmatpush1.bf16.msra.mxu0 %v5634_v24  ;;  %v1724_v24 = vcombine.high %v7333_v63, %v7333_v63 }
 0x223   :  { %4359 = vmatpush2.bf16.msra.mxu1 %v5633_v39  ;;  %4427 = vmatprep.subr.bf16.mxu0 %v7875_v23  ;;  %v2646_v39 = vcombine.high %v7329_v32, %v7329_v32 }
 0x224   :  { %2440 = vrot.lane.b32.xlu0 %v2416_v10, %s5713_s13  ;;  %4522 = vmatprep.subr.bf16.mxu1 %v7875_v23  ;;  %v2186_v10 = vcombine.high %v2182_v17, %v2182_v17 }
 0x225   :  { %3133 = vrot.lane.b32.xlu1 %v3109_v9, %s5714_s16 }
 0x226   :  { %4361 = vmatmul.mubr.bf16.vlgmr.msra.gmra.mxu1 %v3286_v22  ;;  %4428 = vmatpush1.bf16.msra.mxu0 %v5635_v29  ;;  %v2648_v29 = vcombine.high %v2644_v13, %v2644_v13  ;;  %v3110_v22 = vcombine.high %v3106_v21, %v3106_v21 }
 0x227   :  { %4523 = vmatpush1.bf16.msra.mxu1 %v5637_v33  ;;  %4429 = vmatprep.subr.bf16.mxu0 %v7875_v23  ;;  %v2417_v33 = vcombine.high %v2413_v49, %v2413_v49 }
 0x228   :  { %2902 = vrot.lane.b32.xlu0 %v2878_v41, %s5715_s17  ;;  %4524 = vmatprep.subr.bf16.mxu1 %v7875_v23 }
 0x229   :  { %1980 = vrot.lane.b32.xlu1 %v7260_v42, %s5709_s25  ;;  %v2879_v42 = vcombine.high %v2875_v19, %v2875_v19 }
 0x22a   :  { %4430 = vmatpush1.bf16.msra.mxu0 %v5636_v51 }
 0x22b   :  { %4525 = vmatpush1.bf16.msra.mxu1 %v5639_v37  ;;  %4431 = vmatprep.subr.bf16.mxu0 %v7875_v23 }
 0x22c   :  { %1749 = vrot.lane.b32.xlu0 %v7279_v4, %s5710_s26  ;;  %4526 = vmatprep.subr.bf16.mxu1 %v7875_v23 }
 0x22d   :  { %2442 = vrot.lane.b32.xlu1 %v7289_v11, %s5713_s13 }
 0x22e   :  { %4432 = vmatpush1.bf16.msra.mxu0 %v5638_v30 }
 0x22f   :  { %4527 = vmatpush1.bf16.msra.mxu1 %v5641_v25  ;;  %4433 = vmatprep.subr.bf16.mxu0 %v7875_v23 }
 0x230   :  { %2211 = vrot.lane.b32.xlu0 %v7307_v47, %s5711_s6  ;;  %4528 = vmatprep.subr.bf16.mxu1 %v7875_v23 }
 0x231   :  { %2904 = vrot.lane.b32.xlu1 %v7314_v59, %s5715_s17 }
 0x232   :  { %4434 = vmatpush1.bf16.msra.mxu0 %v5640_v16 }
 0x233   :  { %4529 = vmatpush1.bf16.msra.mxu1 %v5643_v0  ;;  %4435 = vmatprep.subr.bf16.mxu0 %v7875_v23 }
 0x234   :  { %2673 = vrot.lane.b32.xlu0 %v7329_v32, %s5712_s12  ;;  %4530 = vmatprep.subr.bf16.mxu1 %v7875_v23 }
 0x235   :  { %1751 = vrot.lane.b32.xlu1 %v7333_v63, %s5710_s26 }
 0x236   :  { %4436 = vmatpush1.bf16.msra.mxu0 %v5642_v60 }
 0x237   :  { %4531 = vmatpush1.bf16.msra.mxu1 %v5645_v5  ;;  %4437 = vmatprep.subr.bf16.mxu0 %v7875_v23 }
 0x238   :  { %3135 = vrot.lane.b32.xlu0 %v3092_v53, %s5714_s16  ;;  %4532 = vmatprep.subr.bf16.mxu1 %v7875_v23 }
 0x239   :  { %2213 = vrot.lane.b32.xlu1 %v2182_v17, %s5711_s6 }
 0x23a   :  { %4438 = vmatpush1.bf16.msra.mxu0 %v5644_v34 }
 0x23b   :  { %4533 = vmatpush1.bf16.msra.mxu1 %v5647_v3  ;;  %4439 = vmatprep.subr.bf16.mxu0 %v7875_v23 }
 0x23c   :  { %1982 = vrot.lane.b32.xlu0 %v1951_v12, %s5709_s25  ;;  %4534 = vmatprep.subr.bf16.mxu1 %v7875_v23 }
 0x23d   :  { %2675 = vrot.lane.b32.xlu1 %v2644_v13, %s5712_s12 }
 0x23e   :  { %4440 = vmatpush1.bf16.msra.mxu0 %v5646_v46 }
 0x23f   :  { %4535 = vmatpush1.bf16.msra.mxu1 %v5649_v14  ;;  %4455 = vmatprep.subr.bf16.mxu0 %v7875_v23 }
 0x240   :  { %2444 = vrot.lane.b32.xlu0 %v2413_v49, %s5713_s13  ;;  %4536 = vmatprep.subr.bf16.mxu1 %v7875_v23 }
 0x241   :  { %3137 = vrot.lane.b32.xlu1 %v3106_v21, %s5714_s16 }
 0x242   :  { %4456 = vmatpush2.bf16.msra.mxu0 %v5648_v56 }
 0x243   :  { %4537 = vmatpush1.bf16.msra.mxu1 %v5650_v8  ;;  %4619 = vmatprep.subr.bf16.mxu0 %v7875_v23 }
 0x244   :  { %2906 = vrot.lane.b32.xlu0 %v2875_v19, %s5715_s17  ;;  %4552 = vmatprep.subr.bf16.mxu1 %v7875_v23 }
 0x245   :  { %1984 = vrot.lane.b32.xlu1 %v1953_v7, %s5709_s25 }
 0x247   :  { %4553 = vmatpush2.bf16.msra.mxu1 %v5652_v58 }
 0x248   :  { %1753 = vrot.lane.b32.xlu0 %v1722_v1, %s5710_s26  ;;  %4716 = vmatprep.subr.bf16.mxu1 %v7875_v23 }
 0x249   :  { %2446 = vrot.lane.b32.xlu1 %v2415_v57, %s5713_s13 }
 0x24c   :  { %2215 = vrot.lane.b32.xlu0 %v2184_v45, %s5711_s6 }
 0x24d   :  { %2908 = vrot.lane.b32.xlu1 %v2877_v43, %s5715_s17 }
 0x250   :  { %2677 = vrot.lane.b32.xlu0 %v2646_v39, %s5712_s12 }
 0x251   :  { %1755 = vrot.lane.b32.xlu1 %v1724_v24, %s5710_s26  ;;  %v1973_v15 = vpop.permute.xlu1 %1972 }
 0x252   :  { %v1996_v9 = vrot.slane %v1973_v15, 1 }
 0x254   :  { %3139 = vrot.lane.b32.xlu0 %v3108_v31, %s5714_s16  ;;  %v2013_v27 = vsel %vm2004_vm4, %v1973_v15, %v1996_v9 }
 0x255   :  { %2217 = vrot.lane.b32.xlu1 %v2186_v10, %s5711_s6  ;;  %2062 = vst.msk [vmem:[#allocation2 + $0x82] ss:$8 sm:$0x3] %vm6239_vm3, %v2013_v27 }
 0x258   :  { %1986 = vrot.lane.b32.xlu0 %v1955_v54, %s5709_s25 }
 0x259   :  { %2679 = vrot.lane.b32.xlu1 %v2648_v29, %s5712_s12  ;;  %v5651_v29 = vld [vmem:[%s7850_s3 + $0x308] sm:$0xff]  }
 0x25b   :  { %v1742_v41 = vpop.permute.xlu0 %1741 }
 0x25c   :  { %2448 = vrot.lane.b32.xlu0 %v2417_v33, %s5713_s13  ;;  %v1765_v62 = vrot.slane %v1742_v41, 1 }
 0x25d   :  { %3141 = vrot.lane.b32.xlu1 %v3110_v22, %s5714_s16 }
 0x25e   :  { %v1782_v55 = vsel %vm1773_vm5, %v1742_v41, %v1765_v62 }
 0x25f   :  { %1831 = vst.msk [vmem:[#allocation2 + $0x81] ss:$8 sm:$0x3] %vm6239_vm3, %v1782_v55 }
 0x260   :  { %2910 = vrot.lane.b32.xlu0 %v2879_v42, %s5715_s17 }
 0x262   :  { %v2204_v52 = vpop.permute.xlu0 %2203 }
 0x263   :  { %v2227_v51 = vrot.slane %v2204_v52, 1 }
 0x264   :  { %v2435_v37 = vpop.permute.xlu1 %2434 }
 0x265   :  { %v2458_v4 = vrot.slane %v2435_v37, 1  ;;  %v2244_v61 = vsel %vm2235_vm6, %v2204_v52, %v2227_v51  ;;  %v5653_v52 = vld [vmem:[%s7850_s3 + $0x300] sm:$0xff]  }
 0x266   :  { %2293 = vst.msk [vmem:[#allocation2 + $0x83] ss:$8 sm:$0x3] %vm6239_vm3, %v2244_v61  ;;  %v1975_v2 = vpop.permute.xlu0 %1974 }
 0x267   :  { %v2475_v11 = vsel %vm2466_vm8, %v2435_v37, %v2458_v4  ;;  %v1997_v28 = vrot.slane %v1975_v2, 1 }
 0x268   :  { %2524 = vst.msk [vmem:[#allocation2 + $0x84] ss:$8 sm:$0x3] %vm6239_vm3, %v2475_v11  ;;  %v1744_v30 = vpop.permute.xlu1 %1743 }
 0x269   :  { %v1766_v25 = vrot.slane %v1744_v30, 1  ;;  %v2014_v47 = vsel %vm2004_vm4, %v1975_v2, %v1997_v28 }
 0x26a   :  { %2065 = vst.msk [vmem:[#allocation2 + $0x92] ss:$8 sm:$0x3] %vm6239_vm3, %v2014_v47 }
 0x26b   :  { %v1783_v35 = vsel %vm1773_vm5, %v1744_v30, %v1766_v25 }
 0x26c   :  { %1834 = vst.msk [vmem:[#allocation2 + $0x91] ss:$8 sm:$0x3] %vm6239_vm3, %v1783_v35  ;;  %v2206_v20 = vpop.permute.xlu1 %2205  ;;  %v3683_v44 = vpop.f32.mrf.mxu0  ;;  %v5654_v35 = vld [vmem:[%s7850_s3 + $0x2f8] sm:$0xff]  }
 0x26d   :  { %v2228_v59 = vrot.slane %v2206_v20, 1  ;;  %v5145_v34 = vsel %vm5144_vm11, %v3683_v44, 0.0 }
 0x26e   :  { %v3685_v32 = vpop.f32.mrf.mxu0 }
 0x26f   :  { %v2245_v16 = vsel %vm2235_vm6, %v2206_v20, %v2228_v59  ;;  %v2666_v0 = vpop.permute.xlu0 %2665  ;;  %v5655_v20 = vld [vmem:[%s7850_s3 + $0x350] sm:$0xff]  }
 0x270   :  { %2296 = vst.msk [vmem:[#allocation2 + $0x93] ss:$8 sm:$0x3] %vm6239_vm3, %v2245_v16  ;;  %v2689_v6 = vrot.slane %v2666_v0, 1  ;;  %v3686_v63 = vpop.f32.mrf.mxu0 }
 0x271   :  { %v5656_v63 = vld [vmem:[%s7850_s3 + $0x2f0] sm:$0xff]  }
 0x272   :  { %v2706_v48 = vsel %vm2697_vm7, %v2666_v0, %v2689_v6  ;;  %v3687_v5 = vpop.f32.mrf.mxu0 }
 0x273   :  { %2755 = vst.msk [vmem:[#allocation2 + $0x85] ss:$8 sm:$0x3] %vm6239_vm3, %v2706_v48  ;;  %v2897_v60 = vpop.permute.xlu1 %2896  ;;  %v5657_v48 = vld [vmem:[%s7850_s3 + $0x348] sm:$0xff]  }
 0x274   :  { %v2920_v53 = vrot.slane %v2897_v60, 1  ;;  %v3780_v38 = vpop.f32.mrf.mxu1 }
 0x275   :  { %v5146_v3 = vsel %vm5144_vm11, %v3780_v38, 0.0 }
 0x276   :  { %v2937_v17 = vsel %vm2928_vm10, %v2897_v60, %v2920_v53  ;;  %v3128_v18 = vpop.permute.xlu0 %3127  ;;  %v7454_v36 = vadd.f32 %v5146_v3, %v5145_v34  ;;  %v3782_v13 = vpop.f32.mrf.mxu1  ;;  %v5658_v3 = vld [vmem:[%s7850_s3 + $0x2e8] sm:$0xff]  }
 0x277   :  { %2986 = vst.msk [vmem:[#allocation2 + $0x86] ss:$8 sm:$0x3] %vm6239_vm3, %v2937_v17  ;;  %v3151_v12 = vrot.slane %v3128_v18, 1  ;;  %v2668_v40 = vpop.permute.xlu1 %2667 }
 0x278   :  { %v2690_v46 = vrot.slane %v2668_v40, 1  ;;  %v3783_v26 = vpop.f32.mrf.mxu1 }
 0x279   :  { %v3168_v14 = vsel %vm3159_vm9, %v3128_v18, %v3151_v12  ;;  %v5659_v12 = vld [vmem:[%s7850_s3 + $0x340] sm:$0xff]  }
 0x27a   :  { %3217 = vst.msk [vmem:[#allocation2 + $0x87] ss:$8 sm:$0x3] %vm6239_vm3, %v3168_v14  ;;  %v2707_v49 = vsel %vm2697_vm7, %v2668_v40, %v2690_v46  ;;  %v2437_v21 = vpop.permute.xlu0 %2436  ;;  %v3784_v19 = vpop.f32.mrf.mxu1 }
 0x27b   :  { %2758 = vst.msk [vmem:[#allocation2 + $0x95] ss:$8 sm:$0x3] %vm6239_vm3, %v2707_v49  ;;  %v2459_v56 = vrot.slane %v2437_v21, 1  ;;  %v3130_v8 = vpop.permute.xlu1 %3129 }
 0x27c   :  { %v3152_v7 = vrot.slane %v3130_v8, 1 }
 0x27d   :  { %v2476_v58 = vsel %vm2466_vm8, %v2437_v21, %v2459_v56 }
 0x27e   :  { %2527 = vst.msk [vmem:[#allocation2 + $0x94] ss:$8 sm:$0x3] %vm6239_vm3, %v2476_v58  ;;  %v3169_v1 = vsel %vm3159_vm9, %v3130_v8, %v3152_v7  ;;  %v2899_v57 = vpop.permute.xlu0 %2898  ;;  %v5660_v7 = vld [vmem:[%s7850_s3 + $0x2e0] sm:$0xff]  }
 0x27f   :  { %3220 = vst.msk [vmem:[#allocation2 + $0x97] ss:$8 sm:$0x3] %vm6239_vm3, %v3169_v1  ;;  %v2921_v45 = vrot.slane %v2899_v57, 1  ;;  %v1977_v43 = vpop.permute.xlu1 %1976 }
 0x280   :  { %v1998_v39 = vrot.slane %v1977_v43, 1 }
 0x281   :  { %v2938_v24 = vsel %vm2928_vm10, %v2899_v57, %v2921_v45  ;;  %v3257_v31 = vld [vmem:[#allocation2 + $0x88] sm:$0xff]  ;;  %v3256_v15 = vld [vmem:[#allocation2 + $0x80] sm:$0xff] }
 0x282   :  { %2989 = vst.msk [vmem:[#allocation2 + $0x96] ss:$8 sm:$0x3] %vm6239_vm3, %v2938_v24  ;;  %v2015_v10 = vsel %vm2004_vm4, %v1977_v43, %v1998_v39  ;;  %v1746_v9 = vpop.permute.xlu0 %1745  ;;  %v3289_v27 = vpack.c.bf16 %v3257_v31, %v3257_v31  ;;  %v3288_v54 = vpack.c.bf16 %v3256_v15, %v3256_v15  ;;  %v5662_v15 = vld [vmem:[%s7850_s3 + $0x2d8] sm:$0xff]  }
 0x283   :  { %2068 = vst.msk [vmem:[#allocation2 + $0xa2] ss:$8 sm:$0x3] %vm6239_vm3, %v2015_v10  ;;  %v1767_v33 = vrot.slane %v1746_v9, 1  ;;  %v2439_v22 = vpop.permute.xlu1 %2438  ;;  %v5663_v10 = vld [vmem:[%s7850_s3 + $0x330] sm:$0xff]  }
 0x284   :  { %5369 = vmatprep.mubr.msk.bf16.mxu0 %vm3159_vm9, %v3289_v27  ;;  %v2460_v41 = vrot.slane %v2439_v22, 1 }
 0x285   :  { %v1784_v62 = vsel %vm1773_vm5, %v1746_v9, %v1767_v33  ;;  %4458 = vmatmul.mubr.bf16.vlgmr.msra.gmra.mxu0 %v3288_v54 }
 0x286   :  { %1837 = vst.msk [vmem:[#allocation2 + $0xa1] ss:$8 sm:$0x3] %vm6239_vm3, %v1784_v62  ;;  %4620 = vmatpush1.bf16.msra.mxu0 %v5651_v29  ;;  %v2477_v42 = vsel %vm2466_vm8, %v2439_v22, %v2460_v41  ;;  %v2208_v55 = vpop.permute.xlu0 %2207 }
 0x287   :  { %2530 = vst.msk [vmem:[#allocation2 + $0xa4] ss:$8 sm:$0x3] %vm6239_vm3, %v2477_v42  ;;  %v2229_v51 = vrot.slane %v2208_v55, 1  ;;  %4621 = vmatprep.subr.bf16.mxu0 %v7875_v23  ;;  %v1748_v37 = vpop.permute.xlu1 %1747 }
 0x288   :  { %v1768_v4 = vrot.slane %v1748_v37, 1 }
 0x289   :  { %v2246_v61 = vsel %vm2235_vm6, %v2208_v55, %v2229_v51  ;;  %v3259_v2 = vld [vmem:[#allocation2 + $0x98] sm:$0xff]  ;;  %v3258_v11 = vld [vmem:[#allocation2 + $0x90] sm:$0xff] }
 0x28a   :  { %2299 = vst.msk [vmem:[#allocation2 + $0xa3] ss:$8 sm:$0x3] %vm6239_vm3, %v2246_v61  ;;  %4622 = vmatpush1.bf16.msra.mxu0 %v5653_v52  ;;  %v1785_v28 = vsel %vm1773_vm5, %v1748_v37, %v1768_v4  ;;  %v1979_v30 = vpop.permute.xlu0 %1978  ;;  %v3291_v25 = vpack.c.bf16 %v3259_v2, %v3259_v2  ;;  %v3290_v47 = vpack.c.bf16 %v3258_v11, %v3258_v11  ;;  %v5664_v37 = vld [vmem:[%s7850_s3 + $0x2d0] sm:$0xff]   ;;  %v5665_v4 = vld [vmem:[%s7850_s3 + $0x328] sm:$0xff]  }
 0x28b   :  { %1840 = vst.msk [vmem:[#allocation2 + $0xb1] ss:$8 sm:$0x3] %vm6239_vm3, %v1785_v28  ;;  %v1999_v59 = vrot.slane %v1979_v30, 1  ;;  %4623 = vmatprep.subr.bf16.mxu0 %v7875_v23  ;;  %v2210_v44 = vpop.permute.xlu1 %2209 }
 0x28c   :  { %5379 = vmatprep.mubr.msk.bf16.mxu1 %vm3159_vm9, %v3291_v25  ;;  %v2230_v16 = vrot.slane %v2210_v44, 1 }
 0x28d   :  { %v2016_v0 = vsel %vm2004_vm4, %v1979_v30, %v1999_v59  ;;  %4555 = vmatmul.mubr.bf16.vlgmr.msra.gmra.mxu1 %v3290_v47 }
 0x28e   :  { %2071 = vst.msk [vmem:[#allocation2 + $0xb2] ss:$8 sm:$0x3] %vm6239_vm3, %v2016_v0  ;;  %4624 = vmatpush1.bf16.msra.mxu0 %v5654_v35  ;;  %4717 = vmatpush1.bf16.msra.mxu1 %v5655_v20  ;;  %v2247_v32 = vsel %vm2235_vm6, %v2210_v44, %v2230_v16  ;;  %v2670_v6 = vpop.permute.xlu0 %2669  ;;  %v5666_v35 = vld [vmem:[%s7850_s3 + $0x310] sm:$0xff]   ;;  %v5667_v20 = vld [vmem:[%s7850_s3 + $0x320] sm:$0xff]  }
 0x28f   :  { %2302 = vst.msk [vmem:[#allocation2 + $0xb3] ss:$8 sm:$0x3] %vm6239_vm3, %v2247_v32  ;;  %v2691_v60 = vrot.slane %v2670_v6, 1  ;;  %4625 = vmatprep.subr.bf16.mxu0 %v7875_v23  ;;  %4718 = vmatprep.subr.bf16.mxu1 %v7875_v23  ;;  %v2901_v5 = vpop.permute.xlu1 %2900 }
 0x290   :  { %v2922_v53 = vrot.slane %v2901_v5, 1  ;;  %v3877_v17 = vpop.f32.mrf.mxu0 }
 0x291   :  { %v2708_v38 = vsel %vm2697_vm7, %v2670_v6, %v2691_v60  ;;  %v5148_v40 = vsel %vm5144_vm11, %v3877_v17, 0.0 }
 0x292   :  { %2761 = vst.msk [vmem:[#allocation2 + $0xa5] ss:$8 sm:$0x3] %vm6239_vm3, %v2708_v38  ;;  %4626 = vmatpush1.bf16.msra.mxu0 %v5656_v63  ;;  %4719 = vmatpush1.bf16.msra.mxu1 %v5657_v48  ;;  %v2939_v18 = vsel %vm2928_vm10, %v2901_v5, %v2922_v53  ;;  %v3132_v34 = vpop.permute.xlu0 %3131  ;;  %v5149_v14 = vadd.f32 %v5148_v40, %v7454_v36  ;;  %v3879_v26 = vpop.f32.mrf.mxu0  ;;  %v5661_v36 = vld [vmem:[%s7850_s3 + $0x338] sm:$0xff]  }
 0x293   :  { %2992 = vst.msk [vmem:[#allocation2 + $0xa6] ss:$8 sm:$0x3] %vm6239_vm3, %v2939_v18  ;;  %v3153_v13 = vrot.slane %v3132_v34, 1  ;;  %4627 = vmatprep.subr.bf16.mxu0 %v7875_v23  ;;  %4720 = vmatprep.subr.bf16.mxu1 %v7875_v23  ;;  %v2672_v46 = vpop.permute.xlu1 %2671  ;;  %v5668_v5 = vld [vmem:[%s7850_s3 + $0x318] sm:$0xff]  }
 0x294   :  { %v2692_v49 = vrot.slane %v2672_v46, 1  ;;  %v3880_v56 = vpop.f32.mrf.mxu0  ;;  %v5669_v53 = vld [vmem:[%s7850_s3 + $0x398] sm:$0xff]  }
 0x295   :  { %v3170_v21 = vsel %vm3159_vm9, %v3132_v34, %v3153_v13  ;;  %v5670_v13 = vld [vmem:[%s7850_s3 + $0x358] sm:$0xff]  }
 0x296   :  { %3223 = vst.msk [vmem:[#allocation2 + $0xa7] ss:$8 sm:$0x3] %vm6239_vm3, %v3170_v21  ;;  %4628 = vmatpush1.bf16.msra.mxu0 %v5658_v3  ;;  %4721 = vmatpush1.bf16.msra.mxu1 %v5659_v12  ;;  %v2709_v8 = vsel %vm2697_vm7, %v2672_v46, %v2692_v49  ;;  %v2441_v19 = vpop.permute.xlu0 %2440  ;;  %v3881_v57 = vpop.f32.mrf.mxu0  ;;  %v5671_v46 = vld [vmem:[%s7850_s3 + $0x390] sm:$0xff]  }
 0x297   :  { %2764 = vst.msk [vmem:[#allocation2 + $0xb5] ss:$8 sm:$0x3] %vm6239_vm3, %v2709_v8  ;;  %v2461_v58 = vrot.slane %v2441_v19, 1  ;;  %4629 = vmatprep.subr.bf16.mxu0 %v7875_v23  ;;  %4722 = vmatprep.subr.bf16.mxu1 %v7875_v23  ;;  %v3134_v1 = vpop.permute.xlu1 %3133 }
 0x298   :  { %v3154_v45 = vrot.slane %v3134_v1, 1  ;;  %v3974_v39 = vpop.f32.mrf.mxu1 }
 0x299   :  { %v2478_v43 = vsel %vm2466_vm8, %v2441_v19, %v2461_v58  ;;  %v5150_v9 = vsel %vm5144_vm11, %v3974_v39, 0.0 }
 0x29a   :  { %2533 = vst.msk [vmem:[#allocation2 + $0xb4] ss:$8 sm:$0x3] %vm6239_vm3, %v2478_v43  ;;  %4630 = vmatpush1.bf16.msra.mxu0 %v5660_v7  ;;  %4723 = vmatpush1.bf16.msra.mxu1 %v5661_v36  ;;  %v3171_v24 = vsel %vm3159_vm9, %v3134_v1, %v3154_v45  ;;  %v2903_v31 = vpop.permute.xlu0 %2902  ;;  %v7561_v29 = vadd.f32 %v5150_v9, %v5149_v14  ;;  %v3976_v33 = vpop.f32.mrf.mxu1  ;;  %v5672_v7 = vld [vmem:[%s7850_s3 + $0x388] sm:$0xff]   ;;  %v5673_v36 = vld [vmem:[%s7850_s3 + $0x3e0] sm:$0xff]  }
 0x29b   :  { %3226 = vst.msk [vmem:[#allocation2 + $0xb7] ss:$8 sm:$0x3] %vm6239_vm3, %v3171_v24  ;;  %v2923_v27 = vrot.slane %v2903_v31, 1  ;;  %4631 = vmatprep.subr.bf16.mxu0 %v7875_v23  ;;  %4724 = vmatprep.subr.bf16.mxu1 %v7875_v23  ;;  %v1981_v54 = vpop.permute.xlu1 %1980 }
 0x29c   :  { %v2000_v22 = vrot.slane %v1981_v54, 1  ;;  %v3977_v42 = vpop.f32.mrf.mxu1 }
 0x29d   :  { %v2940_v41 = vsel %vm2928_vm10, %v2903_v31, %v2923_v27  ;;  %v3261_v62 = vld [vmem:[#allocation2 + $0xa8] sm:$0xff]  ;;  %v3260_v0 = vld [vmem:[#allocation2 + $0xa0] sm:$0xff]  ;;  %v5676_v42 = vld [vmem:[%s7850_s3 + $0x378] sm:$0xff]  }
 0x29e   :  { %2995 = vst.msk [vmem:[#allocation2 + $0xb6] ss:$8 sm:$0x3] %vm6239_vm3, %v2940_v41  ;;  %4632 = vmatpush1.bf16.msra.mxu0 %v5662_v15  ;;  %4725 = vmatpush1.bf16.msra.mxu1 %v5663_v10  ;;  %v2017_v55 = vsel %vm2004_vm4, %v1981_v54, %v2000_v22  ;;  %v1750_v52 = vpop.permute.xlu0 %1749  ;;  %v3293_v51 = vpack.c.bf16 %v3261_v62, %v3261_v62  ;;  %v3978_v11 = vpop.f32.mrf.mxu1  ;;  %v5674_v31 = vld [vmem:[%s7850_s3 + $0x380] sm:$0xff]   ;;  %v5675_v15 = vld [vmem:[%s7850_s3 + $0x3d8] sm:$0xff]  }
 0x29f   :  { %2074 = vst.msk [vmem:[#allocation2 + $0xc2] ss:$8 sm:$0x3] %vm6239_vm3, %v2017_v55  ;;  %v1769_v61 = vrot.slane %v1750_v52, 1  ;;  %4633 = vmatprep.subr.bf16.mxu0 %v7875_v23  ;;  %4726 = vmatprep.subr.bf16.mxu1 %v7875_v23  ;;  %v2443_v2 = vpop.permute.xlu1 %2442  ;;  %v3292_v17 = vpack.c.bf16 %v3260_v0, %v3260_v0  ;;  %v5677_v55 = vld [vmem:[%s7850_s3 + $0x3d0] sm:$0xff]  }
 0x2a0   :  { %5389 = vmatprep.mubr.msk.bf16.mxu0 %vm3159_vm9, %v3293_v51  ;;  %v2462_v28 = vrot.slane %v2443_v2, 1  ;;  %v5678_v11 = vld [vmem:[%s7850_s3 + $0x370] sm:$0xff]  }
 0x2a1   :  { %v1786_v30 = vsel %vm1773_vm5, %v1750_v52, %v1769_v61 }
 0x2a2   :  { %1843 = vst.msk [vmem:[#allocation2 + $0xc1] ss:$8 sm:$0x3] %vm6239_vm3, %v1786_v30  ;;  %4634 = vmatpush1.bf16.msra.mxu0 %v5664_v37  ;;  %4727 = vmatpush1.bf16.msra.mxu1 %v5665_v4  ;;  %v2479_v25 = vsel %vm2466_vm8, %v2443_v2, %v2462_v28  ;;  %v2212_v47 = vpop.permute.xlu0 %2211  ;;  %v5679_v28 = vld [vmem:[%s7850_s3 + $0x3c8] sm:$0xff]  }
 0x2a3   :  { %2536 = vst.msk [vmem:[#allocation2 + $0xc4] ss:$8 sm:$0x3] %vm6239_vm3, %v2479_v25  ;;  %v2231_v59 = vrot.slane %v2212_v47, 1  ;;  %4649 = vmatprep.subr.bf16.mxu0 %v7875_v23  ;;  %4728 = vmatprep.subr.bf16.mxu1 %v7875_v23  ;;  %v2905_v44 = vpop.permute.xlu1 %2904 }
 0x2a4   :  { %v2924_v16 = vrot.slane %v2905_v44, 1 }
 0x2a5   :  { %v2248_v32 = vsel %vm2235_vm6, %v2212_v47, %v2231_v59  ;;  %v3263_v6 = vld [vmem:[#allocation2 + $0xb8] sm:$0xff]  ;;  %v3262_v21 = vld [vmem:[#allocation2 + $0xb0] sm:$0xff] }
 0x2a6   :  { %2305 = vst.msk [vmem:[#allocation2 + $0xc3] ss:$8 sm:$0x3] %vm6239_vm3, %v2248_v32  ;;  %4650 = vmatpush2.bf16.msra.mxu0 %v5666_v35  ;;  %4729 = vmatpush1.bf16.msra.mxu1 %v5667_v20  ;;  %v2941_v63 = vsel %vm2928_vm10, %v2905_v44, %v2924_v16  ;;  %v2674_v48 = vpop.permute.xlu0 %2673  ;;  %v3295_v60 = vpack.c.bf16 %v3263_v6, %v3263_v6  ;;  %v5680_v44 = vld [vmem:[%s7850_s3 + $0x368] sm:$0xff]   ;;  %v5681_v16 = vld [vmem:[%s7850_s3 + $0x3c0] sm:$0xff]  }
 0x2a7   :  { %2998 = vst.msk [vmem:[#allocation2 + $0xc6] ss:$8 sm:$0x3] %vm6239_vm3, %v2941_v63  ;;  %v2693_v38 = vrot.slane %v2674_v48, 1  ;;  %4730 = vmatprep.subr.bf16.mxu1 %v7875_v23  ;;  %4813 = vmatprep.subr.bf16.mxu0 %v7875_v23  ;;  %v1752_v18 = vpop.permute.xlu1 %1751  ;;  %v3294_v1 = vpack.c.bf16 %v3262_v21, %v3262_v21 }
 0x2a8   :  { %5399 = vmatprep.mubr.msk.bf16.mxu1 %vm3159_vm9, %v3295_v60  ;;  %v1770_v34 = vrot.slane %v1752_v18, 1 }
 0x2a9   :  { %v2710_v3 = vsel %vm2697_vm7, %v2674_v48, %v2693_v38  ;;  %4652 = vmatmul.mubr.bf16.vlgmr.msra.gmra.mxu0 %v3292_v17 }
 0x2aa   :  { %2767 = vst.msk [vmem:[#allocation2 + $0xc5] ss:$8 sm:$0x3] %vm6239_vm3, %v2710_v3  ;;  %4731 = vmatpush1.bf16.msra.mxu1 %v5668_v5  ;;  %4814 = vmatpush1.bf16.msra.mxu0 %v5669_v53  ;;  %v1787_v12 = vsel %vm1773_vm5, %v1752_v18, %v1770_v34  ;;  %v3136_v40 = vpop.permute.xlu0 %3135  ;;  %v5682_v3 = vld [vmem:[%s7850_s3 + $0x360] sm:$0xff]  }
 0x2ab   :  { %1846 = vst.msk [vmem:[#allocation2 + $0xd1] ss:$8 sm:$0x3] %vm6239_vm3, %v1787_v12  ;;  %v3155_v14 = vrot.slane %v3136_v40, 1  ;;  %4746 = vmatprep.subr.bf16.mxu1 %v7875_v23  ;;  %4815 = vmatprep.subr.bf16.mxu0 %v7875_v23  ;;  %v2214_v26 = vpop.permute.xlu1 %2213 }
 0x2ac   :  { %v2232_v49 = vrot.slane %v2214_v26, 1 }
 0x2ad   :  { %v3172_v56 = vsel %vm3159_vm9, %v3136_v40, %v3155_v14 }
 0x2ae   :  { %3229 = vst.msk [vmem:[#allocation2 + $0xc7] ss:$8 sm:$0x3] %vm6239_vm3, %v3172_v56  ;;  %4747 = vmatpush2.bf16.msra.mxu1 %v5670_v13  ;;  %4816 = vmatpush1.bf16.msra.mxu0 %v5671_v46  ;;  %v2249_v8 = vsel %vm2235_vm6, %v2214_v26, %v2232_v49  ;;  %v1983_v19 = vpop.permute.xlu0 %1982 }
 0x2af   :  { %2308 = vst.msk [vmem:[#allocation2 + $0xd3] ss:$8 sm:$0x3] %vm6239_vm3, %v2249_v8  ;;  %v2001_v58 = vrot.slane %v1983_v19, 1  ;;  %4817 = vmatprep.subr.bf16.mxu0 %v7875_v23  ;;  %4910 = vmatprep.subr.bf16.mxu1 %v7875_v23  ;;  %v2676_v57 = vpop.permute.xlu1 %2675 }
 0x2b0   :  { %v2694_v45 = vrot.slane %v2676_v57, 1 }
 0x2b1   :  { %v2018_v43 = vsel %vm2004_vm4, %v1983_v19, %v2001_v58  ;;  %4749 = vmatmul.mubr.bf16.vlgmr.msra.gmra.mxu1 %v3294_v1  ;;  %v5685_v58 = vld [vmem:[%s7850_s3 + $0x3b0] sm:$0xff]  }
 0x2b2   :  { %2077 = vst.msk [vmem:[#allocation2 + $0xd2] ss:$8 sm:$0x3] %vm6239_vm3, %v2018_v43  ;;  %4818 = vmatpush1.bf16.msra.mxu0 %v5672_v7  ;;  %4911 = vmatpush1.bf16.msra.mxu1 %v5673_v36  ;;  %v2711_v39 = vsel %vm2697_vm7, %v2676_v57, %v2694_v45  ;;  %v2445_v24 = vpop.permute.xlu0 %2444  ;;  %v5684_v36 = vld [vmem:[%s7850_s3 + $0x3a0] sm:$0xff]  }
 0x2b3   :  { %2770 = vst.msk [vmem:[#allocation2 + $0xd5] ss:$8 sm:$0x3] %vm6239_vm3, %v2711_v39  ;;  %v2463_v10 = vrot.slane %v2445_v24, 1  ;;  %4819 = vmatprep.subr.bf16.mxu0 %v7875_v23  ;;  %4912 = vmatprep.subr.bf16.mxu1 %v7875_v23  ;;  %v3138_v9 = vpop.permute.xlu1 %3137 }
 0x2b4   :  { %v3156_v27 = vrot.slane %v3138_v9, 1 }
 0x2b5   :  { %v2480_v54 = vsel %vm2466_vm8, %v2445_v24, %v2463_v10  ;;  %v3265_v33 = vld [vmem:[#allocation2 + $0xc8] sm:$0xff]  ;;  %v3264_v39 = vld [vmem:[#allocation2 + $0xc0] sm:$0xff] }
 0x2b6   :  { %2539 = vst.msk [vmem:[#allocation2 + $0xd4] ss:$8 sm:$0x3] %vm6239_vm3, %v2480_v54  ;;  %4820 = vmatpush1.bf16.msra.mxu0 %v5674_v31  ;;  %4913 = vmatpush1.bf16.msra.mxu1 %v5675_v15  ;;  %v3173_v22 = vsel %vm3159_vm9, %v3138_v9, %v3156_v27  ;;  %v2907_v41 = vpop.permute.xlu0 %2906  ;;  %v3297_v62 = vpack.c.bf16 %v3265_v33, %v3265_v33  ;;  %v5686_v9 = vld [vmem:[%s7850_s3 + $0x3a8] sm:$0xff]  }
 0x2b7   :  { %3232 = vst.msk [vmem:[#allocation2 + $0xd7] ss:$8 sm:$0x3] %vm6239_vm3, %v3173_v22  ;;  %v2925_v52 = vrot.slane %v2907_v41, 1  ;;  %4821 = vmatprep.subr.bf16.mxu0 %v7875_v23  ;;  %4914 = vmatprep.subr.bf16.mxu1 %v7875_v23  ;;  %v1985_v51 = vpop.permute.xlu1 %1984  ;;  %v5687_v27 = vld [vmem:[%s7850_s3 + $0x428] sm:$0xff]   ;;  %v3296_v33 = vpack.c.bf16 %v3264_v39, %v3264_v39 }
 0x2b8   :  { %5409 = vmatprep.mubr.msk.bf16.mxu0 %vm3159_vm9, %v3297_v62  ;;  %v2002_v37 = vrot.slane %v1985_v51, 1 }
 0x2b9   :  { %v2942_v4 = vsel %vm2928_vm10, %v2907_v41, %v2925_v52  ;;  %v5688_v52 = vld [vmem:[%s7850_s3 + $0x3e8] sm:$0xff]  }
 0x2ba   :  { %3001 = vst.msk [vmem:[#allocation2 + $0xd6] ss:$8 sm:$0x3] %vm6239_vm3, %v2942_v4  ;;  %4822 = vmatpush1.bf16.msra.mxu0 %v5676_v42  ;;  %4915 = vmatpush1.bf16.msra.mxu1 %v5677_v55  ;;  %v2019_v61 = vsel %vm2004_vm4, %v1985_v51, %v2002_v37  ;;  %v1754_v2 = vpop.permute.xlu0 %1753  ;;  %v5689_v51 = vld [vmem:[%s7850_s3 + $0x420] sm:$0xff]  }
 0x2bb   :  { %2080 = vst.msk [vmem:[#allocation2 + $0xe2] ss:$8 sm:$0x3] %vm6239_vm3, %v2019_v61  ;;  %v1771_v30 = vrot.slane %v1754_v2, 1  ;;  %4823 = vmatprep.subr.bf16.mxu0 %v7875_v23  ;;  %4916 = vmatprep.subr.bf16.mxu1 %v7875_v23  ;;  %v2447_v25 = vpop.permute.xlu1 %2446 }
 0x2bc   :  { %v2464_v47 = vrot.slane %v2447_v25, 1  ;;  %v4071_v0 = vpop.f32.mrf.mxu0 }
 0x2bd   :  { %v1788_v35 = vsel %vm1773_vm5, %v1754_v2, %v1771_v30  ;;  %v5152_v63 = vsel %vm5144_vm11, %v4071_v0, 0.0  ;;  %v5692_v0 = vld [vmem:[%s7850_s3 + $0x410] sm:$0xff]  }
 0x2be   :  { %1849 = vst.msk [vmem:[#allocation2 + $0xe1] ss:$8 sm:$0x3] %vm6239_vm3, %v1788_v35  ;;  %4824 = vmatpush1.bf16.msra.mxu0 %v5678_v11  ;;  %4917 = vmatpush1.bf16.msra.mxu1 %v5679_v28  ;;  %v2481_v20 = vsel %vm2466_vm8, %v2447_v25, %v2464_v47  ;;  %v2216_v59 = vpop.permute.xlu0 %2215  ;;  %v5153_v60 = vadd.f32 %v5152_v63, %v7561_v29  ;;  %v4073_v5 = vpop.f32.mrf.mxu0  ;;  %v5683_v29 = vld [vmem:[%s7850_s3 + $0x3b8] sm:$0xff]  }
 0x2bf   :  { %2542 = vst.msk [vmem:[#allocation2 + $0xe4] ss:$8 sm:$0x3] %vm6239_vm3, %v2481_v20  ;;  %v2233_v32 = vrot.slane %v2216_v59, 1  ;;  %4825 = vmatprep.subr.bf16.mxu0 %v7875_v23  ;;  %4918 = vmatprep.subr.bf16.mxu1 %v7875_v23  ;;  %v2909_v6 = vpop.permute.xlu1 %2908  ;;  %v5690_v35 = vld [vmem:[%s7850_s3 + $0x418] sm:$0xff]   ;;  %v5691_v20 = vld [vmem:[%s7850_s3 + $0x470] sm:$0xff]  }
 0x2c0   :  { %v2926_v48 = vrot.slane %v2909_v6, 1  ;;  %v4074_v12 = vpop.f32.mrf.mxu0  ;;  %v5697_v5 = vld [vmem:[%s7850_s3 + $0x458] sm:$0xff]  }
 0x2c1   :  { %v2250_v53 = vsel %vm2235_vm6, %v2216_v59, %v2233_v32  ;;  %v3267_v38 = vld [vmem:[#allocation2 + $0xd8] sm:$0xff]  ;;  %v4168_v46 = vpop.f32.mrf.mxu1  ;;  %v3266_v2 = vld [vmem:[#allocation2 + $0xd0] sm:$0xff]  ;;  %v5693_v32 = vld [vmem:[%s7850_s3 + $0x468] sm:$0xff]  }
 0x2c2   :  { %2311 = vst.msk [vmem:[#allocation2 + $0xe3] ss:$8 sm:$0x3] %vm6239_vm3, %v2250_v53  ;;  %4826 = vmatpush1.bf16.msra.mxu0 %v5680_v44  ;;  %4919 = vmatpush1.bf16.msra.mxu1 %v5681_v16  ;;  %v2943_v17 = vsel %vm2928_vm10, %v2909_v6, %v2926_v48  ;;  %v2678_v18 = vpop.permute.xlu0 %2677  ;;  %v3299_v34 = vpack.c.bf16 %v3267_v38, %v3267_v38  ;;  %v4075_v26 = vpop.f32.mrf.mxu0  ;;  %v5154_v49 = vsel %vm5144_vm11, %v4168_v46, 0.0  ;;  %v5695_v6 = vld [vmem:[%s7850_s3 + $0x460] sm:$0xff]   ;;  %v5698_v53 = vld [vmem:[%s7850_s3 + $0x3f8] sm:$0xff]  }
 0x2c3   :  { %3004 = vst.msk [vmem:[#allocation2 + $0xe6] ss:$8 sm:$0x3] %vm6239_vm3, %v2943_v17  ;;  %v2695_v40 = vrot.slane %v2678_v18, 1  ;;  %4827 = vmatprep.subr.bf16.mxu0 %v7875_v23  ;;  %4920 = vmatprep.subr.bf16.mxu1 %v7875_v23  ;;  %v1756_v13 = vpop.permute.xlu1 %1755  ;;  %v7711_v56 = vadd.f32 %v5154_v49, %v5153_v60  ;;  %v4170_v8 = vpop.f32.mrf.mxu1  ;;  %v3298_v44 = vpack.c.bf16 %v3266_v2, %v3266_v2  ;;  %v5696_v60 = vld [vmem:[%s7850_s3 + $0x400] sm:$0xff]   ;;  %v5699_v38 = vld [vmem:[%s7850_s3 + $0x450] sm:$0xff]  }
 0x2c4   :  { %5419 = vmatprep.mubr.msk.bf16.mxu1 %vm3159_vm9, %v3299_v34  ;;  %v1772_v14 = vrot.slane %v1756_v13, 1  ;;  %v5701_v12 = vld [vmem:[%s7850_s3 + $0x448] sm:$0xff]  }
 0x2c5   :  { %v2712_v21 = vsel %vm2697_vm7, %v2678_v18, %v2695_v40  ;;  %v4171_v45 = vpop.f32.mrf.mxu1 }
 0x2c6   :  { %2773 = vst.msk [vmem:[#allocation2 + $0xe5] ss:$8 sm:$0x3] %vm6239_vm3, %v2712_v21  ;;  %4828 = vmatpush1.bf16.msra.mxu0 %v5682_v3  ;;  %4921 = vmatpush1.bf16.msra.mxu1 %v5683_v29  ;;  %v1789_v19 = vsel %vm1773_vm5, %v1756_v13, %v1772_v14  ;;  %v3140_v7 = vpop.permute.xlu0 %3139  ;;  %v5700_v29 = vld [vmem:[%s7850_s3 + $0x3f0] sm:$0xff]  }
 0x2c7   :  { %1852 = vst.msk [vmem:[#allocation2 + $0xf1] ss:$8 sm:$0x3] %vm6239_vm3, %v1789_v19  ;;  %v3157_v1 = vrot.slane %v3140_v7, 1  ;;  %4843 = vmatprep.subr.bf16.mxu0 %v7875_v23  ;;  %4922 = vmatprep.subr.bf16.mxu1 %v7875_v23  ;;  %v2218_v57 = vpop.permute.xlu1 %2217  ;;  %v4172_v31 = vpop.f32.mrf.mxu1  ;;  %v5702_v21 = vld [vmem:[%s7850_s3 + $0x430] sm:$0xff]  }
 0x2c8   :  { %v2234_v43 = vrot.slane %v2218_v57, 1 }
 0x2c9   :  { %v3174_v24 = vsel %vm3159_vm9, %v3140_v7, %v3157_v1  ;;  %v5705_v1 = vld [vmem:[%s7850_s3 + $0x478] sm:$0xff]  }
 0x2ca   :  { %3235 = vst.msk [vmem:[#allocation2 + $0xe7] ss:$8 sm:$0x3] %vm6239_vm3, %v3174_v24  ;;  %4844 = vmatpush2.bf16.msra.mxu0 %v5684_v36  ;;  %4923 = vmatpush1.bf16.msra.mxu1 %v5685_v58  ;;  %v2251_v15 = vsel %vm2235_vm6, %v2218_v57, %v2234_v43  ;;  %v1987_v10 = vpop.permute.xlu0 %1986  ;;  %v5704_v36 = vld [vmem:[%s7850_s3 + $0x438] sm:$0xff]  }
 0x2cb   :  { %2314 = vst.msk [vmem:[#allocation2 + $0xf3] ss:$8 sm:$0x3] %vm6239_vm3, %v2251_v15  ;;  %v2003_v54 = vrot.slane %v1987_v10, 1  ;;  %4924 = vmatprep.subr.bf16.mxu1 %v7875_v23  ;;  %5007 = vmatprep.subr.bf16.mxu0 %v7875_v23  ;;  %v2680_v22 = vpop.permute.xlu1 %2679 }
 0x2cc   :  { %v2696_v41 = vrot.slane %v2680_v22, 1 }
 0x2cd   :  { %v2020_v62 = vsel %vm2004_vm4, %v1987_v10, %v2003_v54  ;;  %4846 = vmatmul.mubr.bf16.vlgmr.msra.gmra.mxu0 %v3296_v33 }
 0x2ce   :  { %2083 = vst.msk [vmem:[#allocation2 + $0xf2] ss:$8 sm:$0x3] %vm6239_vm3, %v2020_v62  ;;  %4925 = vmatpush1.bf16.msra.mxu1 %v5686_v9  ;;  %5008 = vmatpush1.bf16.msra.mxu0 %v5687_v27  ;;  %v2713_v42 = vsel %vm2697_vm7, %v2680_v22, %v2696_v41  ;;  %v2449_v55 = vpop.permute.xlu0 %2448 }
 0x2cf   :  { %2776 = vst.msk [vmem:[#allocation2 + $0xf5] ss:$8 sm:$0x3] %vm6239_vm3, %v2713_v42  ;;  %v2465_v37 = vrot.slane %v2449_v55, 1  ;;  %4940 = vmatprep.subr.bf16.mxu1 %v7875_v23  ;;  %5009 = vmatprep.subr.bf16.mxu0 %v7875_v23  ;;  %v3142_v4 = vpop.permute.xlu1 %3141 }
 0x2d0   :  { %v3158_v61 = vrot.slane %v3142_v4, 1 }
 0x2d1   :  { %v2482_v11 = vsel %vm2466_vm8, %v2449_v55, %v2465_v37  ;;  %v3269_v28 = vld [vmem:[#allocation2 + $0xe8] sm:$0xff]  ;;  %v3268_v19 = vld [vmem:[#allocation2 + $0xe0] sm:$0xff] }
 0x2d2   :  { %2545 = vst.msk [vmem:[#allocation2 + $0xf4] ss:$8 sm:$0x3] %vm6239_vm3, %v2482_v11  ;;  %4941 = vmatpush2.bf16.msra.mxu1 %v5688_v52  ;;  %5010 = vmatpush1.bf16.msra.mxu0 %v5689_v51  ;;  %v3175_v30 = vsel %vm3159_vm9, %v3142_v4, %v3158_v61  ;;  %v2911_v25 = vpop.permute.xlu0 %2910  ;;  %v3301_v47 = vpack.c.bf16 %v3269_v28, %v3269_v28 }
 0x2d3   :  { %3238 = vst.msk [vmem:[#allocation2 + $0xf7] ss:$8 sm:$0x3] %vm6239_vm3, %v3175_v30  ;;  %v2927_v59 = vrot.slane %v2911_v25, 1  ;;  %5011 = vmatprep.subr.bf16.mxu0 %v7875_v23  ;;  %5104 = vmatprep.subr.bf16.mxu1 %v7875_v23  ;;  %v3300_v58 = vpack.c.bf16 %v3268_v19, %v3268_v19 }
 0x2d4   :  { %5429 = vmatprep.mubr.msk.bf16.mxu0 %vm3159_vm9, %v3301_v47 }
 0x2d5   :  { %v2944_v16 = vsel %vm2928_vm10, %v2911_v25, %v2927_v59  ;;  %4943 = vmatmul.mubr.bf16.vlgmr.msra.gmra.mxu1 %v3298_v44 }
 0x2d6   :  { %3007 = vst.msk [vmem:[#allocation2 + $0xf6] ss:$8 sm:$0x3] %vm6239_vm3, %v2944_v16  ;;  %5012 = vmatpush1.bf16.msra.mxu0 %v5690_v35  ;;  %5105 = vmatpush1.bf16.msra.mxu1 %v5691_v20 }
 0x2d7   :  { %5013 = vmatprep.subr.bf16.mxu0 %v7875_v23  ;;  %5106 = vmatprep.subr.bf16.mxu1 %v7875_v23 }
 0x2da   :  { %5014 = vmatpush1.bf16.msra.mxu0 %v5692_v0  ;;  %5107 = vmatpush1.bf16.msra.mxu1 %v5693_v32 }
 0x2db   :  { %5015 = vmatprep.subr.bf16.mxu0 %v7875_v23  ;;  %5108 = vmatprep.subr.bf16.mxu1 %v7875_v23 }
 0x2dd   :  { %v3271_v63 = vld [vmem:[#allocation2 + $0xf8] sm:$0xff]  ;;  %v3270_v57 = vld [vmem:[#allocation2 + $0xf0] sm:$0xff] }
 0x2de   :  { %5016 = vmatpush1.bf16.msra.mxu0 %v5694_v50  ;;  %5109 = vmatpush1.bf16.msra.mxu1 %v5695_v6  ;;  %v3303_v48 = vpack.c.bf16 %v3271_v63, %v3271_v63  ;;  %v3302_v45 = vpack.c.bf16 %v3270_v57, %v3270_v57 }
 0x2df   :  { %5017 = vmatprep.subr.bf16.mxu0 %v7875_v23  ;;  %5110 = vmatprep.subr.bf16.mxu1 %v7875_v23 }
 0x2e0   :  { %5439 = vmatprep.mubr.msk.bf16.mxu1 %vm3159_vm9, %v3303_v48 }
 0x2e1   :  { %v4265_v17 = vpop.f32.mrf.mxu0 }
 0x2e2   :  { %5018 = vmatpush1.bf16.msra.mxu0 %v5696_v60  ;;  %5111 = vmatpush1.bf16.msra.mxu1 %v5697_v5  ;;  %v5156_v18 = vsel %vm5144_vm11, %v4265_v17, 0.0 }
 0x2e3   :  { %5019 = vmatprep.subr.bf16.mxu0 %v7875_v23  ;;  %5112 = vmatprep.subr.bf16.mxu1 %v7875_v23  ;;  %v5157_v34 = vadd.f32 %v5156_v18, %v7711_v56  ;;  %v4267_v3 = vpop.f32.mrf.mxu0  ;;  %v5703_v56 = vld [vmem:[%s7850_s3 + $0x440] sm:$0xff]  }
 0x2e5   :  { %v4268_v40 = vpop.f32.mrf.mxu0 }
 0x2e6   :  { %5020 = vmatpush1.bf16.msra.mxu0 %v5698_v53  ;;  %5113 = vmatpush1.bf16.msra.mxu1 %v5699_v38  ;;  %v4362_v13 = vpop.f32.mrf.mxu1 }
 0x2e7   :  { %5021 = vmatprep.subr.bf16.mxu0 %v7875_v23  ;;  %5114 = vmatprep.subr.bf16.mxu1 %v7875_v23  ;;  %v5158_v46 = vsel %vm5144_vm11, %v4362_v13, 0.0  ;;  %v4269_v14 = vpop.f32.mrf.mxu0 }
 0x2e8   :  { %v5159_v26 = vadd.f32 %v5158_v46, %v5157_v34  ;;  %v4364_v49 = vpop.f32.mrf.mxu1  ;;  %v5440_v34 = vld [vmem:[%s7851_s4] ss:$0 sm:$0xff] }
 0x2ea   :  { %5022 = vmatpush1.bf16.msra.mxu0 %v5700_v29  ;;  %5115 = vmatpush1.bf16.msra.mxu1 %v5701_v12  ;;  %v4365_v8 = vpop.f32.mrf.mxu1 }
 0x2eb   :  { %5037 = vmatprep.subr.bf16.mxu0 %v7875_v23  ;;  %5116 = vmatprep.subr.bf16.mxu1 %v7875_v23 }
 0x2ec   :  { %v4366_v7 = vpop.f32.mrf.mxu1 }
 0x2ee   :  { %5038 = vmatpush2.bf16.msra.mxu0 %v5702_v21  ;;  %5117 = vmatpush1.bf16.msra.mxu1 %v5703_v56 }
 0x2ef   :  { %5118 = vmatprep.subr.bf16.mxu1 %v7875_v23 }
 0x2f1   :  { %5040 = vmatmul.mubr.bf16.vlgmr.msra.gmra.mxu0 %v3300_v58 }
 0x2f2   :  { %5119 = vmatpush1.bf16.msra.mxu1 %v5704_v36 }
 0x2f3   :  { %5134 = vmatprep.subr.bf16.mxu1 %v7875_v23 }
 0x2f6   :  { %5135 = vmatpush2.bf16.msra.mxu1 %v5705_v1 }
 0x2f9   :  { %5137 = vmatmul.mubr.bf16.vlgmr.msra.gmra.mxu1 %v3302_v45 }
 0x345   :  { %v4459_v43 = vpop.f32.mrf.mxu0 }
 0x346   :  { %v5160_v39 = vsel %vm5144_vm11, %v4459_v43, 0.0 }
 0x347   :  { %v5161_v24 = vadd.f32 %v5160_v39, %v5159_v26  ;;  %v4461_v31 = vpop.f32.mrf.mxu0 }
 0x349   :  { %v4462_v15 = vpop.f32.mrf.mxu0 }
 0x34b   :  { %v4463_v10 = vpop.f32.mrf.mxu0 }
 0x34d   :  { %v4556_v9 = vpop.f32.mrf.mxu1 }
 0x34e   :  { %v5162_v27 = vsel %vm5144_vm11, %v4556_v9, 0.0 }
 0x34f   :  { %v5163_v54 = vadd.f32 %v5162_v27, %v5161_v24  ;;  %v4558_v33 = vpop.f32.mrf.mxu1 }
 0x351   :  { %v4559_v22 = vpop.f32.mrf.mxu1 }
 0x353   :  { %v4560_v41 = vpop.f32.mrf.mxu1 }
 0x369   :  { %v4653_v62 = vpop.f32.mrf.mxu0 }
 0x36a   :  { %v5164_v23 = vsel %vm5144_vm11, %v4653_v62, 0.0 }
 0x36b   :  { %v5165_v42 = vadd.f32 %v5164_v23, %v5163_v54  ;;  %v4655_v55 = vpop.f32.mrf.mxu0 }
 0x36d   :  { %v4656_v52 = vpop.f32.mrf.mxu0 }
 0x36f   :  { %v4657_v51 = vpop.f32.mrf.mxu0 }
 0x371   :  { %v4750_v37 = vpop.f32.mrf.mxu1 }
 0x372   :  { %v5166_v4 = vsel %vm5144_vm11, %v4750_v37, 0.0 }
 0x373   :  { %v5167_v61 = vadd.f32 %v5166_v4, %v5165_v42  ;;  %v4752_v2 = vpop.f32.mrf.mxu1 }
 0x375   :  { %v4753_v11 = vpop.f32.mrf.mxu1 }
 0x377   :  { %v4754_v28 = vpop.f32.mrf.mxu1 }
 0x38d   :  { %v4847_v30 = vpop.f32.mrf.mxu0 }
 0x38e   :  { %v5168_v32 = vsel %vm5144_vm11, %v4847_v30, 0.0 }
 0x38f   :  { %v4849_v25 = vpop.f32.mrf.mxu0  ;;  %v5169_v63 = vadd.f32 %v5168_v32, %v5167_v61 }
 0x391   :  { %v4850_v47 = vpop.f32.mrf.mxu0 }
 0x393   :  { %v4851_v35 = vpop.f32.mrf.mxu0 }
 0x395   :  { %v4944_v20 = vpop.f32.mrf.mxu1 }
 0x396   :  { %v5170_v6 = vsel %vm5144_vm11, %v4944_v20, 0.0 }
 0x397   :  { %v4946_v59 = vpop.f32.mrf.mxu1  ;;  %v5171_v5 = vadd.f32 %v5170_v6, %v5169_v63 }
 0x399   :  { %v4947_v44 = vpop.f32.mrf.mxu1 }
 0x39b   :  { %v4948_v16 = vpop.f32.mrf.mxu1 }
 0x3b1   :  { %v5041_v0 = vpop.f32.mrf.mxu0 }
 0x3b2   :  { %v5172_v60 = vsel %vm5144_vm11, %v5041_v0, 0.0 }
 0x3b3   :  { %v5043_v50 = vpop.f32.mrf.mxu0  ;;  %v5173_v38 = vadd.f32 %v5172_v60, %v5171_v5 }
 0x3b5   :  { %v5044_v48 = vpop.f32.mrf.mxu0 }
 0x3b7   :  { %v5045_v53 = vpop.f32.mrf.mxu0 }
 0x3b9   :  { %v5138_v17 = vpop.f32.mrf.mxu1 }
 0x3ba   :  { %v5174_v18 = vsel %vm5144_vm11, %v5138_v17, 0.0 }
 0x3bb   :  { %v5175_v3 = vadd.f32 %v5174_v18, %v5173_v38  ;;  %v5140_v29 = vpop.f32.mrf.mxu1 }
 0x3bd   :  { %v5183_v12 = vadd.f32 %v5440_v34, %v5175_v3  ;;  %v5141_v40 = vpop.f32.mrf.mxu1 }
 0x3bf   :  { %5184 = vst.msk [vmem:[%s7852_s5] sm:$0xff] %vm5144_vm11, %v5183_v12  ;;  %v5142_v13 = vpop.f32.mrf.mxu1 }

</bundles_post_ra>
